<compile_context>
chip_gen: v5e
topology: v5e:2x2
jax: 0.10.0
libtpu: 0.0.40
codegen_flags: <defaults>
</compile_context>

<pallas_src>
import functools

import jax
import jax.numpy as jnp
import numpy as np
from jax.experimental import pallas as pl
from jax.experimental.pallas import tpu as pltpu


def _attention_kernel(x_ref, wqkv_ref, wout_ref, o_ref, *, heads, dim_head, scale):
    """Temporal self-attention over the f axis for a block of TB (b, h*w) slabs.

    x_ref    : (TB, F, C)      bf16 activations
    wqkv_ref : (C, 3*hidden)   bf16 qkv projection (nn.Linear(bias=False))
    wout_ref : (hidden, C)     bf16 output projection (nn.Linear(bias=False))
    o_ref    : (TB, F*C)       f32, lane-dense output slab
    """
    tb, f, c = x_ref.shape
    hidden = heads * dim_head

    # ---- fused QKV projection: one big (TB*F, C) @ (C, 3*hidden) MXU matmul ----
    x = x_ref[...].reshape(tb * f, c)                 # collapse leading dims (layout no-op)
    qkv = jnp.dot(x, wqkv_ref[...], preferred_element_type=jnp.float32)  # (TB*F, 3*hidden) f32
    qkv = qkv.reshape(tb, f, 3 * hidden)              # split leading dim (layout no-op)

    q = qkv[:, :, 0 * hidden:1 * hidden] * scale      # (TB, F, hidden) f32
    k = qkv[:, :, 1 * hidden:2 * hidden]
    v = qkv[:, :, 2 * hidden:3 * hidden]

    # ---- per-head attention over frames, batched over the TB slabs ----
    # `heads` is a tiny static count; each einsum is a single-batch-dim batched
    # matmul (the validated Mosaic pattern).  Softmax math stays f32.
    head_outs = []
    for h in range(heads):
        lo, hi = h * dim_head, (h + 1) * dim_head
        qh, kh, vh = q[:, :, lo:hi], k[:, :, lo:hi], v[:, :, lo:hi]         # (TB, F, d)
        sim = jnp.einsum('bqd,bkd->bqk', qh, kh,
                         preferred_element_type=jnp.float32)                # (TB, F, F)
        sim = sim - jnp.max(sim, axis=-1, keepdims=True)
        p = jnp.exp(sim)
        attn = p * pl.reciprocal(jnp.sum(p, axis=-1, keepdims=True), approx=True)
        head_outs.append(jnp.einsum('bqk,bkd->bqd', attn, vh,
                                    preferred_element_type=jnp.float32))    # (TB, F, d)
    out = jnp.concatenate(head_outs, axis=-1)          # (TB, F, hidden) f32

    # ---- output projection: one big (TB*F, hidden) @ (hidden, C) MXU matmul ----
    out = out.reshape(tb * f, hidden).astype(jnp.bfloat16)
    y = jnp.dot(out, wout_ref[...], preferred_element_type=jnp.float32)     # (TB*F, C) f32
    y = y.reshape(tb, f, c)                            # split leading dim (layout no-op)

    # ---- lane-dense store: pack (TB, F, C) -> (TB, F*C); F*C is a multiple of 128
    o_ref[...] = jnp.concatenate([y[:, i, :] for i in range(f)], axis=-1)


def _round_up(x, m):
    return (x + m - 1) // m * m


def _choose_block_rows(n, f, c, hidden, vmem_budget_bytes=16 * 1024 * 1024, cap=512):
    """Pick TB = rows of (h*w) slabs per block: VMEM-budgeted, multiple of 8,
    divides n, and keeps >= 2 grid steps when possible (megacore / v7x 2 TCs)."""
    per_row = (2 * 2 * f * _round_up(c, 128)    # double-buffered bf16 input (lane padded)
               + 2 * 4 * f * c                  # double-buffered f32 output (lane dense)
               + 4 * f * (5 * hidden + 2 * c))  # rough f32 working set (qkv/attn/out)
    limit = max(8, vmem_budget_bytes // per_row)
    if n % 8 != 0:
        return n                                 # single full block keeps block shapes legal
    tb = min(limit, cap, max(8, n // 2))
    tb = max(8, (tb // 8) * 8)
    while n % tb:
        tb -= 8
    return tb


def einops_to_and_from_attention(x, w_qkv, w_out, *, heads, dim_head, block_rows=None):
    """EinopsToAndFrom('b c f h w', 'b (h w) f c', Attention(dim=C)) forward."""
    B, C, F, H, W = x.shape
    N = B * H * W
    hidden = heads * dim_head
    assert w_qkv.shape == (C, 3 * hidden)
    assert w_out.shape == (hidden, C)
    scale = float(dim_head) ** -0.5

    # rearrange 'b c f h w -> (b h w) f c' : single transpose+reshape on the input side
    x_r = jnp.transpose(x, (0, 3, 4, 2, 1)).reshape(N, F, C)

    # bf16 activations/weights halve HBM traffic and feed the MXU its native dtype;
    # all accumulation inside the kernel is f32.
    x_r = x_r.astype(jnp.bfloat16)
    w_qkv_b = w_qkv.astype(jnp.bfloat16)
    w_out_b = w_out.astype(jnp.bfloat16)

    TB = _choose_block_rows(N, F, C, hidden) if block_rows is None else block_rows
    assert N % TB == 0

    kernel = functools.partial(
        _attention_kernel, heads=heads, dim_head=dim_head, scale=scale)

    y2 = pl.pallas_call(
        kernel,
        out_shape=jax.ShapeDtypeStruct((N, F * C), jnp.float32),
        grid_spec=pltpu.PrefetchScalarGridSpec(
            num_scalar_prefetch=0,
            grid=(N // TB,),
            in_specs=[
                pl.BlockSpec((TB, F, C), lambda i: (i, 0, 0)),
                # constant block index -> weights stay resident in VMEM (no re-DMA)
                pl.BlockSpec((C, 3 * hidden), lambda i: (0, 0)),
                pl.BlockSpec((hidden, C), lambda i: (0, 0)),
            ],
            out_specs=pl.BlockSpec((TB, F * C), lambda i: (i, 0)),
        ),
        compiler_params=pltpu.CompilerParams(
            dimension_semantics=("parallel",),
            vmem_limit_bytes=48 * 1024 * 1024,
        ),
    )(x_r, w_qkv_b, w_out_b)

    # rearrange '(b h w) (f c) -> b c f h w' : single transpose on the output side
    y = y2.reshape(B, H, W, F, C).transpose(0, 4, 3, 1, 2)
    return y


def _reference(x, w_qkv, w_out, *, heads, dim_head):
    """Pure-JAX f32 reference of the same forward pass."""
    B, C, F, H, W = x.shape
    hidden = heads * dim_head
    scale = float(dim_head) ** -0.5
    xr = jnp.transpose(x, (0, 3, 4, 2, 1)).reshape(B * H * W, F, C)
    qkv = xr @ w_qkv
    q, k, v = jnp.split(qkv, 3, axis=-1)
    q = q * scale
    q = q.reshape(-1, F, heads, dim_head).transpose(0, 2, 1, 3)
    k = k.reshape(-1, F, heads, dim_head).transpose(0, 2, 1, 3)
    v = v.reshape(-1, F, heads, dim_head).transpose(0, 2, 1, 3)
    sim = jnp.einsum('bhid,bhjd->bhij', q, k)
    sim = sim - jnp.max(sim, axis=-1, keepdims=True)
    attn = jax.nn.softmax(sim, axis=-1)
    out = jnp.einsum('bhij,bhjd->bhid', attn, v)
    out = out.transpose(0, 2, 1, 3).reshape(-1, F, hidden)
    yr = out @ w_out
    return yr.reshape(B, H, W, F, C).transpose(0, 4, 3, 1, 2)


if __name__ == "__main__":
    # small shapes consistent with 'b c f h w'
    B, C, F, H, W = 2, 32, 8, 4, 4
    heads, dim_head = 4, 8
    hidden = heads * dim_head

    key = jax.random.PRNGKey(0)
    kx, kq, ko = jax.random.split(key, 3)
    x = jax.random.normal(kx, (B, C, F, H, W), dtype=jnp.float32)
    # nn.Linear(bias=False) weights, stored as (in, out)
    w_qkv = jax.random.normal(kq, (C, 3 * hidden), dtype=jnp.float32) * (C ** -0.5)
    w_out = jax.random.normal(ko, (hidden, C), dtype=jnp.float32) * (hidden ** -0.5)

    y = einops_to_and_from_attention(x, w_qkv, w_out, heads=heads, dim_head=dim_head)
    y = jax.block_until_ready(y)

    # Reference is evaluated in f32 on the same bf16-quantized inputs the kernel
    # consumes; remaining divergence is only from in-kernel bf16 intermediates
    # and the approx reciprocal, so a tight-ish tolerance still holds.
    x_q = x.astype(jnp.bfloat16).astype(jnp.float32)
    wq_q = w_qkv.astype(jnp.bfloat16).astype(jnp.float32)
    wo_q = w_out.astype(jnp.bfloat16).astype(jnp.float32)
    y_ref = _reference(x_q, wq_q, wo_q, heads=heads, dim_head=dim_head)
    np.testing.assert_allclose(np.asarray(y), np.asarray(y_ref), rtol=3e-2, atol=3e-2)

    print("KERNEL_OK")
</pallas_src>

<mosaic_0001>
module attributes {stable_mosaic.version = 11 : i64} {
  func.func @_attention_kernel(%arg0: i32, %arg1: memref<16x8x32xbf16, #tpu.memory_space<vmem>>, %arg2: memref<32x96xbf16, #tpu.memory_space<vmem>>, %arg3: memref<32x32xbf16, #tpu.memory_space<vmem>>, %arg4: memref<16x256xf32, #tpu.memory_space<vmem>>) attributes {dimension_semantics = [#tpu.dimension_semantics<parallel>], iteration_bounds = array<i64: 2>, scalar_prefetch = 0 : i64, scratch_operands = 0 : i64, tpu.core_type = #tpu.core_type<tc>, window_params = [{transform_indices = @transform_0, window_bounds = array<i64: 16, 8, 32>}, {pipeline_mode = #tpu.pipeline_mode<synchronous>, transform_indices = @transform_1, window_bounds = array<i64: 32, 96>}, {pipeline_mode = #tpu.pipeline_mode<synchronous>, transform_indices = @transform_2, window_bounds = array<i64: 32, 32>}, {transform_indices = @transform_3, window_bounds = array<i64: 16, 256>}]} {
    %c0 = arith.constant 0 : index
    %c0_0 = arith.constant 0 : index
    %c0_1 = arith.constant 0 : index
    %0 = vector.load %arg1[%c0, %c0_0, %c0_1] : memref<16x8x32xbf16, #tpu.memory_space<vmem>>, vector<16x8x32xbf16>
    %1 = vector.shape_cast %0 : vector<16x8x32xbf16> to vector<128x32xbf16>
    %c0_2 = arith.constant 0 : index
    %c0_3 = arith.constant 0 : index
    %2 = vector.load %arg2[%c0_2, %c0_3] : memref<32x96xbf16, #tpu.memory_space<vmem>>, vector<32x96xbf16>
    %cst = arith.constant dense<0.000000e+00> : vector<128x96xf32>
    %3 = tpu.matmul %1, %2, %cst {dimension_numbers = #tpu.dot_dimension_numbers<[1], [0], [0], [1], [0, 0, 1, 1], [], []>} : vector<128x32xbf16>, vector<32x96xbf16>, vector<128x96xf32> -> vector<128x96xf32>
    %4 = vector.shape_cast %3 : vector<128x96xf32> to vector<16x8x96xf32>
    %5 = vector.extract_strided_slice %4 {offsets = [0, 0, 0], sizes = [16, 8, 32], strides = [1, 1, 1]} : vector<16x8x96xf32> to vector<16x8x32xf32>
    %cst_4 = arith.constant 0.353553385 : f32
    %6 = vector.broadcast %cst_4 : f32 to vector<16x8x32xf32>
    %7 = arith.mulf %5, %6 : vector<16x8x32xf32>
    %8 = vector.extract_strided_slice %4 {offsets = [0, 0, 32], sizes = [16, 8, 32], strides = [1, 1, 1]} : vector<16x8x96xf32> to vector<16x8x32xf32>
    %9 = vector.extract_strided_slice %4 {offsets = [0, 0, 64], sizes = [16, 8, 32], strides = [1, 1, 1]} : vector<16x8x96xf32> to vector<16x8x32xf32>
    %10 = vector.extract_strided_slice %7 {offsets = [0, 0, 0], sizes = [16, 8, 8], strides = [1, 1, 1]} : vector<16x8x32xf32> to vector<16x8x8xf32>
    %11 = vector.extract_strided_slice %8 {offsets = [0, 0, 0], sizes = [16, 8, 8], strides = [1, 1, 1]} : vector<16x8x32xf32> to vector<16x8x8xf32>
    %12 = vector.extract_strided_slice %9 {offsets = [0, 0, 0], sizes = [16, 8, 8], strides = [1, 1, 1]} : vector<16x8x32xf32> to vector<16x8x8xf32>
    "tpu.trace_start"() <{level = 10 : i32, message = "bqd,bkd->bqk"}> : () -> ()
    %cst_5 = arith.constant dense<0.000000e+00> : vector<16x8x8xf32>
    %13 = tpu.matmul %10, %11, %cst_5 {dimension_numbers = #tpu.dot_dimension_numbers<[2], [2], [1], [1], [0, 0, 0, 1, 1, 1], [0], [0]>} : vector<16x8x8xf32>, vector<16x8x8xf32>, vector<16x8x8xf32> -> vector<16x8x8xf32>
    "tpu.trace_stop"() : () -> ()
    %cst_6 = arith.constant dense<0xFF800000> : vector<16x8xf32>
    %14 = vector.multi_reduction <maximumf>, %13, %cst_6 [2] : vector<16x8x8xf32> to vector<16x8xf32>
    %15 = vector.shape_cast %14 : vector<16x8xf32> to vector<16x8x1xf32>
    %16 = vector.broadcast %15 : vector<16x8x1xf32> to vector<16x8x8xf32>
    %17 = arith.subf %13, %16 : vector<16x8x8xf32>
    %18 = math.exp %17 : vector<16x8x8xf32>
    %cst_7 = arith.constant dense<0.000000e+00> : vector<16x8xf32>
    %19 = vector.multi_reduction <add>, %18, %cst_7 [2] : vector<16x8x8xf32> to vector<16x8xf32>
    %20 = vector.shape_cast %19 : vector<16x8xf32> to vector<16x8x1xf32>
    %21 = tpu.reciprocal %20 {approx = true} : vector<16x8x1xf32> -> vector<16x8x1xf32>
    %22 = vector.broadcast %21 : vector<16x8x1xf32> to vector<16x8x8xf32>
    %23 = arith.mulf %18, %22 : vector<16x8x8xf32>
    "tpu.trace_start"() <{level = 10 : i32, message = "bqk,bkd->bqd"}> : () -> ()
    %cst_8 = arith.constant dense<0.000000e+00> : vector<16x8x8xf32>
    %24 = tpu.matmul %23, %12, %cst_8 {dimension_numbers = #tpu.dot_dimension_numbers<[2], [1], [1], [2], [0, 0, 0, 1, 1, 2], [0], [0]>} : vector<16x8x8xf32>, vector<16x8x8xf32>, vector<16x8x8xf32> -> vector<16x8x8xf32>
    "tpu.trace_stop"() : () -> ()
    %25 = vector.extract_strided_slice %7 {offsets = [0, 0, 8], sizes = [16, 8, 8], strides = [1, 1, 1]} : vector<16x8x32xf32> to vector<16x8x8xf32>
    %26 = vector.extract_strided_slice %8 {offsets = [0, 0, 8], sizes = [16, 8, 8], strides = [1, 1, 1]} : vector<16x8x32xf32> to vector<16x8x8xf32>
    %27 = vector.extract_strided_slice %9 {offsets = [0, 0, 8], sizes = [16, 8, 8], strides = [1, 1, 1]} : vector<16x8x32xf32> to vector<16x8x8xf32>
    "tpu.trace_start"() <{level = 10 : i32, message = "bqd,bkd->bqk"}> : () -> ()
    %cst_9 = arith.constant dense<0.000000e+00> : vector<16x8x8xf32>
    %28 = tpu.matmul %25, %26, %cst_9 {dimension_numbers = #tpu.dot_dimension_numbers<[2], [2], [1], [1], [0, 0, 0, 1, 1, 1], [0], [0]>} : vector<16x8x8xf32>, vector<16x8x8xf32>, vector<16x8x8xf32> -> vector<16x8x8xf32>
    "tpu.trace_stop"() : () -> ()
    %cst_10 = arith.constant dense<0xFF800000> : vector<16x8xf32>
    %29 = vector.multi_reduction <maximumf>, %28, %cst_10 [2] : vector<16x8x8xf32> to vector<16x8xf32>
    %30 = vector.shape_cast %29 : vector<16x8xf32> to vector<16x8x1xf32>
    %31 = vector.broadcast %30 : vector<16x8x1xf32> to vector<16x8x8xf32>
    %32 = arith.subf %28, %31 : vector<16x8x8xf32>
    %33 = math.exp %32 : vector<16x8x8xf32>
    %cst_11 = arith.constant dense<0.000000e+00> : vector<16x8xf32>
    %34 = vector.multi_reduction <add>, %33, %cst_11 [2] : vector<16x8x8xf32> to vector<16x8xf32>
    %35 = vector.shape_cast %34 : vector<16x8xf32> to vector<16x8x1xf32>
    %36 = tpu.reciprocal %35 {approx = true} : vector<16x8x1xf32> -> vector<16x8x1xf32>
    %37 = vector.broadcast %36 : vector<16x8x1xf32> to vector<16x8x8xf32>
    %38 = arith.mulf %33, %37 : vector<16x8x8xf32>
    "tpu.trace_start"() <{level = 10 : i32, message = "bqk,bkd->bqd"}> : () -> ()
    %cst_12 = arith.constant dense<0.000000e+00> : vector<16x8x8xf32>
    %39 = tpu.matmul %38, %27, %cst_12 {dimension_numbers = #tpu.dot_dimension_numbers<[2], [1], [1], [2], [0, 0, 0, 1, 1, 2], [0], [0]>} : vector<16x8x8xf32>, vector<16x8x8xf32>, vector<16x8x8xf32> -> vector<16x8x8xf32>
    "tpu.trace_stop"() : () -> ()
    %40 = vector.extract_strided_slice %7 {offsets = [0, 0, 16], sizes = [16, 8, 8], strides = [1, 1, 1]} : vector<16x8x32xf32> to vector<16x8x8xf32>
    %41 = vector.extract_strided_slice %8 {offsets = [0, 0, 16], sizes = [16, 8, 8], strides = [1, 1, 1]} : vector<16x8x32xf32> to vector<16x8x8xf32>
    %42 = vector.extract_strided_slice %9 {offsets = [0, 0, 16], sizes = [16, 8, 8], strides = [1, 1, 1]} : vector<16x8x32xf32> to vector<16x8x8xf32>
    "tpu.trace_start"() <{level = 10 : i32, message = "bqd,bkd->bqk"}> : () -> ()
    %cst_13 = arith.constant dense<0.000000e+00> : vector<16x8x8xf32>
    %43 = tpu.matmul %40, %41, %cst_13 {dimension_numbers = #tpu.dot_dimension_numbers<[2], [2], [1], [1], [0, 0, 0, 1, 1, 1], [0], [0]>} : vector<16x8x8xf32>, vector<16x8x8xf32>, vector<16x8x8xf32> -> vector<16x8x8xf32>
    "tpu.trace_stop"() : () -> ()
    %cst_14 = arith.constant dense<0xFF800000> : vector<16x8xf32>
    %44 = vector.multi_reduction <maximumf>, %43, %cst_14 [2] : vector<16x8x8xf32> to vector<16x8xf32>
    %45 = vector.shape_cast %44 : vector<16x8xf32> to vector<16x8x1xf32>
    %46 = vector.broadcast %45 : vector<16x8x1xf32> to vector<16x8x8xf32>
    %47 = arith.subf %43, %46 : vector<16x8x8xf32>
    %48 = math.exp %47 : vector<16x8x8xf32>
    %cst_15 = arith.constant dense<0.000000e+00> : vector<16x8xf32>
    %49 = vector.multi_reduction <add>, %48, %cst_15 [2] : vector<16x8x8xf32> to vector<16x8xf32>
    %50 = vector.shape_cast %49 : vector<16x8xf32> to vector<16x8x1xf32>
    %51 = tpu.reciprocal %50 {approx = true} : vector<16x8x1xf32> -> vector<16x8x1xf32>
    %52 = vector.broadcast %51 : vector<16x8x1xf32> to vector<16x8x8xf32>
    %53 = arith.mulf %48, %52 : vector<16x8x8xf32>
    "tpu.trace_start"() <{level = 10 : i32, message = "bqk,bkd->bqd"}> : () -> ()
    %cst_16 = arith.constant dense<0.000000e+00> : vector<16x8x8xf32>
    %54 = tpu.matmul %53, %42, %cst_16 {dimension_numbers = #tpu.dot_dimension_numbers<[2], [1], [1], [2], [0, 0, 0, 1, 1, 2], [0], [0]>} : vector<16x8x8xf32>, vector<16x8x8xf32>, vector<16x8x8xf32> -> vector<16x8x8xf32>
    "tpu.trace_stop"() : () -> ()
    %55 = vector.extract_strided_slice %7 {offsets = [0, 0, 24], sizes = [16, 8, 8], strides = [1, 1, 1]} : vector<16x8x32xf32> to vector<16x8x8xf32>
    %56 = vector.extract_strided_slice %8 {offsets = [0, 0, 24], sizes = [16, 8, 8], strides = [1, 1, 1]} : vector<16x8x32xf32> to vector<16x8x8xf32>
    %57 = vector.extract_strided_slice %9 {offsets = [0, 0, 24], sizes = [16, 8, 8], strides = [1, 1, 1]} : vector<16x8x32xf32> to vector<16x8x8xf32>
    "tpu.trace_start"() <{level = 10 : i32, message = "bqd,bkd->bqk"}> : () -> ()
    %cst_17 = arith.constant dense<0.000000e+00> : vector<16x8x8xf32>
    %58 = tpu.matmul %55, %56, %cst_17 {dimension_numbers = #tpu.dot_dimension_numbers<[2], [2], [1], [1], [0, 0, 0, 1, 1, 1], [0], [0]>} : vector<16x8x8xf32>, vector<16x8x8xf32>, vector<16x8x8xf32> -> vector<16x8x8xf32>
    "tpu.trace_stop"() : () -> ()
    %cst_18 = arith.constant dense<0xFF800000> : vector<16x8xf32>
    %59 = vector.multi_reduction <maximumf>, %58, %cst_18 [2] : vector<16x8x8xf32> to vector<16x8xf32>
    %60 = vector.shape_cast %59 : vector<16x8xf32> to vector<16x8x1xf32>
    %61 = vector.broadcast %60 : vector<16x8x1xf32> to vector<16x8x8xf32>
    %62 = arith.subf %58, %61 : vector<16x8x8xf32>
    %63 = math.exp %62 : vector<16x8x8xf32>
    %cst_19 = arith.constant dense<0.000000e+00> : vector<16x8xf32>
    %64 = vector.multi_reduction <add>, %63, %cst_19 [2] : vector<16x8x8xf32> to vector<16x8xf32>
    %65 = vector.shape_cast %64 : vector<16x8xf32> to vector<16x8x1xf32>
    %66 = tpu.reciprocal %65 {approx = true} : vector<16x8x1xf32> -> vector<16x8x1xf32>
    %67 = vector.broadcast %66 : vector<16x8x1xf32> to vector<16x8x8xf32>
    %68 = arith.mulf %63, %67 : vector<16x8x8xf32>
    "tpu.trace_start"() <{level = 10 : i32, message = "bqk,bkd->bqd"}> : () -> ()
    %cst_20 = arith.constant dense<0.000000e+00> : vector<16x8x8xf32>
    %69 = tpu.matmul %68, %57, %cst_20 {dimension_numbers = #tpu.dot_dimension_numbers<[2], [1], [1], [2], [0, 0, 0, 1, 1, 2], [0], [0]>} : vector<16x8x8xf32>, vector<16x8x8xf32>, vector<16x8x8xf32> -> vector<16x8x8xf32>
    "tpu.trace_stop"() : () -> ()
    %70 = tpu.concatenate %24, %39, %54, %69 in 2 : vector<16x8x8xf32>, vector<16x8x8xf32>, vector<16x8x8xf32>, vector<16x8x8xf32> -> vector<16x8x32xf32>
    %71 = vector.shape_cast %70 : vector<16x8x32xf32> to vector<128x32xf32>
    %72 = arith.truncf %71 : vector<128x32xf32> to vector<128x32xbf16>
    %c0_21 = arith.constant 0 : index
    %c0_22 = arith.constant 0 : index
    %73 = vector.load %arg3[%c0_21, %c0_22] : memref<32x32xbf16, #tpu.memory_space<vmem>>, vector<32x32xbf16>
    %cst_23 = arith.constant dense<0.000000e+00> : vector<128x32xf32>
    %74 = tpu.matmul %72, %73, %cst_23 {dimension_numbers = #tpu.dot_dimension_numbers<[1], [0], [0], [1], [0, 0, 1, 1], [], []>} : vector<128x32xbf16>, vector<32x32xbf16>, vector<128x32xf32> -> vector<128x32xf32>
    %75 = vector.shape_cast %74 : vector<128x32xf32> to vector<16x8x32xf32>
    %76 = vector.extract_strided_slice %75 {offsets = [0, 0, 0], sizes = [16, 1, 32], strides = [1, 1, 1]} : vector<16x8x32xf32> to vector<16x1x32xf32>
    %77 = vector.shape_cast %76 : vector<16x1x32xf32> to vector<16x32xf32>
    %78 = vector.extract_strided_slice %75 {offsets = [0, 1, 0], sizes = [16, 1, 32], strides = [1, 1, 1]} : vector<16x8x32xf32> to vector<16x1x32xf32>
    %79 = vector.shape_cast %78 : vector<16x1x32xf32> to vector<16x32xf32>
    %80 = vector.extract_strided_slice %75 {offsets = [0, 2, 0], sizes = [16, 1, 32], strides = [1, 1, 1]} : vector<16x8x32xf32> to vector<16x1x32xf32>
    %81 = vector.shape_cast %80 : vector<16x1x32xf32> to vector<16x32xf32>
    %82 = vector.extract_strided_slice %75 {offsets = [0, 3, 0], sizes = [16, 1, 32], strides = [1, 1, 1]} : vector<16x8x32xf32> to vector<16x1x32xf32>
    %83 = vector.shape_cast %82 : vector<16x1x32xf32> to vector<16x32xf32>
    %84 = vector.extract_strided_slice %75 {offsets = [0, 4, 0], sizes = [16, 1, 32], strides = [1, 1, 1]} : vector<16x8x32xf32> to vector<16x1x32xf32>
    %85 = vector.shape_cast %84 : vector<16x1x32xf32> to vector<16x32xf32>
    %86 = vector.extract_strided_slice %75 {offsets = [0, 5, 0], sizes = [16, 1, 32], strides = [1, 1, 1]} : vector<16x8x32xf32> to vector<16x1x32xf32>
    %87 = vector.shape_cast %86 : vector<16x1x32xf32> to vector<16x32xf32>
    %88 = vector.extract_strided_slice %75 {offsets = [0, 6, 0], sizes = [16, 1, 32], strides = [1, 1, 1]} : vector<16x8x32xf32> to vector<16x1x32xf32>
    %89 = vector.shape_cast %88 : vector<16x1x32xf32> to vector<16x32xf32>
    %90 = vector.extract_strided_slice %75 {offsets = [0, 7, 0], sizes = [16, 1, 32], strides = [1, 1, 1]} : vector<16x8x32xf32> to vector<16x1x32xf32>
    %91 = vector.shape_cast %90 : vector<16x1x32xf32> to vector<16x32xf32>
    %92 = tpu.concatenate %77, %79, %81, %83, %85, %87, %89, %91 in 1 : vector<16x32xf32>, vector<16x32xf32>, vector<16x32xf32>, vector<16x32xf32>, vector<16x32xf32>, vector<16x32xf32>, vector<16x32xf32>, vector<16x32xf32> -> vector<16x256xf32>
    %c0_24 = arith.constant 0 : index
    %c0_25 = arith.constant 0 : index
    %93 = vector.load %arg4[%c0_24, %c0_25] : memref<16x256xf32, #tpu.memory_space<vmem>>, vector<16x256xf32>
    tpu.vector_store %arg4[%c0_24, %c0_25], %92 {strides = array<i32>} : memref<16x256xf32, #tpu.memory_space<vmem>>, vector<16x256xf32>,
    return
  }
  func.func @transform_0(%arg0: i32) -> (i32, i32, i32) {
    %c0_i32 = arith.constant 0 : i32
    %c0_i32_0 = arith.constant 0 : i32
    %c0_i32_1 = arith.constant 0 : i32
    return %arg0, %c0_i32, %c0_i32_0 : i32, i32, i32
  }
  func.func @transform_1(%arg0: i32) -> (i32, i32) {
    %c0_i32 = arith.constant 0 : i32
    %c0_i32_0 = arith.constant 0 : i32
    %c0_i32_1 = arith.constant 0 : i32
    return %c0_i32, %c0_i32_0 : i32, i32
  }
  func.func @transform_2(%arg0: i32) -> (i32, i32) {
    %c0_i32 = arith.constant 0 : i32
    %c0_i32_0 = arith.constant 0 : i32
    %c0_i32_1 = arith.constant 0 : i32
    return %c0_i32, %c0_i32_0 : i32, i32
  }
  func.func @transform_3(%arg0: i32) -> (i32, i32) {
    %c0_i32 = arith.constant 0 : i32
    %c0_i32_0 = arith.constant 0 : i32
    return %arg0, %c0_i32 : i32, i32
  }
}

</mosaic_0001>

<bundles_post_ra>
// kernel: tpu_custom_call.1
= control target key start
LH: loop header
LB: loop body
LE: loop exit
PB: predicated region body
PF: predicated region fallthrough
CT: control target
= control target key end

     0   :  { %8 = vsyncpa [#allocation3], 0  ;;  %s8747_s0 = inlined_call_operand.hbm [shape: bf16[32,8,32], index: 0, kind: input, shape index: {}]   ;;  %s8748_s1 = inlined_call_operand.hbm [shape: bf16[32,96], index: 1, kind: input, shape index: {}]   ;;  %s8749_s2 = inlined_call_operand.hbm [shape: bf16[32,32], index: 2, kind: input, shape index: {}]   ;;  %s8750_s3 = inlined_call_operand.hbm [shape: f32[32,256], index: 3, kind: output, shape index: {}]  }
   0x1   :  { %10 = vsyncpa [#allocation3 + $0x1], 0 }
   0x2   :  { %11 = vsyncpa [#allocation6], 0 }
   0x3   :  { %12 = vsyncpa [#allocation4], 0 }
   0x4   :  { %14 = vsyncpa [#allocation4 + $0x1], 0  ;;  %s6417_s12 = smov 0   ;;  %s6419_s13 = smov 0  }
   0x5   :  { %s6421_s14 = smov 0   ;;  %s6423_s15 = smov 0  }
   0x6 LB: > { %s6438_s16 = sadd.s32 4294967295, %s6375_s15   ;;  %s5303_s17 = sadd.s32 4294967294, %s6375_s15   ;;  %s6375_s15 = sphi %s6423_s15, %s8976_s15   ;;  %s6371_s14 = sphi %s6421_s14, %s8975_s14   ;;  %s6367_s13 = sphi %s6419_s13, %s8974_s13   ;;  %s6363_s12 = sphi %s6417_s12, %s8973_s12  }
   0x7   : > { %p40_p0 = scmp.ne.s32.totalorder %s6367_s13, %s6363_s12  ;;  %p41_p1 = scmp.eq.s32.totalorder %s6438_s16, 0 }
   0x8   : > { %p106_p2 = scmp.eq.s32.totalorder %s6438_s16, 1  ;;  %p112_p3 = scmp.eq.s32.totalorder %s5303_s17, 1 }
   0x9   : > { %p6447_p4 = por %p41_p1, %p40_p0  ;;  %p5304_p5 = scmp.ge.s32.totalorder %s6375_s15, 1 }
   0xa   : > { %p6452_p6 = por %p112_p3, %p40_p0  ;;  %p119_p7 = scmp.lt.s32.totalorder %s6375_s15, 3 }
   0xb   : > { %s130_s22 = sshll.u32 %s8748_s1, 4  ;;  %s6377_s24 = smov [#allocation5]   ;;  %s131_s22 = int_to_ptr.hbm [resolvable:$true] %s130_s22 }
   0xc   : > { %p6460_p8 = pnand %p5304_p5, %p119_p7  ;;  %s132_s25 = sshll.u32 %s6377_s24, 4  ;;  %s133_s25 = int_to_ptr.vmem [resolvable:$true] %s132_s25 }
   0xd   : > { %s144_s28 = sshll.u32 %s8749_s2, 4  ;;  %s6378_s29 = smov 64   ;;  %s145_s28 = int_to_ptr.hbm [resolvable:$true] %s144_s28 }
   0xe   : > { %p5611_p9 = pneg %p6460_p8  ;;  %s6379_s30 = smov 4  }
   0xf   : > { %s6380_s4 = smov [#allocation7]   ;;  %s6479_s6 = sadd.s32 1, %s6375_s15  }
  0x10   : > { %p5612_p10 = pnand %p5611_p9, %p41_p1  ;;  %s146_s5 = sshll.u32 %s6380_s4, 4  ;;  %s147_s5 = int_to_ptr.vmem [resolvable:$true] %s146_s5 }
  0x11   : > { %s27_s7 = sadd.s32 1, %s6371_s14  ;;  %s24_s8 = ssub.s32 %s6375_s15, %s6479_s6 }
  0x12   : > { %5614 = dma.hbm_to_vmem [thread:$0]  (!%p5612_p10), %s131_s22, 256, %s133_s25, [#allocation6], %s6378_s29, %s6378_s29, %s6379_s30  }
  0x13   : > { %5617 = dma.hbm_to_vmem [thread:$0]  (!%p5612_p10), %s145_s28, 256, %s147_s5, [#allocation6], %s6378_s29, %s6378_s29, %s6379_s30  }
  0x14   : > { %p34_p12 = scmp.ne.s32.totalorder %s6371_s14, %s6367_s13  ;;  %p25_p13 = scmp.eq.s32.totalorder %s24_s8, 0 }
  0x15   : > { %p35_p0 = scmp.eq.s32.totalorder %s6375_s15, 0  ;;  %p5628_p5 = scmp.lt.s32.totalorder %s6375_s15, 2 }
  0x16   : > { %p6489_p3 = por %p106_p2, %p34_p12  ;;  %s160_s11 = sand.u32 1, %s6371_s14  }
  0x17   : > { %s6495_s10 = scalar_select %p25_p13, %s6371_s14, %s27_s7  }
  0x18   : > { %p36_p7 = por %p35_p0, %p34_p12  ;;  %s5308_s17 = sshll.u32 %s160_s11, 6 }
  0x19   : > { %s5578_s20 = sshll.u32 %s6375_s15, 6  ;;  %s164_s25 = scalar_lea.vmem [#allocation2], %s5308_s17 }
  0x1a   : > { %s169_s24 = scalar_lea.hbm %s8747_s0, %s5578_s20  ;;  %s172_s26 = sshll.u32 %s164_s25, 4  ;;  %s173_s26 = int_to_ptr.vmem [resolvable:$true] %s172_s26 }
  0x1b   : > { %s170_s27 = sshll.u32 %s169_s24, 4  ;;  %p6502_p2 = pnand %p5628_p5, %p36_p7  ;;  %s171_s27 = int_to_ptr.hbm [resolvable:$true] %s170_s27 }
  0x1c   : > { %s161_s4 = scalar_lea.sflag [#allocation3], %s160_s11  ;;  %s6275_s5 = sshra.s32 %s171_s27, 4  ;;  %s6276_s5 = int_to_ptr.hbm [resolvable:$true] %s6275_s5 }
  0x1d   : > { %s6277_s7 = scalar_lea.hbm %s6276_s5, 64  ;;  %p6279_p10 = pneg %p6502_p2 }
  0x1e   : > { %p6278_p9 = scmp.ne.s32.totalorder %s6276_s5, %s6277_s7  ;;  %s6282_s20 = scalar_lea.hbm %s8747_s0, 128 }
  0x1f   : > { %p6283_p0 = scmp.lt.s32.totalorder %s6276_s5, %s8747_s0  ;;  %p6284_p5 = scmp.lt.s32.totalorder %s6282_s20, %s6277_s7 }
  0x20   : > { %p6280_p12 = pnand %p6279_p10, %p6278_p9 }
  0x21   : > { %p6285_p7 = por %p6284_p5, %p6283_p0 }
  0x22   : > { %p6281_p13 = pneg %p6280_p12 }
  0x24   : > { %p6286_p11 = pnand %p6285_p7, %p6281_p13 }
  0x26   : > { %6289 = shalt.err (!%p6286_p11)
}
  0x27   : > { %5621 = dma.hbm_to_vmem [thread:$0]  (!%p6502_p2), %s171_s27, 1024, %s173_s26, %s161_s4, %s6378_s29, %s6378_s29, %s6379_s30  }
  0x28   : > { %184 = sbr.rel (%p6460_p8) target bundleno = 2988 (0xbac), region = 32 }
  0x2d   : > { %s6522_s11 = sand.u32 1, %s6367_s13  }
  0x2e   : > { %s5312_s24 = sshll.u32 %s6522_s11, 6  ;;  %s187_s25 = scalar_lea.sflag [#allocation3], %s6522_s11 }
  0x2f   : > { %s190_s5 = scalar_lea.vmem [#allocation2], %s5312_s24 }
  0x30   : > { %6350 = dma.done.wait (%p6447_p4), %s187_s25, 1024  }
  0x31   : > { %6352 = vsyncadd (%p6447_p4), %s187_s25, 4294966272 }
  0x32   : > { %6354 = dma.done.wait (%p41_p1), [#allocation6], 512  }
  0x33   : > { %6356 = vsyncadd (%p41_p1), [#allocation6], 4294966784  ;;  %v5588_v0 = vld [vmem:[#allocation5 + $0x8] sm:$0xff]  ;;  %v5587_v1 = vld [vmem:[#allocation5] sm:$0xff]  ;;  %vm299_vm0 = vcmask 261120   ;;  %s6381_s18 = smov 96  }
  0x34   : > { %330 = vmatpush.bf16.msra.mxu0 %v5588_v0  ;;  %v5579_v2 = vld [vmem:[%s190_s5] sm:$0xff]  ;;  %v5580_v3 = vld [vmem:[%s190_s5 + $0x8] sm:$0xff]  ;;  %v5581_v4 = vld [vmem:[%s190_s5 + $0x10] sm:$0xff]  ;;  %s6382_s23 = smov 64   ;;  %vm392_vm1 = vcmask 64512   ;;  %s6383_s29 = smov 88  }
  0x35   : > { %v5582_v5 = vld [vmem:[%s190_s5 + $0x18] sm:$0xff]  ;;  %v5583_v6 = vld [vmem:[%s190_s5 + $0x20] sm:$0xff]  ;;  %v5584_v7 = vld [vmem:[%s190_s5 + $0x28] sm:$0xff]  ;;  %s6384_s30 = smov 120   ;;  %s6385_s26 = smov 56   ;;  %vm4775_vm2 = vcmask 195584  }
  0x36   : > { %v5585_v8 = vld [vmem:[%s190_s5 + $0x30] sm:$0xff]  ;;  %v5586_v9 = vld [vmem:[%s190_s5 + $0x38] sm:$0xff]  ;;  %s6386_s27 = smov 112   ;;  %s6387_s28 = smov 80   ;;  %vm4758_vm3 = vcmask 130048   ;;  %vm4906_vm4 = vcmask 1041409  }
  0x37   : > { %s6388_s4 = smov 48   ;;  %s6389_s7 = smov 72   ;;  %vm4909_vm5 = vcmask 1042434   ;;  %vm4912_vm6 = vcmask 1043459   ;;  %vm4915_vm7 = vcmask 1044484   ;;  %vm4918_vm8 = vcmask 1045509  }
  0x38   : > { %331 = vmatpush.bf16.msra.mxu0 %v5587_v1  ;;  %s6390_s8 = smov 104   ;;  %s6391_s17 = smov 40   ;;  %vm4921_vm9 = vcmask 1046534   ;;  %vm4924_vm10 = vcmask 1047559   ;;  %vm5178_vm11 = vcmask 523264   ;;  %vm5181_vm12 = vcmask 785408  }
  0x39   : > { %s6392_s20 = smov 16   ;;  %s6393_s21 = smov 8  }
  0x3a   : > { %s6394_s22 = smov 24   ;;  %s6395_s24 = smov 32  }
  0x3b   : > { %5356 = vmatmul.msk.bf16.vlgmr.msra.gmra.mxu0 %vm299_vm0, %v5579_v2  ;;  %s5315_s25 = sshll.u32 %s6522_s11, 5 }
  0x3c   : > { %s223_s5 = scalar_lea.vmem [#allocation8], %s5315_s25 }
  0x4b   : > { %5357 = vmatmul.msk.bf16.gmra.mxu0 %vm299_vm0, %v5580_v3 }
  0x5b   : > { %5358 = vmatmul.msk.bf16.gmra.mxu0 %vm299_vm0, %v5581_v4 }
  0x6b   : > { %5359 = vmatmul.msk.bf16.gmra.mxu0 %vm299_vm0, %v5582_v5 }
  0x7b   : > { %5360 = vmatmul.msk.bf16.gmra.mxu0 %vm299_vm0, %v5583_v6 }
  0x8b   : > { %5361 = vmatmul.msk.bf16.gmra.mxu0 %vm299_vm0, %v5584_v7 }
  0x9b   : > { %5362 = vmatmul.msk.bf16.gmra.mxu0 %vm299_vm0, %v5585_v8 }
  0xab   : > { %5363 = vmatmul.msk.bf16.gmra.mxu0 %vm299_vm0, %v5586_v9 }
  0xb8   : > { %v6542_v10 = vpop.f32.mrf.mxu0 }
  0xb9   : > { %390 = vrot.lane.b32.xlu0 %v6542_v10, %s6381_s18  ;;  %v6607_v27 = vmul.f32 0.35355338, %v6542_v10 }
  0xc0   : > { %v6546_v11 = vpop.f32.mrf.mxu0 }
  0xc1   : > { %419 = vrot.lane.b32.xlu0 %v6546_v11, %s6381_s18  ;;  %v5684_v24 = vpack.i.bf16 %v6546_v11, %v6542_v10  ;;  %v6626_v33 = vmul.f32 0.35355338, %v6546_v11 }
  0xc8   : > { %v6550_v12 = vpop.f32.mrf.mxu0 }
  0xc9   : > { %447 = vrot.lane.b32.xlu1 %v6550_v12, %s6381_s18  ;;  %v6640_v37 = vmul.f32 0.35355338, %v6550_v12 }
  0xd0   : > { %v6554_v13 = vpop.f32.mrf.mxu0 }
  0xd1   : > { %8788 = vst [vmem:[#allocation12_spill] sm:$0xff] %v6554_v13  ;;  %475 = vrot.lane.b32.xlu1 %v6554_v13, %s6381_s18  ;;  %v5689_v34 = vpack.i.bf16 %v6550_v12, %v6554_v13  ;;  %v6645_v38 = vmul.f32 0.35355338, %v6554_v13 }
  0xd3   : > { %8794 = vst [vmem:[#allocation18_spill] sm:$0xff] %v6645_v38 }
  0xd8   : > { %v6558_v14 = vpop.f32.mrf.mxu0 }
  0xd9   : > { %8789 = vst [vmem:[#allocation13_spill] sm:$0xff] %v6558_v14  ;;  %503 = vrot.lane.b32.xlu2 %v6558_v14, %s6381_s18  ;;  %v6671_v43 = vmul.f32 0.35355338, %v6558_v14 }
  0xdb   : > { %8796 = vst [vmem:[#allocation20_spill] sm:$0xff] %v6671_v43 }
  0xe0   : > { %v6562_v15 = vpop.f32.mrf.mxu0 }
  0xe1   : > { %8790 = vst [vmem:[#allocation14_spill] sm:$0xff] %v6562_v15  ;;  %531 = vrot.lane.b32.xlu2 %v6562_v15, %s6381_s18  ;;  %v6657_v41 = vmul.f32 0.35355338, %v6562_v15 }
  0xe3   : > { %8795 = vst [vmem:[#allocation19_spill] sm:$0xff] %v6657_v41 }
  0xe8   : > { %v6566_v16 = vpop.f32.mrf.mxu0 }
  0xe9   : > { %8791 = vst [vmem:[#allocation15_spill] sm:$0xff] %v6566_v16  ;;  %559 = vrot.lane.b32.xlu0 %v6566_v16, %s6381_s18  ;;  %v5694_v39 = vpack.i.bf16 %v6566_v16, %v6558_v14  ;;  %v6676_v44 = vmul.f32 0.35355338, %v6566_v16 }
  0xf0   : > { %v6570_v17 = vpop.f32.mrf.mxu0 }
  0xf1   : > { %8792 = vst [vmem:[#allocation16_spill] sm:$0xff] %v6570_v17  ;;  %587 = vrot.lane.b32.xlu1 %v6570_v17, %s6381_s18  ;;  %v5699_v42 = vpack.i.bf16 %v6570_v17, %v6562_v15  ;;  %v6708_v50 = vmul.f32 0.35355338, %v6570_v17 }
  0xf3   : > { %8798 = vst [vmem:[#allocation22_spill] sm:$0xff] %v6708_v50 }
  0xf8   : > { %v6574_v18 = vpop.f32.mrf.mxu0 }
  0xf9   : > { %615 = vrot.lane.b32.xlu2 %v6574_v18, %s6381_s18  ;;  %v6687_v47 = vmul.f32 0.35355338, %v6574_v18 }
  0xfb   : > { %8797 = vst [vmem:[#allocation21_spill] sm:$0xff] %v6687_v47 }
 0x100   : > { %v6578_v19 = vpop.f32.mrf.mxu0 }
 0x101   : > { %643 = vrot.lane.b32.xlu0 %v6578_v19, %s6381_s18  ;;  %v6615_v29 = vpack.i.bf16 %v6574_v18, %v6578_v19  ;;  %v6728_v54 = vmul.f32 0.35355338, %v6578_v19 }
 0x103   : > { %8793 = vst [vmem:[#allocation17_spill] sm:$0xff] %v6615_v29 }
 0x104   : > { %8800 = vst [vmem:[#allocation24_spill] sm:$0xff] %v6728_v54 }
 0x108   : > { %v6582_v20 = vpop.f32.mrf.mxu0 }
 0x109   : > { %671 = vrot.lane.b32.xlu1 %v6582_v20, %s6381_s18  ;;  %v6739_v57 = vmul.f32 0.35355338, %v6582_v20 }
 0x10b   : > { %8801 = vst [vmem:[#allocation25_spill] sm:$0xff] %v6739_v57 }
 0x110   : > { %v6586_v21 = vpop.f32.mrf.mxu0 }
 0x111   : > { %699 = vrot.lane.b32.xlu2 %v6586_v21, %s6381_s18  ;;  %v6718_v52 = vmul.f32 0.35355338, %v6586_v21 }
 0x113   : > { %8799 = vst [vmem:[#allocation23_spill] sm:$0xff] %v6718_v52 }
 0x118   : > { %v6590_v22 = vpop.f32.mrf.mxu0 }
 0x119   : > { %727 = vrot.lane.b32.xlu0 %v6590_v22, %s6381_s18  ;;  %v5709_v28 = vpack.i.bf16 %v6590_v22, %v6582_v20  ;;  %v6755_v61 = vmul.f32 0.35355338, %v6590_v22 }
 0x120   : > { %v6594_v23 = vpop.f32.mrf.mxu0 }
 0x121   : > { %755 = vrot.lane.b32.xlu1 %v6594_v23, %s6381_s18  ;;  %v5714_v45 = vpack.i.bf16 %v6594_v23, %v6586_v21  ;;  %v6761_v63 = vmul.f32 0.35355338, %v6594_v23 }
 0x123   : > { %8803 = vst [vmem:[#allocation27_spill] sm:$0xff] %v6761_v63 }
 0x128   : > { %v6600_v25 = vpop.f32.mrf.mxu0 }
 0x129   : > { %5685 = vrot.lane.b32.xlu1 %v5684_v24, %s6382_s23  ;;  %783 = vrot.lane.b32.xlu2 %v6600_v25, %s6381_s18  ;;  %v6747_v59 = vmul.f32 0.35355338, %v6600_v25 }
 0x12b   : > { %v391_v26 = vpop.permute.xlu0 %390  ;;  %8802 = vst [vmem:[#allocation26_spill] sm:$0xff] %v6747_v59 }
 0x12c   : > { %5364 = vmatpush.xpose.msk.msra.mxu1 %vm392_vm1, %v391_v26 }
 0x12f   : > { %5365 = vmatmul.msk.f32.vlgmr.msra.gmra.mxu1 %vm392_vm1, %v6607_v27 }
 0x130   : > { %v6617_v30 = vpop.f32.mrf.mxu0 }
 0x131   : > { %5710 = vrot.lane.b32.xlu1 %v5709_v28, %s6382_s23  ;;  %5705 = vrot.lane.b32.xlu2 %v6615_v29, %s6382_s23  ;;  %v5719_v55 = vpack.i.bf16 %v6600_v25, %v6617_v30  ;;  %v6767_v4 = vmul.f32 0.35355338, %v6617_v30 }
 0x132   : > { %811 = vrot.lane.b32.xlu0 %v6617_v30, %s6381_s18 }
 0x133   : > { %v420_v31 = vpop.permute.xlu0 %419  ;;  %v504_v32 = vpop.permute.xlu2 %503 }
 0x134   : > { %5366 = vmatpush.xpose.msk.msrb.mxu1 %vm392_vm1, %v420_v31 }
 0x137   : > { %5367 = vmatmul.msk.f32.vlgmr.msrb.gmra.mxu1 %vm392_vm1, %v6626_v33 }
 0x139   : > { %1432 = vrot.lane.b32.xlu1 %v6542_v10, %s6383_s29  ;;  %1488 = vrot.lane.b32.xlu2 %v6550_v12, %s6383_s29 }
 0x13a   : > { %5690 = vrot.lane.b32.xlu0 %v5689_v34, %s6382_s23 }
 0x13b   : > { %v448_v35 = vpop.permute.xlu1 %447  ;;  %v532_v36 = vpop.permute.xlu2 %531 }
 0x13c   : > { %5368 = vmatpush.xpose.msk.msra.mxu3 %vm392_vm1, %v448_v35 }
 0x13f   : > { %5369 = vmatmul.msk.f32.vlgmr.msra.gmra.mxu3 %vm392_vm1, %v6640_v37 }
 0x140   : > { %5374 = vmatpush.xpose.msk.msrb.mxu3 %vm392_vm1, %v532_v36 }
 0x141   : > { %1486 = vrot.lane.b32.xlu1 %v6640_v37, %s6384_s30  ;;  %1514 = vrot.lane.b32.xlu2 %v6645_v38, %s6384_s30 }
 0x142   : > { %5695 = vrot.lane.b32.xlu0 %v5694_v39, %s6382_s23 }
 0x143   : > { %v476_v40 = vpop.permute.xlu1 %475 }
 0x144   : > { %5370 = vmatpush.xpose.msk.msra.mxu1 %vm392_vm1, %v476_v40 }
 0x147   : > { %5371 = vmatmul.msk.f32.vlgmr.msra.gmra.mxu1 %vm392_vm1, %v6645_v38  ;;  %5375 = vmatmul.msk.f32.vlgmr.msrb.gmra.mxu3 %vm392_vm1, %v6657_v41 }
 0x148   : > { %5372 = vmatpush.xpose.msk.msrb.mxu1 %vm392_vm1, %v504_v32 }
 0x149   : > { %1516 = vrot.lane.b32.xlu1 %v6554_v13, %s6383_s29  ;;  %1600 = vrot.lane.b32.xlu2 %v6566_v16, %s6383_s29 }
 0x14a   : > { %5700 = vrot.lane.b32.xlu0 %v5699_v42, %s6382_s23 }
 0x14f   : > { %5373 = vmatmul.msk.f32.vlgmr.msrb.gmra.mxu1 %vm392_vm1, %v6671_v43 }
 0x151   : > { %1458 = vrot.lane.b32.xlu1 %v6626_v33, %s6384_s30  ;;  %1598 = vrot.lane.b32.xlu2 %v6676_v44, %s6384_s30 }
 0x152   : > { %5715 = vrot.lane.b32.xlu0 %v5714_v45, %s6382_s23 }
 0x153   : > { %v616_v46 = vpop.permute.xlu2 %615 }
 0x154   : > { %5380 = vmatpush.xpose.msk.msra.mxu3 %vm392_vm1, %v616_v46 }
 0x157   : > { %5381 = vmatmul.msk.f32.vlgmr.msra.gmra.mxu3 %vm392_vm1, %v6687_v47 }
 0x159   : > { %1544 = vrot.lane.b32.xlu1 %v6558_v14, %s6383_s29  ;;  %1740 = vrot.lane.b32.xlu2 %v6586_v21, %s6383_s29 }
 0x15a   : > { %1430 = vrot.lane.b32.xlu0 %v6607_v27, %s6384_s30 }
 0x15b   : > { %v560_v48 = vpop.permute.xlu0 %559 }
 0x15c   : > { %5376 = vmatpush.xpose.msk.msra.mxu1 %vm392_vm1, %v560_v48 }
 0x15f   : > { %5377 = vmatmul.msk.f32.vlgmr.msra.gmra.mxu1 %vm392_vm1, %v6676_v44 }
 0x161   : > { %1542 = vrot.lane.b32.xlu1 %v6671_v43, %s6384_s30  ;;  %1684 = vrot.lane.b32.xlu2 %v6578_v19, %s6383_s29 }
 0x162   : > { %1460 = vrot.lane.b32.xlu0 %v6546_v11, %s6383_s29 }
 0x163   : > { %v588_v49 = vpop.permute.xlu1 %587 }
 0x164   : > { %5378 = vmatpush.xpose.msk.msra.mxu2 %vm392_vm1, %v588_v49 }
 0x167   : > { %5379 = vmatmul.msk.f32.vlgmr.msra.gmra.mxu2 %vm392_vm1, %v6708_v50 }
 0x169   : > { %1628 = vrot.lane.b32.xlu1 %v6570_v17, %s6383_s29 }
 0x16a   : > { %1572 = vrot.lane.b32.xlu0 %v6562_v15, %s6383_s29 }
 0x16b   : > { %v700_v51 = vpop.permute.xlu2 %699 }
 0x16c   : > { %5386 = vmatpush.xpose.msk.msrb.mxu3 %vm392_vm1, %v700_v51 }
 0x16f   : > { %5387 = vmatmul.msk.f32.vlgmr.msrb.gmra.mxu3 %vm392_vm1, %v6718_v52 }
 0x171   : > { %1738 = vrot.lane.b32.xlu1 %v6718_v52, %s6384_s30 }
 0x172   : > { %1570 = vrot.lane.b32.xlu0 %v6657_v41, %s6384_s30 }
 0x173   : > { %v644_v53 = vpop.permute.xlu0 %643 }
 0x174   : > { %5382 = vmatpush.xpose.msk.msrb.mxu1 %vm392_vm1, %v644_v53 }
 0x177   : > { %5383 = vmatmul.msk.f32.vlgmr.msrb.gmra.mxu1 %vm392_vm1, %v6728_v54 }
 0x179   : > { %5720 = vrot.lane.b32.xlu1 %v5719_v55, %s6382_s23 }
 0x17a   : > { %1656 = vrot.lane.b32.xlu0 %v6574_v18, %s6383_s29 }
 0x17b   : > { %v672_v56 = vpop.permute.xlu1 %671 }
 0x17c   : > { %5384 = vmatpush.xpose.msk.msrb.mxu2 %vm392_vm1, %v672_v56 }
 0x17f   : > { %5385 = vmatmul.msk.f32.vlgmr.msrb.gmra.mxu2 %vm392_vm1, %v6739_v57 }
 0x182   : > { %1654 = vrot.lane.b32.xlu0 %v6687_v47, %s6384_s30 }
 0x183   : > { %v784_v58 = vpop.permute.xlu2 %783 }
 0x184   : > { %5392 = vmatpush.xpose.msk.msra.mxu3 %vm392_vm1, %v784_v58 }
 0x187   : > { %5393 = vmatmul.msk.f32.vlgmr.msra.gmra.mxu3 %vm392_vm1, %v6747_v59 }
 0x18a   : > { %1626 = vrot.lane.b32.xlu0 %v6708_v50, %s6384_s30 }
 0x18b   : > { %v728_v60 = vpop.permute.xlu0 %727 }
 0x18c   : > { %5388 = vmatpush.xpose.msk.msra.mxu1 %vm392_vm1, %v728_v60 }
 0x18f   : > { %5389 = vmatmul.msk.f32.vlgmr.msra.gmra.mxu1 %vm392_vm1, %v6755_v61 }
 0x193   : > { %v756_v62 = vpop.permute.xlu1 %755 }
 0x194   : > { %5390 = vmatpush.xpose.msk.msra.mxu2 %vm392_vm1, %v756_v62 }
 0x197   : > { %5391 = vmatmul.msk.f32.vlgmr.msra.gmra.mxu2 %vm392_vm1, %v6761_v63 }
 0x19b   : > { %v5686_v0 = vpop.permute.xlu1 %5685 }
 0x19c   : > { %v5688_v1 = vunpack.i.h.bf16 %v5686_v0  ;;  %v5687_v2 = vunpack.i.l.bf16 %v5686_v0  ;;  %v6817_v0 = vpop.permute.xlu2 %5705 }
 0x19e   : > { %1035 = vmatpush.msrb.mxu2 %v5687_v2  ;;  %1061 = vmatpush.msrb.mxu3 %v5688_v1 }
 0x1a3   : > { %v6785_v35 = vpop.permute.xlu1 %5710 }
 0x1a4   : > { %v812_v3 = vpop.permute.xlu0 %811 }
 0x1a5   : > { %5394 = vmatpush.xpose.msk.msrb.mxu1 %vm392_vm1, %v812_v3 }
 0x1a8   : > { %5395 = vmatmul.msk.f32.vlgmr.msrb.gmra.mxu1 %vm392_vm1, %v6767_v4 }
 0x1ab   : > { %v6795_v45 = vpop.permute.xlu1 %1432 }
 0x1ac   : > { %v5691_v5 = vpop.permute.xlu0 %5690  ;;  %v6771_v6 = vpop.f32.mrf.mxu1 }
 0x1ad   : > { %v5693_v7 = vunpack.i.h.bf16 %v5691_v5  ;;  %v5692_v8 = vunpack.i.l.bf16 %v5691_v5  ;;  %v838_v9 = vsel %vm392_vm1, %v6771_v6, -inf }
 0x1ae   : > { %839 = vmax.xlane.f32.xlu1 %v838_v9 }
 0x1af   : > { %1087 = vmatpush.msra.mxu1 %v5693_v7  ;;  %1113 = vmatpush.msra.mxu2 %v5692_v8  ;;  %v6827_v7 = vpop.permute.xlu2 %1488 }
 0x1b3   : > { %v6805_v53 = vpop.permute.xlu1 %1486 }
 0x1b4   : > { %v6775_v24 = vpop.permute.xlu0 %5695  ;;  %v6777_v26 = vpop.f32.mrf.mxu1  ;;  %8804 = vst [vmem:[#allocation28_spill] sm:$0xff] %v6805_v53 }
 0x1b5   : > { %v5697_v28 = vunpack.i.l.bf16 %v6775_v24  ;;  %v841_v31 = vsel %vm392_vm1, %v6777_v26, -inf }
 0x1b6   : > { %842 = vmax.xlane.f32.xlu2 %v841_v31 }
 0x1b7   : > { %1139 = vmatpush.msra.mxu3 %v5697_v28 }
 0x1bb   : > { %v6813_v60 = vpop.permute.xlu1 %1516 }
 0x1bc   : > { %v6782_v32 = vpop.permute.xlu0 %5700  ;;  %8805 = vst [vmem:[#allocation29_spill] sm:$0xff] %v6813_v60 }
 0x1bd   : > { %v5702_v34 = vunpack.i.l.bf16 %v6782_v32 }
 0x1bf   : > { %1165 = vmatpush.msrb.mxu1 %v5702_v34 }
 0x1c2   : > { %v6787_v36 = vpop.f32.mrf.mxu3 }
 0x1c3   : > { %v844_v39 = vsel %vm392_vm1, %v6787_v36, -inf  ;;  %v6819_v1 = vpop.permute.xlu1 %1458 }
 0x1c4   : > { %v6791_v40 = vpop.f32.mrf.mxu1  ;;  %845 = vmax.xlane.f32.xlu2 %v844_v39  ;;  %8806 = vst [vmem:[#allocation30_spill] sm:$0xff] %v6819_v1  ;;  %v6823_v3 = vpop.permute.xlu0 %5715 }
 0x1c5   : > { %v847_v42 = vsel %vm392_vm1, %v6791_v40, -inf }
 0x1c6   : > { %848 = vmax.xlane.f32.xlu0 %v847_v42  ;;  %v6841_v42 = vpop.permute.xlu2 %1514 }
 0x1c7   : > { %8809 = vst [vmem:[#allocation33_spill] sm:$0xff] %v6841_v42 }
 0x1ca   : > { %v6797_v46 = vpop.f32.mrf.mxu3 }
 0x1cb   : > { %v853_v51 = vsel %vm392_vm1, %v6797_v46, -inf  ;;  %v6829_v8 = vpop.permute.xlu1 %1544 }
 0x1cc   : > { %v6799_v48 = vpop.f32.mrf.mxu1  ;;  %8807 = vst [vmem:[#allocation31_spill] sm:$0xff] %v6829_v8  ;;  %v6837_v34 = vpop.permute.xlu0 %1430 }
 0x1cd   : > { %v850_v49 = vsel %vm392_vm1, %v6799_v48, -inf  ;;  %8808 = vst [vmem:[#allocation32_spill] sm:$0xff] %v6837_v34 }
 0x1ce   : > { %851 = vmax.xlane.f32.xlu1 %v850_v49  ;;  %854 = vmax.xlane.f32.xlu0 %v853_v51 }
 0x1d3   : > { %v6843_v49 = vpop.permute.xlu1 %1542 }
 0x1d4   : > { %8810 = vst [vmem:[#allocation34_spill] sm:$0xff] %v6843_v49  ;;  %v6845_v51 = vpop.permute.xlu0 %1460 }
 0x1da   : > { %v6807_v55 = vpop.f32.mrf.mxu3 }
 0x1db   : > { %v862_v56 = vsel %vm392_vm1, %v6807_v55, -inf }
 0x1dc   : > { %v6811_v58 = vpop.f32.mrf.mxu1  ;;  %863 = vmax.xlane.f32.xlu0 %v862_v56  ;;  %v6855_v29 = vpop.permute.xlu0 %1572 }
 0x1dd   : > { %v856_v62 = vsel %vm392_vm1, %v6811_v58, -inf  ;;  %8813 = vst [vmem:[#allocation37_spill] sm:$0xff] %v6855_v29 }
 0x1de   : > { %857 = vmax.xlane.f32.xlu2 %v856_v62  ;;  %v6849_v62 = vpop.permute.xlu2 %1600 }
 0x1df   : > { %8811 = vst [vmem:[#allocation35_spill] sm:$0xff] %v6849_v62 }
 0x1e6   : > { %v6863_v47 = vpop.permute.xlu2 %1598 }
 0x1e7   : > { %8814 = vst [vmem:[#allocation38_spill] sm:$0xff] %v6863_v47 }
 0x1ea   : > { %v6821_v2 = vpop.f32.mrf.mxu2 }
 0x1eb   : > { %v859_v5 = vsel %vm392_vm1, %v6821_v2, -inf }
 0x1ec   : > { %860 = vmax.xlane.f32.xlu1 %v859_v5 }
 0x1ee   : > { %v6871_v49 = vpop.permute.xlu2 %1740 }
 0x1ef   : > { %8817 = vst [vmem:[#allocation41_spill] sm:$0xff] %v6871_v49 }
 0x1f2   : > { %v6831_v9 = vpop.f32.mrf.mxu3 }
 0x1f3   : > { %v871_v28 = vsel %vm392_vm1, %v6831_v9, -inf }
 0x1f4   : > { %v6835_v31 = vpop.f32.mrf.mxu1  ;;  %872 = vmax.xlane.f32.xlu0 %v871_v28  ;;  %v6853_v28 = vpop.permute.xlu1 %1628 }
 0x1f5   : > { %v865_v39 = vsel %vm392_vm1, %v6835_v31, -inf  ;;  %8812 = vst [vmem:[#allocation36_spill] sm:$0xff] %v6853_v28 }
 0x1f6   : > { %866 = vmax.xlane.f32.xlu2 %v865_v39  ;;  %v6881_v47 = vpop.permute.xlu2 %1684 }
 0x1f7   : > { %8819 = vst [vmem:[#allocation43_spill] sm:$0xff] %v6881_v47 }
 0x1fc   : > { %v6867_v53 = vpop.permute.xlu1 %1738 }
 0x1fd   : > { %8815 = vst [vmem:[#allocation39_spill] sm:$0xff] %v6867_v53 }
 0x202   : > { %v6847_v56 = vpop.f32.mrf.mxu2 }
 0x203   : > { %v868_v5 = vsel %vm392_vm1, %v6847_v56, -inf }
 0x204   : > { %869 = vmax.xlane.f32.xlu1 %v868_v5  ;;  %v6869_v5 = vpop.permute.xlu0 %1570  ;;  %v6873_v29 = vpop.permute.xlu1 %5720 }
 0x205   : > { %8816 = vst [vmem:[#allocation40_spill] sm:$0xff] %v6869_v5 }
 0x20a   : > { %v6857_v52 = vpop.f32.mrf.mxu3 }
 0x20b   : > { %v880_v39 = vsel %vm392_vm1, %v6857_v52, -inf }
 0x20c   : > { %v6861_v43 = vpop.f32.mrf.mxu1  ;;  %881 = vmax.xlane.f32.xlu0 %v880_v39  ;;  %v6879_v39 = vpop.permute.xlu0 %1656 }
 0x20d   : > { %v874_v50 = vsel %vm392_vm1, %v6861_v43, -inf  ;;  %8818 = vst [vmem:[#allocation42_spill] sm:$0xff] %v6879_v39 }
 0x20e   : > { %875 = vmax.xlane.f32.xlu2 %v874_v50 }
 0x214   : > { %v6888_v5 = vpop.permute.xlu0 %1654 }
 0x215   : > { %8820 = vst [vmem:[#allocation44_spill] sm:$0xff] %v6888_v5 }
 0x21a   : > { %v6875_v28 = vpop.f32.mrf.mxu2 }
 0x21b   : > { %v877_v1 = vsel %vm392_vm1, %v6875_v28, -inf }
 0x21c   : > { %878 = vmax.xlane.f32.xlu1 %v877_v1 }
 0x221   : > { %v840_v8 = vpop.xlane.xlu1 %839 }
 0x222   : > { %v886_v50 = vsub.f32 %v6771_v6, %v840_v8  ;;  %v6895_v6 = vpop.permute.xlu0 %1626 }
 0x223   : > { %8821 = vst [vmem:[#allocation45_spill] sm:$0xff] %v6895_v6 }
 0x224   : > { %v902_v53 = vmul.f32 1.442695, %v886_v50 }
 0x225   : > { %v6884_v42 = vpop.f32.mrf.mxu1 }
 0x226   : > { %5959 = vpow2.f32 %v902_v53  ;;  %v883_v49 = vsel %vm392_vm1, %v6884_v42, -inf }
 0x227   : > { %884 = vmax.xlane.f32.xlu2 %v883_v49 }
 0x229   : > { %v843_v62 = vpop.xlane.xlu2 %842 }
 0x22a   : > { %v887_v1 = vsub.f32 %v6777_v26, %v843_v62 }
 0x22c   : > { %v6891_v34 = vpop.eup %5959  ;;  %v904_v39 = vmul.f32 1.442695, %v887_v1 }
 0x22d   : > { %v934_v47 = vsel %vm392_vm1, %v6891_v34, 0.0 }
 0x22e   : > { %5961 = vpow2.f32 %v904_v39  ;;  %935 = vadd.xlane.f32.xlu1 %v934_v47 }
 0x234   : > { %v6897_v53 = vpop.eup %5961 }
 0x235   : > { %v937_v8 = vsel %vm392_vm1, %v6897_v53, 0.0 }
 0x236   : > { %938 = vadd.xlane.f32.xlu2 %v937_v8 }
 0x237   : > { %v846_v49 = vpop.xlane.xlu2 %845 }
 0x238   : > { %v888_v50 = vsub.f32 %v6787_v36, %v846_v49 }
 0x239   : > { %v849_v26 = vpop.xlane.xlu0 %848 }
 0x23a   : > { %v906_v62 = vmul.f32 1.442695, %v888_v50  ;;  %v889_v1 = vsub.f32 %v6791_v40, %v849_v26 }
 0x23c   : > { %5963 = vpow2.f32 %v906_v62  ;;  %v908_v5 = vmul.f32 1.442695, %v889_v1 }
 0x23e   : > { %5965 = vpow2.f32 %v908_v5 }
 0x241   : > { %v852_v39 = vpop.xlane.xlu1 %851  ;;  %v855_v47 = vpop.xlane.xlu0 %854 }
 0x242   : > { %v6903_v38 = vpop.eup %5963  ;;  %v890_v6 = vsub.f32 %v6799_v48, %v852_v39  ;;  %v891_v60 = vsub.f32 %v6797_v46, %v855_v47 }
 0x243   : > { %v940_v8 = vsel %vm392_vm1, %v6903_v38, 0.0 }
 0x244   : > { %v6909_v41 = vpop.eup %5965  ;;  %v910_v36 = vmul.f32 1.442695, %v890_v6  ;;  %v912_v49 = vmul.f32 1.442695, %v891_v60  ;;  %941 = vadd.xlane.f32.xlu2 %v940_v8 }
 0x245   : > { %v943_v40 = vsel %vm392_vm1, %v6909_v41, 0.0 }
 0x246   : > { %5967 = vpow2.f32 %v910_v36  ;;  %944 = vadd.xlane.f32.xlu0 %v943_v40 }
 0x247   : > { %5969 = vpow2.f32 %v912_v49 }
 0x24c   : > { %v6913_v5 = vpop.eup %5967 }
 0x24d   : > { %v6915_v50 = vpop.eup %5969  ;;  %v946_v46 = vsel %vm392_vm1, %v6913_v5, 0.0 }
 0x24e   : > { %947 = vadd.xlane.f32.xlu0 %v946_v46  ;;  %v949_v48 = vsel %vm392_vm1, %v6915_v50, 0.0 }
 0x24f   : > { %950 = vadd.xlane.f32.xlu2 %v949_v48  ;;  %v864_v60 = vpop.xlane.xlu0 %863 }
 0x250   : > { %v894_v62 = vsub.f32 %v6807_v55, %v864_v60 }
 0x251   : > { %v858_v6 = vpop.xlane.xlu2 %857 }
 0x252   : > { %v892_v26 = vsub.f32 %v6811_v58, %v858_v6  ;;  %v918_v39 = vmul.f32 1.442695, %v894_v62 }
 0x254   : > { %v914_v1 = vmul.f32 1.442695, %v892_v26 }
 0x256   : > { %5971 = vpow2.f32 %v914_v1 }
 0x257   : > { %5973 = vpow2.f32 %v918_v39 }
 0x25c   : > { %v6923_v47 = vpop.eup %5971 }
 0x25d   : > { %v952_v8 = vsel %vm392_vm1, %v6923_v47, 0.0  ;;  %v6928_v40 = vpop.eup %5973 }
 0x25e   : > { %953 = vadd.xlane.f32.xlu2 %v952_v8  ;;  %v958_v55 = vsel %vm392_vm1, %v6928_v40, 0.0 }
 0x25f   : > { %v861_v36 = vpop.xlane.xlu1 %860 }
 0x260   : > { %v893_v49 = vsub.f32 %v6821_v2, %v861_v36 }
 0x262   : > { %v916_v46 = vmul.f32 1.442695, %v893_v49 }
 0x264   : > { %5975 = vpow2.f32 %v916_v46 }
 0x266   : > { %959 = vadd.xlane.f32.xlu2 %v958_v55 }
 0x267   : > { %v873_v58 = vpop.xlane.xlu0 %872 }
 0x268   : > { %v897_v48 = vsub.f32 %v6831_v9, %v873_v58 }
 0x269   : > { %v867_v60 = vpop.xlane.xlu2 %866 }
 0x26a   : > { %v6933_v6 = vpop.eup %5975  ;;  %v924_v26 = vmul.f32 1.442695, %v897_v48  ;;  %v895_v62 = vsub.f32 %v6835_v31, %v867_v60 }
 0x26b   : > { %v955_v2 = vsel %vm392_vm1, %v6933_v6, 0.0 }
 0x26c   : > { %5977 = vpow2.f32 %v924_v26  ;;  %v920_v1 = vmul.f32 1.442695, %v895_v62  ;;  %956 = vadd.xlane.f32.xlu1 %v955_v2 }
 0x26e   : > { %5979 = vpow2.f32 %v920_v1 }
 0x272   : > { %v6938_v39 = vpop.eup %5977 }
 0x273   : > { %v967_v8 = vsel %vm392_vm1, %v6938_v39, 0.0 }
 0x274   : > { %v6942_v36 = vpop.eup %5979  ;;  %968 = vadd.xlane.f32.xlu1 %v967_v8 }
 0x275   : > { %v961_v9 = vsel %vm392_vm1, %v6942_v36, 0.0 }
 0x276   : > { %962 = vadd.xlane.f32.xlu2 %v961_v9 }
 0x277   : > { %v870_v31 = vpop.xlane.xlu1 %869 }
 0x278   : > { %v896_v49 = vsub.f32 %v6847_v56, %v870_v31 }
 0x27a   : > { %v922_v46 = vmul.f32 1.442695, %v896_v49 }
 0x27c   : > { %5981 = vpow2.f32 %v922_v46 }
 0x281   : > { %v876_v55 = vpop.xlane.xlu2 %875 }
 0x282   : > { %v6947_v58 = vpop.eup %5981  ;;  %v898_v48 = vsub.f32 %v6861_v43, %v876_v55  ;;  %v5698_v55 = vunpack.i.h.bf16 %v6775_v24 }
 0x283   : > { %v964_v60 = vsel %vm392_vm1, %v6947_v58, 0.0 }
 0x284   : > { %v926_v26 = vmul.f32 1.442695, %v898_v48  ;;  %965 = vadd.xlane.f32.xlu2 %v964_v60  ;;  %v882_v60 = vpop.xlane.xlu0 %881 }
 0x286   : > { %5983 = vpow2.f32 %v926_v26 }
 0x28c   : > { %v6952_v62 = vpop.eup %5983 }
 0x28d   : > { %1682 = vrot.lane.b32.xlu1 %v6728_v54, %s6384_s30  ;;  %v970_v56 = vsel %vm392_vm1, %v6952_v62, 0.0 }
 0x28e   : > { %971 = vadd.xlane.f32.xlu0 %v970_v56 }
 0x28f   : > { %v879_v2 = vpop.xlane.xlu1 %878 }
 0x290   : > { %v899_v8 = vsub.f32 %v6875_v28, %v879_v2  ;;  %v5703_v28 = vunpack.i.h.bf16 %v6782_v32 }
 0x292   : > { %v928_v31 = vmul.f32 1.442695, %v899_v8 }
 0x29a   : > { %v6960_v43 = vpop.xlane.xlu2 %884 }
 0x29c   : > { %1824 = vrot.lane.b32.xlu2 %v6600_v25, %s6383_s29 }
 0x2a1   : > { %v936_v1 = vpop.xlane.xlu1 %935 }
 0x2a2   : > { %5985 = vrcp.f32 %v936_v1  ;;  %1712 = vrot.lane.b32.xlu0 %v6582_v20, %s6383_s29  ;;  %v5744_v1 = vpack.i.bf16 %v6570_v17, %v6600_v25 }
 0x2a4   : > { %1768 = vrot.lane.b32.xlu2 %v6590_v22, %s6383_s29 }
 0x2a8   : > { %v5986_v9 = vpop.eup %5985 }
 0x2a9   : > { %v998_v49 = vmul.f32 %v5986_v9, %v6891_v34  ;;  %v939_v46 = vpop.xlane.xlu2 %938  ;;  %v5739_v34 = vpack.i.bf16 %v6542_v10, %v6578_v19 }
 0x2aa   : > { %5987 = vrcp.f32 %v939_v46  ;;  %v5708_v46 = vunpack.i.h.bf16 %v6817_v0 }
 0x2ab   : > { %5396 = vmatmul.msk.f32.vlgmr.msrb.gmra.mxu2 %vm392_vm1, %v998_v49  ;;  %5989 = vpow2.f32 %v928_v31 }
 0x2ac   : > { %1191 = vmatpush.msrb.mxu2 %v5698_v55  ;;  %1794 = vrot.lane.b32.xlu2 %v6761_v63, %s6384_s30 }
 0x2b0   : > { %v5988_v48 = vpop.eup %5987 }
 0x2b1   : > { %v999_v26 = vmul.f32 %v5988_v48, %v6897_v53  ;;  %v6976_v56 = vpop.eup %5989  ;;  %v900_v53 = vsub.f32 %v6857_v52, %v882_v60  ;;  %v5707_v52 = vunpack.i.l.bf16 %v6817_v0  ;;  %v5712_v0 = vunpack.i.l.bf16 %v6785_v35 }
 0x2b2   : > { %v973_v24 = vsel %vm392_vm1, %v6976_v56, 0.0 }
 0x2b3   : > { %5397 = vmatmul.msk.f32.vlgmr.msrb.gmra.mxu3 %vm392_vm1, %v999_v26  ;;  %v930_v8 = vmul.f32 1.442695, %v900_v53  ;;  %v5749_v26 = vpack.i.bf16 %v6558_v14, %v6594_v23 }
 0x2b4   : > { %1217 = vmatpush.msrb.mxu3 %v5703_v28  ;;  %5740 = vrot.lane.b32.xlu2 %v5739_v34, %s6385_s26 }
 0x2b7   : > { %974 = vadd.xlane.f32.xlu1 %v973_v24  ;;  %v942_v2 = vpop.xlane.xlu2 %941 }
 0x2b8   : > { %5991 = vrcp.f32 %v942_v2  ;;  %v5717_v2 = vunpack.i.l.bf16 %v6823_v3 }
 0x2b9   : > { %v945_v32 = vpop.xlane.xlu0 %944 }
 0x2ba   : > { %5993 = vrcp.f32 %v945_v32 }
 0x2bb   : > { %5995 = vpow2.f32 %v930_v8  ;;  %v5713_v8 = vunpack.i.h.bf16 %v6785_v35  ;;  %v5723_v35 = vunpack.i.h.bf16 %v6873_v29 }
 0x2bc   : > { %5745 = vrot.lane.b32.xlu2 %v5744_v1, %s6385_s26 }
 0x2be   : > { %v5992_v9 = vpop.eup %5991 }
 0x2bf   : > { %v1000_v31 = vmul.f32 %v5992_v9, %v6903_v38 }
 0x2c0   : > { %v5994_v49 = vpop.eup %5993 }
 0x2c1   : > { %v1001_v55 = vmul.f32 %v5994_v49, %v6909_v41  ;;  %v948_v48 = vpop.xlane.xlu0 %947  ;;  %5398 = vmatmul.msk.f32.vlgmr.msra.gmra.mxu1 %vm392_vm1, %v1000_v31  ;;  %v6995_v38 = vpop.eup %5995 }
 0x2c2   : > { %5997 = vrcp.f32 %v948_v48  ;;  %1243 = vmatpush.msra.mxu1 %v5708_v46  ;;  %v951_v60 = vpop.xlane.xlu2 %950  ;;  %v976_v53 = vsel %vm392_vm1, %v6995_v38, 0.0  ;;  %v5729_v46 = vpack.i.bf16 %v6562_v15, %v6566_v16 }
 0x2c3   : > { %5999 = vrcp.f32 %v951_v60  ;;  %5399 = vmatmul.msk.f32.vlgmr.msra.gmra.mxu2 %vm392_vm1, %v1001_v55 }
 0x2c4   : > { %1269 = vmatpush.msra.mxu2 %v5707_v52  ;;  %5750 = vrot.lane.b32.xlu2 %v5749_v26, %s6385_s26 }
 0x2c8   : > { %v5998_v41 = vpop.eup %5997 }
 0x2c9   : > { %v6000_v28 = vpop.eup %5999  ;;  %v1002_v34 = vmul.f32 %v5998_v41, %v6913_v5 }
 0x2ca   : > { %v1003_v24 = vmul.f32 %v6000_v28, %v6915_v50  ;;  %v5722_v28 = vunpack.i.l.bf16 %v6873_v29 }
 0x2cb   : > { %5400 = vmatmul.msk.f32.vlgmr.msra.gmra.mxu3 %vm392_vm1, %v1002_v34 }
 0x2cc   : > { %5401 = vmatmul.msk.f32.vlgmr.msrb.gmra.mxu1 %vm392_vm1, %v1003_v24  ;;  %1295 = vmatpush.msra.mxu3 %v5712_v0  ;;  %v901_v0 = vsub.f32 %v6884_v42, %v6960_v43  ;;  %v5754_v24 = vpack.i.bf16 %v6574_v18, %v6586_v21 }
 0x2cd   : > { %1321 = vmatpush.msrb.mxu1 %v5717_v2  ;;  %977 = vadd.xlane.f32.xlu0 %v976_v53 }
 0x2ce   : > { %2638 = vrot.lane.b32.xlu2 %v6676_v44, %s6386_s27  ;;  %v932_v2 = vmul.f32 1.442695, %v901_v0 }
 0x2d0   : > { %1822 = vrot.lane.b32.xlu1 %v6747_v59, %s6384_s30 }
 0x2d1   : > { %v954_v5 = vpop.xlane.xlu2 %953 }
 0x2d2   : > { %6001 = vrcp.f32 %v954_v5 }
 0x2d6   : > { %2752 = vrot.lane.b32.xlu2 %v6582_v20, %s6387_s28 }
 0x2d8   : > { %v6002_v50 = vpop.eup %6001  ;;  %1766 = vrot.lane.b32.xlu1 %v6755_v61, %s6384_s30 }
 0x2d9   : > { %v1004_v32 = vmul.f32 %v6002_v50, %v6923_v47  ;;  %v960_v1 = vpop.xlane.xlu2 %959  ;;  %v8822_v50 = vld [vmem:[#allocation19_spill] sm:$0xff] }
 0x2da   : > { %6003 = vrcp.f32 %v960_v1 }
 0x2db   : > { %5402 = vmatmul.msk.f32.vlgmr.msrb.gmra.mxu2 %vm392_vm1, %v1004_v32 }
 0x2dc   : > { %1347 = vmatpush.msrb.mxu2 %v5713_v8 }
 0x2de   : > { %2724 = vrot.lane.b32.xlu2 %v6578_v19, %s6387_s28 }
 0x2df   : > { %v957_v9 = vpop.xlane.xlu1 %956 }
 0x2e0   : > { %v6004_v31 = vpop.eup %6003  ;;  %6005 = vrcp.f32 %v957_v9  ;;  %1850 = vrot.lane.b32.xlu1 %v6767_v4, %s6384_s30 }
 0x2e1   : > { %v1006_v49 = vmul.f32 %v6004_v31, %v6928_v40  ;;  %1710 = vrot.lane.b32.xlu0 %v6739_v57, %s6384_s30  ;;  %v5718_v40 = vunpack.i.h.bf16 %v6823_v3  ;;  %v8823_v31 = vld [vmem:[#allocation29_spill] sm:$0xff] }
 0x2e3   : > { %5404 = vmatmul.msk.f32.vlgmr.msra.gmra.mxu1 %vm392_vm1, %v1006_v49 }
 0x2e4   : > { %1399 = vmatpush.msra.mxu1 %v5723_v35  ;;  %v8824_v35 = vld [vmem:[#allocation18_spill] sm:$0xff] }
 0x2e6   : > { %v6006_v47 = vpop.eup %6005  ;;  %2472 = vrot.lane.b32.xlu2 %v6542_v10, %s6387_s28 }
 0x2e7   : > { %v1005_v55 = vmul.f32 %v6006_v47, %v6933_v6  ;;  %v969_v48 = vpop.xlane.xlu1 %968  ;;  %v5734_v6 = vpack.i.bf16 %v6554_v13, %v6582_v20 }
 0x2e8   : > { %6007 = vrcp.f32 %v969_v48  ;;  %5730 = vrot.lane.b32.xlu1 %v5729_v46, %s6385_s26  ;;  %v8825_v46 = vld [vmem:[#allocation32_spill] sm:$0xff] }
 0x2e9   : > { %1796 = vrot.lane.b32.xlu0 %v6594_v23, %s6383_s29  ;;  %5403 = vmatmul.msk.f32.vlgmr.msrb.gmra.mxu3 %vm392_vm1, %v1005_v55  ;;  %v963_v52 = vpop.xlane.xlu2 %962  ;;  %v8826_v55 = vld [vmem:[#allocation35_spill] sm:$0xff] }
 0x2ea   : > { %1373 = vmatpush.msrb.mxu3 %v5718_v40  ;;  %6009 = vrcp.f32 %v963_v52  ;;  %v8827_v40 = vld [vmem:[#allocation33_spill] sm:$0xff]  ;;  %v8828_v52 = vld [vmem:[#allocation43_spill] sm:$0xff] }
 0x2ee   : > { %v6008_v60 = vpop.eup %6007  ;;  %2864 = vrot.lane.b32.xlu2 %v6600_v25, %s6387_s28 }
 0x2ef   : > { %v1009_v3 = vmul.f32 %v6008_v60, %v6938_v39  ;;  %v7051_v39 = vpack.i.bf16 %v6546_v11, %v6550_v12 }
 0x2f0   : > { %v6010_v26 = vpop.eup %6009  ;;  %5735 = vrot.lane.b32.xlu1 %v5734_v6, %s6385_s26 }
 0x2f1   : > { %v1007_v41 = vmul.f32 %v6010_v26, %v6942_v36  ;;  %1852 = vrot.lane.b32.xlu0 %v6617_v30, %s6383_s29  ;;  %5407 = vmatmul.msk.f32.vlgmr.msrb.gmra.mxu1 %vm392_vm1, %v1009_v3 }
 0x2f2   : > { %5414 = vmatpush.xpose.msk.msrb.mxu1 %vm392_vm1, %v6845_v51 }
 0x2f3   : > { %5405 = vmatmul.msk.f32.vlgmr.msra.gmra.mxu2 %vm392_vm1, %v1007_v41  ;;  %v8829_v41 = vld [vmem:[#allocation31_spill] sm:$0xff] }
 0x2f4   : > { %1425 = vmatpush.msra.mxu2 %v5722_v28  ;;  %v8830_v28 = vld [vmem:[#allocation38_spill] sm:$0xff] }
 0x2f7   : > { %v966_v34 = vpop.xlane.xlu2 %965 }
 0x2f8   : > { %6011 = vrcp.f32 %v966_v34  ;;  %2528 = vrot.lane.b32.xlu1 %v6550_v12, %s6387_s28 }
 0x2f9   : > { %5725 = vrot.lane.b32.xlu0 %v7051_v39, %s6385_s26 }
 0x2fe   : > { %v6012_v36 = vpop.eup %6011 }
 0x2ff   : > { %v1008_v29 = vmul.f32 %v6012_v36, %v6947_v58  ;;  %v1683_v43 = vpop.permute.xlu1 %1682  ;;  %v8831_v36 = vld [vmem:[#allocation30_spill] sm:$0xff] }
 0x300   : > { %2500 = vrot.lane.b32.xlu1 %v6546_v11, %s6387_s28 }
 0x301   : > { %2526 = vrot.lane.b32.xlu0 %v6640_v37, %s6386_s27  ;;  %v972_v51 = vpop.xlane.xlu0 %971  ;;  %5406 = vmatmul.msk.f32.vlgmr.msra.gmra.mxu3 %vm392_vm1, %v1008_v29  ;;  %v8832_v29 = vld [vmem:[#allocation36_spill] sm:$0xff] }
 0x302   : > { %6013 = vrcp.f32 %v972_v51  ;;  %5412 = vmatpush.xpose.msk.msra.mxu3 %vm392_vm1, %v6795_v45 }
 0x303   : > { %6015 = vpow2.f32 %v932_v2 }
 0x308   : > { %v6014_v58 = vpop.eup %6013  ;;  %2498 = vrot.lane.b32.xlu1 %v6626_v33, %s6386_s27 }
 0x309   : > { %v1010_v53 = vmul.f32 %v6014_v58, %v6952_v62  ;;  %5755 = vrot.lane.b32.xlu0 %v5754_v24, %s6385_s26  ;;  %v7080_v45 = vpop.eup %6015  ;;  %v7086_v62 = vpack.i.bf16 %v6590_v22, %v6617_v30  ;;  %v8834_v24 = vld [vmem:[#allocation34_spill] sm:$0xff] }
 0x30a   : > { %v979_v42 = vsel %vm392_vm1, %v7080_v45, 0.0 }
 0x30b   : > { %5408 = vmatmul.msk.f32.vlgmr.msrb.gmra.mxu2 %vm392_vm1, %v1010_v53  ;;  %v8835_v53 = vld [vmem:[#allocation45_spill] sm:$0xff] }
 0x30c   : > { %5416 = vmatpush.xpose.msk.msrb.mxu2 %vm392_vm1, %v6827_v7  ;;  %v7092_v7 = vpop.permute.xlu2 %1824 }
 0x310   : > { %2640 = vrot.lane.b32.xlu1 %v6566_v16, %s6387_s28 }
 0x311   : > { %2556 = vrot.lane.b32.xlu0 %v6554_v13, %s6387_s28 }
 0x314   : > { %v1769_v5 = vpop.permute.xlu2 %1768  ;;  %v1713_v49 = vpop.permute.xlu0 %1712 }
 0x317   : > { %980 = vadd.xlane.f32.xlu2 %v979_v42 }
 0x318   : > { %5760 = vrot.lane.b32.xlu1 %v7086_v62, %s6385_s26  ;;  %s5208_s26 = sshll.u32 %s223_s5, 4  ;;  %s5209_s26 = int_to_ptr.vmem [resolvable:$true] %s5208_s26 }
 0x319   : > { %2470 = vrot.lane.b32.xlu0 %v6607_v27, %s6386_s27 }
 0x31c   : > { %v1795_v8 = vpop.permute.xlu2 %1794 }
 0x320   : > { %2612 = vrot.lane.b32.xlu1 %v6562_v15, %s6387_s28 }
 0x321   : > { %2836 = vrot.lane.b32.xlu0 %v6594_v23, %s6387_s28 }
 0x324   : > { %v7110_v47 = vpop.permute.xlu2 %5740 }
 0x328   : > { %2610 = vrot.lane.b32.xlu1 %v8822_v50, %s6386_s27 }
 0x32a   : > { %v975_v32 = vpop.xlane.xlu1 %974 }
 0x32b   : > { %6017 = vrcp.f32 %v975_v32 }
 0x32c   : > { %v7124_v60 = vpop.permute.xlu2 %5745 }
 0x32d   : > { %v5748_v32 = vunpack.i.h.bf16 %v7124_v60 }
 0x32f   : > { %2862 = vrot.lane.b32.xlu2 %v6747_v59, %s6386_s27 }
 0x330   : > { %2750 = vrot.lane.b32.xlu1 %v6739_v57, %s6386_s27 }
 0x331   : > { %v6018_v1 = vpop.eup %6017 }
 0x332   : > { %v1011_v9 = vmul.f32 %v6018_v1, %v6976_v56 }
 0x334   : > { %5409 = vmatmul.msk.f32.vlgmr.msrb.gmra.mxu3 %vm392_vm1, %v1011_v9  ;;  %v7135_v34 = vpop.permute.xlu2 %5750  ;;  %v5743_v9 = vunpack.i.h.bf16 %v7110_v47 }
 0x335   : > { %5418 = vmatpush.xpose.msk.msrb.mxu3 %vm392_vm1, %v8823_v31 }
 0x338   : > { %2554 = vrot.lane.b32.xlu1 %v8824_v35, %s6386_s27 }
 0x33c   : > { %5413 = vmatmul.msk.f32.vlgmr.msra.gmra.mxu3 %vm392_vm1, %v8825_v46  ;;  %v7142_v0 = vpop.permute.xlu2 %2638 }
 0x33d   : > { %5424 = vmatpush.xpose.msk.msra.mxu3 %vm392_vm1, %v8826_v55  ;;  %8833 = vst [vmem:[#allocation19_spill] sm:$0xff] %v7142_v0 }
 0x340   : > { %v978_v48 = vpop.xlane.xlu0 %977  ;;  %2722 = vrot.lane.b32.xlu1 %v6728_v54, %s6386_s27 }
 0x341   : > { %6019 = vrcp.f32 %v978_v48  ;;  %v5753_v48 = vunpack.i.h.bf16 %v7135_v34 }
 0x342   : > { %v7118_v56 = vpop.permute.xlu1 %1822 }
 0x344   : > { %5419 = vmatmul.msk.f32.vlgmr.msrb.gmra.mxu3 %vm392_vm1, %v8827_v40  ;;  %v7155_v1 = vpop.permute.xlu2 %2752 }
 0x345   : > { %5430 = vmatpush.xpose.msk.msrb.mxu3 %vm392_vm1, %v8828_v52  ;;  %8836 = vst [vmem:[#allocation29_spill] sm:$0xff] %v7155_v1 }
 0x347   : > { %v6020_v6 = vpop.eup %6019 }
 0x348   : > { %v1012_v3 = vmul.f32 %v6020_v6, %v6995_v38  ;;  %2668 = vrot.lane.b32.xlu1 %v6570_v17, %s6387_s28 }
 0x34a   : > { %5410 = vmatmul.msk.f32.vlgmr.msra.gmra.mxu1 %vm392_vm1, %v1012_v3  ;;  %v1767_v26 = vpop.permute.xlu1 %1766 }
 0x34b   : > { %5420 = vmatpush.xpose.msk.msra.mxu1 %vm392_vm1, %v8829_v41  ;;  %v8840_v41 = vld [vmem:[#allocation37_spill] sm:$0xff] }
 0x34c   : > { %5425 = vmatmul.msk.f32.vlgmr.msra.gmra.mxu3 %vm392_vm1, %v8830_v28  ;;  %v7161_v55 = vpop.permute.xlu2 %2724  ;;  %v7173_v28 = vpop.f32.mrf.mxu3 }
 0x34d   : > { %5436 = vmatpush.xpose.msk.msra.mxu3 %vm392_vm1, %v1769_v5  ;;  %8837 = vst [vmem:[#allocation32_spill] sm:$0xff] %v7161_v55 }
 0x34e   : > { %8841 = vst [vmem:[#allocation43_spill] sm:$0xff] %v7173_v28 }
 0x352   : > { %5415 = vmatmul.msk.f32.vlgmr.msrb.gmra.mxu1 %vm392_vm1, %v8831_v36  ;;  %v1851_v38 = vpop.permute.xlu1 %1850  ;;  %v8842_v36 = vld [vmem:[#allocation28_spill] sm:$0xff] }
 0x353   : > { %5426 = vmatpush.xpose.msk.msrb.mxu1 %vm392_vm1, %v8832_v29  ;;  %v1711_v51 = vpop.permute.xlu0 %1710  ;;  %v8845_v29 = vld [vmem:[#allocation40_spill] sm:$0xff] }
 0x354   : > { %5431 = vmatmul.msk.f32.vlgmr.msrb.gmra.mxu3 %vm392_vm1, %v1683_v43  ;;  %v7165_v40 = vpop.permute.xlu2 %2472 }
 0x355   : > { %8838 = vst [vmem:[#allocation35_spill] sm:$0xff] %v7165_v40 }
 0x35a   : > { %5421 = vmatmul.msk.f32.vlgmr.msra.gmra.mxu1 %vm392_vm1, %v8834_v24  ;;  %v5731_v58 = vpop.permute.xlu1 %5730 }
 0x35b   : > { %5432 = vmatpush.xpose.msk.msra.mxu1 %vm392_vm1, %v1713_v49  ;;  %v1797_v2 = vpop.permute.xlu0 %1796  ;;  %v5732_v46 = vunpack.i.l.bf16 %v5731_v58 }
 0x35c   : > { %5437 = vmatmul.msk.f32.vlgmr.msra.gmra.mxu3 %vm392_vm1, %v1767_v26  ;;  %v7167_v52 = vpop.permute.xlu2 %2864 }
 0x35d   : > { %8839 = vst [vmem:[#allocation33_spill] sm:$0xff] %v7167_v52 }
 0x362   : > { %5427 = vmatmul.msk.f32.vlgmr.msrb.gmra.mxu1 %vm392_vm1, %v8835_v53  ;;  %v7150_v42 = vpop.permute.xlu1 %5735 }
 0x363   : > { %5438 = vmatpush.xpose.msk.msrb.mxu1 %vm392_vm1, %v1797_v2  ;;  %v1853_v5 = vpop.permute.xlu0 %1852  ;;  %v5738_v43 = vunpack.i.h.bf16 %v7150_v42  ;;  %v8849_v2 = vld [vmem:[#allocation44_spill] sm:$0xff] }
 0x364   : > { %5442 = vmatpush.xpose.msk.msrb.mxu3 %vm392_vm1, %v1853_v5 }
 0x365   : > { %2153 = vmatpush.msrb.mxu0 %v5738_v43 }
 0x367   : > { %2257 = vmatpush.msra.mxu0 %v5748_v32  ;;  %5443 = vmatmul.msk.f32.vlgmr.msrb.gmra.mxu3 %vm392_vm1, %v1851_v38  ;;  %v7179_v38 = vpop.f32.mrf.mxu3  ;;  %v8852_v32 = vld [vmem:[#allocation39_spill] sm:$0xff] }
 0x368   : > { %8844 = vst [vmem:[#allocation31_spill] sm:$0xff] %v7179_v38 }
 0x36a   : > { %5433 = vmatmul.msk.f32.vlgmr.msra.gmra.mxu1 %vm392_vm1, %v1711_v51  ;;  %v8846_v51 = vld [vmem:[#allocation41_spill] sm:$0xff] }
 0x36b   : > { %2075 = vmatpush.msra.mxu1 %v5743_v9  ;;  %v5726_v31 = vpop.permute.xlu0 %5725 }
 0x36c   : > { %v5727_v49 = vunpack.i.l.bf16 %v5726_v31  ;;  %v5728_v43 = vunpack.i.h.bf16 %v5726_v31 }
 0x36e   : > { %2127 = vmatpush.msra.mxu3 %v5727_v49 }
 0x36f   : > { %v7187_v24 = vpop.f32.mrf.mxu3 }
 0x370   : > { %2231 = vmatpush.msrb.mxu3 %v5732_v46  ;;  %8848 = vst [vmem:[#allocation30_spill] sm:$0xff] %v7187_v24  ;;  %v5733_v46 = vunpack.i.h.bf16 %v5731_v58 }
 0x372   : > { %5439 = vmatmul.msk.f32.vlgmr.msrb.gmra.mxu1 %vm392_vm1, %v1795_v8  ;;  %v8843_v8 = vld [vmem:[#allocation42_spill] sm:$0xff] }
 0x373   : > { %2179 = vmatpush.msrb.mxu1 %v5753_v48 }
 0x384   : > { %v7195_v5 = vpop.f32.mrf.mxu3 }
 0x385   : > { %8851 = vst [vmem:[#allocation34_spill] sm:$0xff] %v7195_v5 }
 0x38a   : > { %v981_v6 = vpop.xlane.xlu2 %980 }
 0x38b   : > { %6021 = vrcp.f32 %v981_v6 }
 0x391   : > { %v6022_v3 = vpop.eup %6021 }
 0x392   : > { %v1013_v26 = vmul.f32 %v6022_v3, %v7080_v45  ;;  %v7185_v45 = vpop.f32.mrf.mxu1 }
 0x393   : > { %8847 = vst [vmem:[#allocation38_spill] sm:$0xff] %v7185_v45 }
 0x394   : > { %5411 = vmatmul.msk.f32.vlgmr.msra.gmra.mxu2 %vm392_vm1, %v1013_v26 }
 0x395   : > { %5422 = vmatpush.xpose.msk.msra.mxu2 %vm392_vm1, %v8840_v41 }
 0x39a   : > { %v7193_v53 = vpop.f32.mrf.mxu1 }
 0x39b   : > { %8850 = vst [vmem:[#allocation36_spill] sm:$0xff] %v7193_v53 }
 0x39c   : > { %5417 = vmatmul.msk.f32.vlgmr.msrb.gmra.mxu2 %vm392_vm1, %v8842_v36 }
 0x39d   : > { %5428 = vmatpush.xpose.msk.msrb.mxu2 %vm392_vm1, %v8843_v8  ;;  %v7225_v8 = vpop.permute.xlu1 %2528 }
 0x3a2   : > { %v7199_v9 = vpop.f32.mrf.mxu1 }
 0x3a3   : > { %8853 = vst [vmem:[#allocation45_spill] sm:$0xff] %v7199_v9 }
 0x3a4   : > { %5423 = vmatmul.msk.f32.vlgmr.msra.gmra.mxu2 %vm392_vm1, %v8845_v29 }
 0x3a5   : > { %5434 = vmatpush.xpose.msk.msra.mxu2 %vm392_vm1, %v8846_v51 }
 0x3aa   : > { %v7205_v48 = vpop.f32.mrf.mxu1 }
 0x3ab   : > { %8855 = vst [vmem:[#allocation28_spill] sm:$0xff] %v7205_v48  ;;  %v7263_v48 = vpop.permute.xlu0 %2526 }
 0x3ac   : > { %5429 = vmatmul.msk.f32.vlgmr.msrb.gmra.mxu2 %vm392_vm1, %v8849_v2  ;;  %8865 = vst [vmem:[#allocation50_spill] sm:$0xff] %v7263_v48 }
 0x3ad   : > { %5440 = vmatpush.xpose.msk.msrb.mxu2 %vm392_vm1, %v7092_v7 }
 0x3b4   : > { %5435 = vmatmul.msk.f32.vlgmr.msra.gmra.mxu2 %vm392_vm1, %v8852_v32  ;;  %v7235_v32 = vpop.permute.xlu1 %2500 }
 0x3b5   : > { %2101 = vmatpush.msra.mxu2 %v5728_v43  ;;  %8857 = vst [vmem:[#allocation40_spill] sm:$0xff] %v7235_v32 }
 0x3b7   : > { %v7201_v49 = vpop.f32.mrf.mxu3 }
 0x3b8   : > { %8854 = vst [vmem:[#allocation37_spill] sm:$0xff] %v7201_v49 }
 0x3bc   : > { %5441 = vmatmul.msk.f32.vlgmr.msrb.gmra.mxu2 %vm392_vm1, %v7118_v56  ;;  %v7247_v45 = vpop.permute.xlu1 %2498 }
 0x3bd   : > { %2205 = vmatpush.msrb.mxu2 %v5733_v46  ;;  %8858 = vst [vmem:[#allocation41_spill] sm:$0xff] %v7247_v45 }
 0x3bf   : > { %v7207_v7 = vpop.f32.mrf.mxu3 }
 0x3c0   : > { %v1878_v31 = vsel %vm392_vm1, %v7207_v7, -inf }
 0x3c1   : > { %1879 = vmax.xlane.f32.xlu0 %v1878_v31 }
 0x3c7   : > { %v7211_v6 = vpop.f32.mrf.mxu1  ;;  %v7213_v3 = vpop.f32.mrf.mxu3 }
 0x3c8   : > { %8856 = vst [vmem:[#allocation42_spill] sm:$0xff] %v7211_v6  ;;  %v1887_v26 = vsel %vm392_vm1, %v7213_v3, -inf  ;;  %v7249_v6 = vpop.f32.mrf.mxu2 }
 0x3c9   : > { %1888 = vmax.xlane.f32.xlu1 %v1887_v26  ;;  %8859 = vst [vmem:[#allocation44_spill] sm:$0xff] %v7249_v6 }
 0x3cf   : > { %v7217_v58 = vpop.f32.mrf.mxu1  ;;  %v7219_v56 = vpop.f32.mrf.mxu3 }
 0x3d0   : > { %v1881_v41 = vsel %vm392_vm1, %v7217_v58, -inf  ;;  %v1896_v43 = vsel %vm392_vm1, %v7219_v56, -inf  ;;  %v7253_v38 = vpop.f32.mrf.mxu2 }
 0x3d1   : > { %1882 = vmax.xlane.f32.xlu0 %v1881_v41  ;;  %8861 = vst [vmem:[#allocation46_spill] sm:$0xff] %v7253_v38 }
 0x3d7   : > { %v7223_v36 = vpop.f32.mrf.mxu1  ;;  %v7227_v29 = vpop.f32.mrf.mxu3 }
 0x3d8   : > { %v1890_v51 = vsel %vm392_vm1, %v7223_v36, -inf  ;;  %v7255_v53 = vpop.f32.mrf.mxu2 }
 0x3d9   : > { %1891 = vmax.xlane.f32.xlu1 %v1890_v51  ;;  %8862 = vst [vmem:[#allocation47_spill] sm:$0xff] %v7255_v53 }
 0x3df   : > { %v7231_v2 = vpop.f32.mrf.mxu1  ;;  %v7237_v46 = vpop.f32.mrf.mxu3 }
 0x3e0   : > { %v7259_v5 = vpop.f32.mrf.mxu2 }
 0x3e1   : > { %1897 = vmax.xlane.f32.xlu1 %v1896_v43  ;;  %v7251_v43 = vpop.permute.xlu1 %2640  ;;  %8863 = vst [vmem:[#allocation48_spill] sm:$0xff] %v7259_v5 }
 0x3e2   : > { %8860 = vst [vmem:[#allocation39_spill] sm:$0xff] %v7251_v43 }
 0x3e7   : > { %v7239_v31 = vpop.f32.mrf.mxu1 }
 0x3e8   : > { %v1908_v26 = vsel %vm392_vm1, %v7239_v31, -inf  ;;  %v7265_v9 = vpop.f32.mrf.mxu2 }
 0x3e9   : > { %1909 = vmax.xlane.f32.xlu0 %v1908_v26  ;;  %v7257_v49 = vpop.permute.xlu1 %5760  ;;  %8866 = vst [vmem:[#allocation51_spill] sm:$0xff] %v7265_v9 }
 0x3ea   : > { %v7243_v41 = vpop.f32.mrf.mxu3 }
 0x3eb   : > { %v1923_v51 = vsel %vm392_vm1, %v7243_v41, -inf }
 0x3ec   : > { %1924 = vmax.xlane.f32.xlu1 %v1923_v51  ;;  %v7269_v51 = vpop.permute.xlu0 %5755 }
 0x3ef   : > { %v7299_v1 = vpop.f32.mrf.mxu1 }
 0x3f0   : > { %v1917_v43 = vsel %vm392_vm1, %v7299_v1, -inf }
 0x3f1   : > { %v7261_v26 = vpop.permute.xlu1 %2612 }
 0x3f2   : > { %8864 = vst [vmem:[#allocation49_spill] sm:$0xff] %v7261_v26 }
 0x3f4   : > { %v7277_v53 = vpop.permute.xlu0 %2556 }
 0x3f5   : > { %8870 = vst [vmem:[#allocation55_spill] sm:$0xff] %v7277_v53 }
 0x3f9   : > { %v7267_v28 = vpop.permute.xlu1 %2610 }
 0x3fa   : > { %8867 = vst [vmem:[#allocation52_spill] sm:$0xff] %v7267_v28 }
 0x3fc   : > { %v7287_v54 = vpop.permute.xlu0 %2470 }
 0x3fd   : > { %8872 = vst [vmem:[#allocation57_spill] sm:$0xff] %v7287_v54 }
 0x401   : > { %v7273_v24 = vpop.permute.xlu1 %2750 }
 0x402   : > { %8869 = vst [vmem:[#allocation54_spill] sm:$0xff] %v7273_v24  ;;  %v1899_v24 = vsel %vm392_vm1, %v7231_v2, -inf }
 0x404   : > { %v7297_v0 = vpop.permute.xlu0 %2836 }
 0x405   : > { %8874 = vst [vmem:[#allocation59_spill] sm:$0xff] %v7297_v0  ;;  %v1914_v0 = vsel %vm392_vm1, %v7237_v46, -inf }
 0x409   : > { %v7283_v59 = vpop.permute.xlu1 %2554 }
 0x40a   : > { %8871 = vst [vmem:[#allocation56_spill] sm:$0xff] %v7283_v59 }
 0x417   : > { %v7271_v6 = vpop.f32.mrf.mxu2 }
 0x418   : > { %8868 = vst [vmem:[#allocation53_spill] sm:$0xff] %v7271_v6 }
 0x41f   : > { %v7275_v38 = vpop.f32.mrf.mxu2 }
 0x420   : > { %v1884_v5 = vsel %vm392_vm1, %v7275_v38, -inf }
 0x421   : > { %1885 = vmax.xlane.f32.xlu2 %v1884_v5  ;;  %v7295_v5 = vpop.permute.xlu1 %2722 }
 0x422   : > { %8873 = vst [vmem:[#allocation58_spill] sm:$0xff] %v7295_v5 }
 0x427   : > { %v7281_v57 = vpop.f32.mrf.mxu2 }
 0x428   : > { %v1893_v9 = vsel %vm392_vm1, %v7281_v57, -inf }
 0x429   : > { %1894 = vmax.xlane.f32.xlu2 %v1893_v9  ;;  %v1905_v9 = vsel %vm392_vm1, %v7227_v29, -inf  ;;  %v7307_v59 = vpop.permute.xlu1 %2668 }
 0x42a   : > { %8875 = vst [vmem:[#allocation60_spill] sm:$0xff] %v7307_v59 }
 0x42f   : > { %v7289_v6 = vpop.f32.mrf.mxu2 }
 0x430   : > { %v1902_v52 = vsel %vm392_vm1, %v7289_v6, -inf }
 0x431   : > { %1900 = vmax.xlane.f32.xlu2 %v1899_v24  ;;  %1903 = vmax.xlane.f32.xlu0 %v1902_v52 }
 0x434   : > { %v1880_v24 = vpop.xlane.xlu0 %1879 }
 0x435   : > { %v1926_v52 = vsub.f32 %v7207_v7, %v1880_v24 }
 0x437   : > { %v7301_v48 = vpop.f32.mrf.mxu2  ;;  %v1942_v53 = vmul.f32 1.442695, %v1926_v52 }
 0x438   : > { %v1911_v7 = vsel %vm392_vm1, %v7301_v48, -inf }
 0x439   : > { %1906 = vmax.xlane.f32.xlu2 %v1905_v9  ;;  %1918 = vmax.xlane.f32.xlu0 %v1917_v43  ;;  %6023 = vpow2.f32 %v1942_v53 }
 0x43c   : > { %v1889_v54 = vpop.xlane.xlu1 %1888 }
 0x43d   : > { %v1929_v9 = vsub.f32 %v7213_v3, %v1889_v54 }
 0x43f   : > { %v7310_v5 = vpop.f32.mrf.mxu2  ;;  %v1948_v24 = vmul.f32 1.442695, %v1929_v9  ;;  %v7320_v26 = vpop.eup %6023 }
 0x440   : > { %v1920_v28 = vsel %vm392_vm1, %v7310_v5, -inf  ;;  %v7339_v9 = vpop.permute.xlu2 %2862 }
 0x441   : > { %1915 = vmax.xlane.f32.xlu2 %v1914_v0  ;;  %1921 = vmax.xlane.f32.xlu1 %v1920_v28  ;;  %v1974_v28 = vsel %vm392_vm1, %v7320_v26, 0.0  ;;  %8876 = vst [vmem:[#allocation61_spill] sm:$0xff] %v7339_v9 }
 0x444   : > { %v1883_v55 = vpop.xlane.xlu0 %1882 }
 0x445   : > { %v1927_v43 = vsub.f32 %v7217_v58, %v1883_v55 }
 0x447   : > { %v1944_v59 = vmul.f32 1.442695, %v1927_v43 }
 0x449   : > { %6025 = vpow2.f32 %v1944_v59  ;;  %1912 = vmax.xlane.f32.xlu2 %v1911_v7 }
 0x44a   : > { %6027 = vpow2.f32 %v1948_v24 }
 0x44c   : > { %v1892_v45 = vpop.xlane.xlu1 %1891 }
 0x44d   : > { %v1930_v24 = vsub.f32 %v7223_v36, %v1892_v45 }
 0x44f   : > { %v7322_v0 = vpop.eup %6025 }
 0x450   : > { %v1977_v55 = vsel %vm392_vm1, %v7322_v0, 0.0  ;;  %v7328_v53 = vpop.eup %6027 }
 0x451   : > { %1975 = vadd.xlane.f32.xlu2 %v1974_v28  ;;  %1978 = vadd.xlane.f32.xlu1 %v1977_v55  ;;  %v1983_v58 = vsel %vm392_vm1, %v7328_v53, 0.0  ;;  %v1950_v55 = vmul.f32 1.442695, %v1930_v24 }
 0x454   : > { %v1898_v54 = vpop.xlane.xlu1 %1897 }
 0x455   : > { %v1932_v59 = vsub.f32 %v7219_v56, %v1898_v54 }
 0x457   : > { %v1954_v3 = vmul.f32 1.442695, %v1932_v59 }
 0x459   : > { %6029 = vpow2.f32 %v1954_v3  ;;  %1984 = vadd.xlane.f32.xlu2 %v1983_v58 }
 0x45f   : > { %v7333_v52 = vpop.eup %6029 }
 0x460   : > { %v1992_v43 = vsel %vm392_vm1, %v7333_v52, 0.0 }
 0x461   : > { %1993 = vadd.xlane.f32.xlu2 %v1992_v43 }
 0x479   : > { %2584 = vrot.lane.b32.xlu2 %v6558_v14, %s6387_s28 }
 0x494   : > { %v1886_v7 = vpop.xlane.xlu2 %1885 }
 0x495   : > { %v1928_v56 = vsub.f32 %v7275_v38, %v1886_v7  ;;  %v1910_v38 = vpop.xlane.xlu0 %1909 }
 0x497   : > { %v1946_v28 = vmul.f32 1.442695, %v1928_v56 }
 0x499   : > { %6031 = vpow2.f32 %v1946_v28 }
 0x49a   : > { %6033 = vpow2.f32 %v1950_v55 }
 0x49c   : > { %v1895_v54 = vpop.xlane.xlu2 %1894 }
 0x49d   : > { %v1931_v59 = vsub.f32 %v7281_v57, %v1895_v54  ;;  %v1936_v57 = vsub.f32 %v7239_v31, %v1910_v38 }
 0x49f   : > { %v7344_v3 = vpop.eup %6031  ;;  %v1952_v58 = vmul.f32 1.442695, %v1931_v59  ;;  %v1962_v28 = vmul.f32 1.442695, %v1936_v57 }
 0x4a0   : > { %v1980_v43 = vsel %vm392_vm1, %v7344_v3, 0.0  ;;  %v7348_v40 = vpop.eup %6033 }
 0x4a1   : > { %6035 = vpow2.f32 %v1952_v58  ;;  %1981 = vadd.xlane.f32.xlu0 %v1980_v43  ;;  %v1986_v56 = vsel %vm392_vm1, %v7348_v40, 0.0 }
 0x4a4   : > { %v1901_v9 = vpop.xlane.xlu2 %1900  ;;  %v1904_v35 = vpop.xlane.xlu0 %1903 }
 0x4a5   : > { %v1933_v45 = vsub.f32 %v7231_v2, %v1901_v9  ;;  %v7362_v9 = vpop.xlane.xlu1 %1924 }
 0x4a7   : > { %v7351_v36 = vpop.eup %6035  ;;  %v1956_v7 = vmul.f32 1.442695, %v1933_v45  ;;  %v8877_v45 = vld [vmem:[#allocation22_spill] sm:$0xff] }
 0x4a8   : > { %v1989_v24 = vsel %vm392_vm1, %v7351_v36, 0.0 }
 0x4a9   : > { %1987 = vadd.xlane.f32.xlu0 %v1986_v56  ;;  %1990 = vadd.xlane.f32.xlu1 %v1989_v24  ;;  %6037 = vpow2.f32 %v1956_v7 }
 0x4aa   : > { %6039 = vpow2.f32 %v1962_v28 }
 0x4ac   : > { %v1907_v55 = vpop.xlane.xlu2 %1906 }
 0x4af   : > { %v7358_v54 = vpop.eup %6037 }
 0x4b0   : > { %v1995_v2 = vsel %vm392_vm1, %v7358_v54, 0.0  ;;  %v7364_v59 = vpop.eup %6039 }
 0x4b1   : > { %1996 = vadd.xlane.f32.xlu2 %v1995_v2  ;;  %v2004_v58 = vsel %vm392_vm1, %v7364_v59, 0.0 }
 0x4b4   : > { %v1916_v31 = vpop.xlane.xlu2 %1915  ;;  %v7368_v43 = vpop.xlane.xlu1 %1921 }
 0x4b9   : > { %2005 = vadd.xlane.f32.xlu2 %v2004_v58  ;;  %v5758_v58 = vunpack.i.h.bf16 %v7269_v51 }
 0x4bc   : > { %v1913_v38 = vpop.xlane.xlu2 %1912 }
 0x4bd   : > { %2834 = vrot.lane.b32.xlu0 %v6761_v63, %s6386_s27  ;;  %v5742_v63 = vunpack.i.l.bf16 %v7110_v47 }
 0x4c2   : > { %2666 = vrot.lane.b32.xlu1 %v8877_v45, %s6386_s27 }
 0x4c4   : > { %v1976_v7 = vpop.xlane.xlu2 %1975  ;;  %v1979_v57 = vpop.xlane.xlu1 %1978 }
 0x4c5   : > { %6041 = vrcp.f32 %v1976_v7 }
 0x4c6   : > { %6043 = vrcp.f32 %v1979_v57  ;;  %v5757_v57 = vunpack.i.l.bf16 %v7269_v51  ;;  %v1938_v51 = vsub.f32 %v7237_v46, %v1916_v31  ;;  %v1937_v46 = vsub.f32 %v7301_v48, %v1913_v38  ;;  %v8879_v38 = vld [vmem:[#allocation20_spill] sm:$0xff] }
 0x4cb   : > { %v6042_v56 = vpop.eup %6041 }
 0x4cc   : > { %v6044_v24 = vpop.eup %6043  ;;  %v2038_v28 = vmul.f32 %v6042_v56, %v7320_v26  ;;  %v1985_v2 = vpop.xlane.xlu2 %1984  ;;  %v1935_v56 = vsub.f32 %v7227_v29, %v1907_v55 }
 0x4cd   : > { %v2039_v32 = vmul.f32 %v6044_v24, %v7322_v0  ;;  %6045 = vrcp.f32 %v1985_v2  ;;  %v1919_v0 = vpop.xlane.xlu0 %1918 }
 0x4ce   : > { %5444 = vmatmul.msk.f32.vlgmr.msra.gmra.mxu1 %vm392_vm1, %v2038_v28  ;;  %v1960_v47 = vmul.f32 1.442695, %v1935_v56  ;;  %v1939_v24 = vsub.f32 %v7299_v1, %v1919_v0 }
 0x4cf   : > { %2283 = vmatpush.msra.mxu1 %v5758_v58  ;;  %5445 = vmatmul.msk.f32.vlgmr.msra.gmra.mxu2 %vm392_vm1, %v2039_v32  ;;  %v8878_v32 = vld [vmem:[#allocation21_spill] sm:$0xff] }
 0x4d0   : > { %2309 = vmatpush.msra.mxu2 %v5742_v63  ;;  %v1934_v63 = vsub.f32 %v7289_v6, %v1904_v35  ;;  %6047 = vpow2.f32 %v1960_v47  ;;  %v1968_v28 = vmul.f32 1.442695, %v1939_v24  ;;  %v5774_v35 = vpack.i.bf16 %v6542_v10, %v6562_v15 }
 0x4d1   : > { %2780 = vrot.lane.b32.xlu2 %v6586_v21, %s6387_s28  ;;  %v1966_v6 = vmul.f32 1.442695, %v1938_v51  ;;  %v1941_v47 = vsub.f32 %v7243_v41, %v7362_v9 }
 0x4d2   : > { %v1958_v2 = vmul.f32 1.442695, %v1934_v63  ;;  %6049 = vpow2.f32 %v1968_v28  ;;  %v1940_v63 = vsub.f32 %v7310_v5, %v7368_v43 }
 0x4d3   : > { %v6046_v7 = vpop.eup %6045  ;;  %v1972_v24 = vmul.f32 1.442695, %v1941_v47 }
 0x4d4   : > { %v2041_v26 = vmul.f32 %v6046_v7, %v7328_v53  ;;  %6051 = vpow2.f32 %v1958_v2  ;;  %v5789_v7 = vpack.i.bf16 %v6586_v21, %v6600_v25  ;;  %v1994_v28 = vpop.xlane.xlu2 %1993  ;;  %v8880_v2 = vld [vmem:[#allocation23_spill] sm:$0xff] }
 0x4d5   : > { %6053 = vpow2.f32 %v1966_v6 }
 0x4d6   : > { %5447 = vmatmul.msk.f32.vlgmr.msrb.gmra.mxu0 %vm392_vm1, %v2041_v26  ;;  %v7392_v29 = vpop.eup %6047  ;;  %v1964_v26 = vmul.f32 1.442695, %v1937_v46 }
 0x4d7   : > { %2361 = vmatpush.msrb.mxu0 %v5757_v57  ;;  %v2001_v1 = vsel %vm392_vm1, %v7392_v29, 0.0 }
 0x4d8   : > { %v7397_v53 = vpop.eup %6049  ;;  %6055 = vpow2.f32 %v1964_v26 }
 0x4d9   : > { %2694 = vrot.lane.b32.xlu2 %v8878_v32, %s6386_s27  ;;  %v2013_v58 = vsel %vm392_vm1, %v7397_v53, 0.0  ;;  %6057 = vpow2.f32 %v1972_v24  ;;  %v5763_v24 = vunpack.i.h.bf16 %v7257_v49 }
 0x4da   : > { %v7402_v55 = vpop.eup %6051 }
 0x4db   : > { %v1998_v31 = vsel %vm392_vm1, %v7402_v55, 0.0  ;;  %v7412_v57 = vpop.eup %6053 }
 0x4dc   : > { %v2010_v56 = vsel %vm392_vm1, %v7412_v57, 0.0  ;;  %v7440_v46 = vpop.permute.xlu2 %2584 }
 0x4de   : > { %v7416_v0 = vpop.eup %6055 }
 0x4df   : > { %v2007_v48 = vsel %vm392_vm1, %v7416_v0, 0.0 }
 0x4e1   : > { %2808 = vrot.lane.b32.xlu2 %v6590_v22, %s6387_s28 }
 0x4e7   : > { %2002 = vadd.xlane.f32.xlu0 %v2001_v1  ;;  %v1970_v1 = vmul.f32 1.442695, %v1940_v63 }
 0x4e9   : > { %5775 = vrot.lane.b32.xlu2 %v5774_v35, %s6388_s4  ;;  %v7432_v35 = vpop.eup %6057 }
 0x4ea   : > { %v2019_v41 = vsel %vm392_vm1, %v7432_v35, 0.0 }
 0x4ec   : > { %2014 = vadd.xlane.f32.xlu1 %v2013_v58  ;;  %v5737_v58 = vunpack.i.l.bf16 %v7150_v42  ;;  %v5779_v42 = vpack.i.bf16 %v6570_v17, %v6582_v20 }
 0x4ef   : > { %1999 = vadd.xlane.f32.xlu0 %v1998_v31 }
 0x4f1   : > { %5790 = vrot.lane.b32.xlu2 %v5789_v7, %s6388_s4 }
 0x4f7   : > { %2011 = vadd.xlane.f32.xlu0 %v2010_v56 }
 0x4ff   : > { %2008 = vadd.xlane.f32.xlu0 %v2007_v48 }
 0x505   : > { %2582 = vrot.lane.b32.xlu1 %v8879_v38, %s6386_s27 }
 0x50d   : > { %2696 = vrot.lane.b32.xlu1 %v6574_v18, %s6387_s28 }
 0x513   : > { %2778 = vrot.lane.b32.xlu0 %v8880_v2, %s6386_s27 }
 0x514   : > { %v1982_v51 = vpop.xlane.xlu0 %1981 }
 0x515   : > { %6059 = vrcp.f32 %v1982_v51  ;;  %2890 = vrot.lane.b32.xlu1 %v6767_v4, %s6386_s27  ;;  %v5747_v51 = vunpack.i.l.bf16 %v7124_v60  ;;  %v5784_v60 = vpack.i.bf16 %v6558_v14, %v6578_v19 }
 0x516   : > { %6061 = vpow2.f32 %v1970_v1  ;;  %v5752_v1 = vunpack.i.l.bf16 %v7135_v34 }
 0x517   : > { %6063 = vrcp.f32 %v1994_v28 }
 0x51a   : > { %2020 = vadd.xlane.f32.xlu2 %v2019_v41  ;;  %v5762_v41 = vunpack.i.l.bf16 %v7257_v49 }
 0x51b   : > { %v6060_v9 = vpop.eup %6059  ;;  %2892 = vrot.lane.b32.xlu0 %v6617_v30, %s6387_s28 }
 0x51c   : > { %v2040_v5 = vmul.f32 %v6060_v9, %v7344_v3  ;;  %v1988_v43 = vpop.xlane.xlu0 %1987  ;;  %v1991_v6 = vpop.xlane.xlu1 %1990  ;;  %v5794_v9 = vpack.i.bf16 %v6574_v18, %v6594_v23 }
 0x51d   : > { %6065 = vrcp.f32 %v1988_v43  ;;  %5765 = vrot.lane.b32.xlu1 %v7051_v39, %s6388_s4  ;;  %v7445_v31 = vpop.eup %6061 }
 0x51e   : > { %6067 = vrcp.f32 %v1991_v6  ;;  %5446 = vmatmul.msk.f32.vlgmr.msra.gmra.mxu3 %vm392_vm1, %v2040_v5  ;;  %v6064_v7 = vpop.eup %6063  ;;  %v2016_v3 = vsel %vm392_vm1, %v7445_v31, 0.0 }
 0x51f   : > { %2335 = vmatpush.msra.mxu3 %v5737_v58  ;;  %v2044_v48 = vmul.f32 %v6064_v7, %v7333_v52  ;;  %v8884_v7 = vld [vmem:[#allocation49_spill] sm:$0xff] }
 0x522   : > { %2017 = vadd.xlane.f32.xlu2 %v2016_v3 }
 0x523   : > { %v6066_v26 = vpop.eup %6065  ;;  %2806 = vrot.lane.b32.xlu0 %v6755_v61, %s6386_s27 }
 0x524   : > { %v6068_v56 = vpop.eup %6067  ;;  %v2042_v47 = vmul.f32 %v6066_v26, %v7348_v40  ;;  %v1997_v28 = vpop.xlane.xlu2 %1996  ;;  %v5769_v40 = vpack.i.bf16 %v6554_v13, %v6566_v16 }
 0x525   : > { %v2043_v63 = vmul.f32 %v6068_v56, %v7351_v36  ;;  %5780 = vrot.lane.b32.xlu1 %v5779_v42, %s6388_s4  ;;  %6069 = vrcp.f32 %v1997_v28  ;;  %v8885_v42 = vld [vmem:[#allocation41_spill] sm:$0xff]  ;;  %v8886_v56 = vld [vmem:[#allocation32_spill] sm:$0xff]  ;;  %v8888_v28 = vld [vmem:[#allocation55_spill] sm:$0xff] }
 0x526   : > { %5448 = vmatmul.msk.f32.vlgmr.msrb.gmra.mxu1 %vm392_vm1, %v2042_v47  ;;  %5450 = vmatmul.msk.f32.vlgmr.msrb.gmra.mxu3 %vm392_vm1, %v2044_v48 }
 0x527   : > { %5449 = vmatmul.msk.f32.vlgmr.msrb.gmra.mxu2 %vm392_vm1, %v2043_v63  ;;  %2387 = vmatpush.msrb.mxu1 %v5763_v24  ;;  %v8887_v63 = vld [vmem:[#allocation57_spill] sm:$0xff] }
 0x528   : > { %2413 = vmatpush.msrb.mxu2 %v5752_v1  ;;  %2439 = vmatpush.msrb.mxu3 %v5747_v51  ;;  %v8890_v51 = vld [vmem:[#allocation59_spill] sm:$0xff] }
 0x52b   : > { %5770 = vrot.lane.b32.xlu0 %v5769_v40, %s6388_s4  ;;  %v6070_v52 = vpop.eup %6069 }
 0x52c   : > { %v2045_v34 = vmul.f32 %v6070_v52, %v7358_v54  ;;  %v2006_v36 = vpop.xlane.xlu2 %2005 }
 0x52d   : > { %5785 = vrot.lane.b32.xlu1 %v5784_v60, %s6388_s4  ;;  %6071 = vrcp.f32 %v2006_v36 }
 0x52e   : > { %5451 = vmatmul.msk.f32.vlgmr.msra.gmra.mxu0 %vm392_vm1, %v2045_v34 }
 0x52f   : > { %2465 = vmatpush.msra.mxu0 %v5762_v41 }
 0x533   : > { %5795 = vrot.lane.b32.xlu0 %v5794_v9, %s6388_s4  ;;  %v6072_v5 = vpop.eup %6071 }
 0x534   : > { %v2048_v43 = vmul.f32 %v6072_v5, %v7364_v59 }
 0x535   : > { %5800 = vrot.lane.b32.xlu1 %v7086_v62, %s6388_s4 }
 0x536   : > { %5454 = vmatmul.msk.f32.vlgmr.msra.gmra.mxu3 %vm392_vm1, %v2048_v43 }
 0x537   : > { %5464 = vmatpush.xpose.msk.msra.mxu3 %vm392_vm1, %v7225_v8 }
 0x53a   : > { %3568 = vrot.lane.b32.xlu2 %v6550_v12, %s6389_s7  ;;  %v2835_v12 = vpop.permute.xlu0 %2834 }
 0x53b   : > { %3596 = vrot.lane.b32.xlu0 %v6554_v13, %s6389_s7 }
 0x53d   : > { %3652 = vrot.lane.b32.xlu1 %v6562_v15, %s6389_s7 }
 0x542   : > { %3566 = vrot.lane.b32.xlu2 %v6640_v37, %s6390_s8  ;;  %v7501_v37 = vpop.permute.xlu1 %2666 }
 0x543   : > { %3764 = vrot.lane.b32.xlu0 %v6578_v19, %s6389_s7  ;;  %v7505_v19 = vpop.permute.xlu2 %2780 }
 0x545   : > { %3650 = vrot.lane.b32.xlu1 %v8822_v50, %s6390_s8 }
 0x54a   : > { %3540 = vrot.lane.b32.xlu2 %v6546_v11, %s6389_s7 }
 0x54b   : > { %v2695_v54 = vpop.permute.xlu2 %2694 }
 0x54d   : > { %3510 = vrot.lane.b32.xlu1 %v6607_v27, %s6390_s8 }
 0x552   : > { %3538 = vrot.lane.b32.xlu2 %v6626_v33, %s6390_s8  ;;  %v8881_v33 = vld [vmem:[#allocation40_spill] sm:$0xff] }
 0x553   : > { %v2809_v26 = vpop.permute.xlu2 %2808 }
 0x555   : > { %3706 = vrot.lane.b32.xlu1 %v8877_v45, %s6390_s8 }
 0x55a   : > { %v2003_v62 = vpop.xlane.xlu0 %2002  ;;  %3680 = vrot.lane.b32.xlu2 %v6566_v16, %s6389_s7 }
 0x55b   : > { %6073 = vrcp.f32 %v2003_v62  ;;  %v5776_v24 = vpop.permute.xlu2 %5775 }
 0x55c   : > { %v5778_v34 = vunpack.i.h.bf16 %v5776_v24  ;;  %v5777_v43 = vunpack.i.l.bf16 %v5776_v24 }
 0x55f   : > { %v2015_v11 = vpop.xlane.xlu1 %2014 }
 0x560   : > { %6075 = vrcp.f32 %v2015_v11 }
 0x561   : > { %v6074_v50 = vpop.eup %6073 }
 0x562   : > { %v2047_v27 = vmul.f32 %v6074_v50, %v7392_v29  ;;  %v2000_v49 = vpop.xlane.xlu0 %1999  ;;  %3678 = vrot.lane.b32.xlu2 %v6676_v44, %s6390_s8  ;;  %v8882_v29 = vld [vmem:[#allocation18_spill] sm:$0xff]  ;;  %v8883_v44 = vld [vmem:[#allocation35_spill] sm:$0xff] }
 0x563   : > { %6077 = vrcp.f32 %v2000_v49  ;;  %v7550_v60 = vpop.permute.xlu2 %5790 }
 0x564   : > { %5453 = vmatmul.msk.f32.vlgmr.msra.gmra.mxu2 %vm392_vm1, %v2047_v27 }
 0x565   : > { %5462 = vmatpush.xpose.msk.msra.mxu2 %vm392_vm1, %v8881_v33 }
 0x566   : > { %v6076_v8 = vpop.eup %6075 }
 0x567   : > { %v2051_v45 = vmul.f32 %v6076_v8, %v7397_v53 }
 0x569   : > { %v6078_v59 = vpop.eup %6077 }
 0x56a   : > { %v2046_v6 = vmul.f32 %v6078_v59, %v7402_v55  ;;  %v2012_v58 = vpop.xlane.xlu0 %2011  ;;  %3594 = vrot.lane.b32.xlu2 %v8882_v29, %s6390_s8  ;;  %v8897_v29 = vld [vmem:[#allocation50_spill] sm:$0xff] }
 0x56b   : > { %6079 = vrcp.f32 %v2012_v58 }
 0x56c   : > { %5452 = vmatmul.msk.f32.vlgmr.msra.gmra.mxu1 %vm392_vm1, %v2046_v6  ;;  %5457 = vmatmul.msk.f32.vlgmr.msrb.gmra.mxu2 %vm392_vm1, %v2051_v45  ;;  %v7568_v45 = vpop.f32.mrf.mxu0  ;;  %v8895_v6 = vld [vmem:[#allocation39_spill] sm:$0xff] }
 0x56d   : > { %5460 = vmatpush.xpose.msk.msra.mxu1 %vm392_vm1, %v8883_v44  ;;  %5470 = vmatpush.xpose.msk.msrb.mxu2 %vm392_vm1, %v8884_v7  ;;  %8894 = vst [vmem:[#allocation22_spill] sm:$0xff] %v7568_v45  ;;  %v8898_v44 = vld [vmem:[#allocation29_spill] sm:$0xff] }
 0x571   : > { %v6080_v3 = vpop.eup %6079 }
 0x572   : > { %v2050_v53 = vmul.f32 %v6080_v3, %v7412_v57  ;;  %v2009_v55 = vpop.xlane.xlu0 %2008  ;;  %3512 = vrot.lane.b32.xlu2 %v6542_v10, %s6389_s7 }
 0x573   : > { %6081 = vrcp.f32 %v2009_v55 }
 0x574   : > { %5456 = vmatmul.msk.f32.vlgmr.msrb.gmra.mxu1 %vm392_vm1, %v2050_v53  ;;  %5463 = vmatmul.msk.f32.vlgmr.msra.gmra.mxu2 %vm392_vm1, %v8885_v42 }
 0x575   : > { %5468 = vmatpush.xpose.msk.msrb.mxu1 %vm392_vm1, %v7440_v46  ;;  %5478 = vmatpush.xpose.msk.msra.mxu2 %vm392_vm1, %v8886_v56  ;;  %v8889_v46 = vld [vmem:[#allocation52_spill] sm:$0xff]  ;;  %v8902_v56 = vld [vmem:[#allocation61_spill] sm:$0xff] }
 0x577   : > { %v2583_v48 = vpop.permute.xlu1 %2582 }
 0x579   : > { %v6082_v47 = vpop.eup %6081 }
 0x57a   : > { %v2049_v57 = vmul.f32 %v6082_v47, %v7416_v0  ;;  %3708 = vrot.lane.b32.xlu2 %v6570_v17, %s6389_s7  ;;  %v8891_v0 = vld [vmem:[#allocation58_spill] sm:$0xff]  ;;  %v7598_v47 = vpop.f32.mrf.mxu1 }
 0x57b   : > { %8904 = vst [vmem:[#allocation23_spill] sm:$0xff] %v7598_v47 }
 0x57c   : > { %5455 = vmatmul.msk.f32.vlgmr.msrb.gmra.mxu0 %vm392_vm1, %v2049_v57  ;;  %5461 = vmatmul.msk.f32.vlgmr.msra.gmra.mxu1 %vm392_vm1, %v8887_v63 }
 0x57d   : > { %5466 = vmatpush.xpose.msk.msrb.mxu0 %vm392_vm1, %v8888_v28  ;;  %5471 = vmatmul.msk.f32.vlgmr.msrb.gmra.mxu2 %vm392_vm1, %v8889_v46 }
 0x57e   : > { %5486 = vmatpush.xpose.msk.msrb.mxu2 %vm392_vm1, %v8890_v51 }
 0x57f   : > { %v2697_v1 = vpop.permute.xlu1 %2696 }
 0x580   : > { %5476 = vmatpush.xpose.msk.msra.mxu1 %vm392_vm1, %v2697_v1 }
 0x584   : > { %5469 = vmatmul.msk.f32.vlgmr.msrb.gmra.mxu1 %vm392_vm1, %v2583_v48  ;;  %v7596_v48 = vpop.f32.mrf.mxu2 }
 0x585   : > { %5479 = vmatmul.msk.f32.vlgmr.msra.gmra.mxu2 %vm392_vm1, %v8891_v0  ;;  %5484 = vmatpush.xpose.msk.msrb.mxu1 %vm392_vm1, %v2809_v26  ;;  %v2779_v40 = vpop.permute.xlu0 %2778  ;;  %v8900_v26 = vld [vmem:[#allocation33_spill] sm:$0xff]  ;;  %8903 = vst [vmem:[#allocation20_spill] sm:$0xff] %v7596_v48 }
 0x587   : > { %v2891_v52 = vpop.permute.xlu1 %2890 }
 0x58c   : > { %5477 = vmatmul.msk.f32.vlgmr.msra.gmra.mxu1 %vm392_vm1, %v2695_v54 }
 0x58d   : > { %5487 = vmatmul.msk.f32.vlgmr.msrb.gmra.mxu2 %vm392_vm1, %v2835_v12  ;;  %3115 = vmatpush.msra.mxu1 %v5778_v34  ;;  %v2893_v36 = vpop.permute.xlu0 %2892  ;;  %v2021_v41 = vpop.xlane.xlu2 %2020  ;;  %v8892_v12 = vld [vmem:[#allocation60_spill] sm:$0xff] }
 0x58e   : > { %6083 = vrcp.f32 %v2021_v41 }
 0x58f   : > { %v5766_v9 = vpop.permute.xlu1 %5765 }
 0x590   : > { %v5768_v5 = vunpack.i.h.bf16 %v5766_v9  ;;  %v5767_v53 = vunpack.i.l.bf16 %v5766_v9 }
 0x592   : > { %3141 = vmatpush.msra.mxu2 %v5768_v5 }
 0x594   : > { %3245 = vmatpush.msrb.mxu2 %v5777_v43  ;;  %v6084_v62 = vpop.eup %6083 }
 0x595   : > { %v2807_v11 = vpop.permute.xlu0 %2806  ;;  %v2053_v50 = vmul.f32 %v6084_v62, %v7432_v35  ;;  %v2018_v27 = vpop.xlane.xlu2 %2017  ;;  %v8893_v35 = vld [vmem:[#allocation56_spill] sm:$0xff] }
 0x596   : > { %5485 = vmatmul.msk.f32.vlgmr.msrb.gmra.mxu1 %vm392_vm1, %v2807_v11  ;;  %6085 = vrcp.f32 %v2018_v27 }
 0x597   : > { %v7556_v49 = vpop.permute.xlu1 %5780  ;;  %5459 = vmatmul.msk.f32.vlgmr.msra.gmra.mxu0 %vm392_vm1, %v2053_v50 }
 0x598   : > { %5474 = vmatpush.xpose.msk.msra.mxu0 %vm392_vm1, %v8892_v12  ;;  %v5783_v55 = vunpack.i.h.bf16 %v7556_v49 }
 0x59c   : > { %v6086_v33 = vpop.eup %6085 }
 0x59d   : > { %v2052_v8 = vmul.f32 %v6086_v33, %v7445_v31  ;;  %v5771_v7 = vpop.permute.xlu0 %5770 }
 0x59e   : > { %v5773_v3 = vunpack.i.h.bf16 %v5771_v7  ;;  %v5772_v42 = vunpack.i.l.bf16 %v5771_v7 }
 0x59f   : > { %v7562_v54 = vpop.permute.xlu1 %5785  ;;  %5458 = vmatmul.msk.f32.vlgmr.msrb.gmra.mxu3 %vm392_vm1, %v2052_v8  ;;  %5467 = vmatmul.msk.f32.vlgmr.msrb.gmra.mxu0 %vm392_vm1, %v8893_v35 }
 0x5a0   : > { %v5788_v59 = vunpack.i.h.bf16 %v7562_v54  ;;  %5472 = vmatpush.xpose.msk.msrb.mxu3 %vm392_vm1, %v8895_v6  ;;  %5482 = vmatpush.xpose.msk.msrb.mxu0 %vm392_vm1, %v7505_v19  ;;  %v8899_v19 = vld [vmem:[#allocation19_spill] sm:$0xff]  ;;  %v7650_v6 = vpop.permute.xlu2 %3568 }
 0x5a1   : > { %v7574_v58 = vpop.f32.mrf.mxu3 }
 0x5a2   : > { %8896 = vst [vmem:[#allocation21_spill] sm:$0xff] %v7574_v58  ;;  %3219 = vmatpush.msrb.mxu1 %v5788_v59 }
 0x5a3   : > { %v7602_v24 = vpop.f32.mrf.mxu1 }
 0x5a4   : > { %8906 = vst [vmem:[#allocation18_spill] sm:$0xff] %v7602_v24 }
 0x5a5   : > { %v7706_v46 = vpop.permute.xlu0 %5795 }
 0x5a7   : > { %5465 = vmatmul.msk.f32.vlgmr.msra.gmra.mxu3 %vm392_vm1, %v8897_v29  ;;  %5475 = vmatmul.msk.f32.vlgmr.msra.gmra.mxu0 %vm392_vm1, %v7501_v37  ;;  %v8901_v37 = vld [vmem:[#allocation54_spill] sm:$0xff] }
 0x5a8   : > { %5480 = vmatpush.xpose.msk.msra.mxu3 %vm392_vm1, %v8898_v44  ;;  %5490 = vmatpush.xpose.msk.msra.mxu0 %vm392_vm1, %v2893_v36 }
 0x5a9   : > { %v7612_v1 = vpop.f32.mrf.mxu3 }
 0x5aa   : > { %v7600_v57 = vpop.f32.mrf.mxu2  ;;  %8910 = vst [vmem:[#allocation32_spill] sm:$0xff] %v7612_v1 }
 0x5ab   : > { %8905 = vst [vmem:[#allocation40_spill] sm:$0xff] %v7600_v57  ;;  %v7614_v0 = vpop.f32.mrf.mxu0 }
 0x5ac   : > { %8911 = vst [vmem:[#allocation57_spill] sm:$0xff] %v7614_v0 }
 0x5af   : > { %5473 = vmatmul.msk.f32.vlgmr.msrb.gmra.mxu3 %vm392_vm1, %v8899_v19  ;;  %5483 = vmatmul.msk.f32.vlgmr.msrb.gmra.mxu0 %vm392_vm1, %v2779_v40 }
 0x5b0   : > { %5488 = vmatpush.xpose.msk.msrb.mxu3 %vm392_vm1, %v8900_v26  ;;  %3193 = vmatpush.msrb.mxu0 %v5773_v3  ;;  %v7662_v26 = vpop.permute.xlu2 %3566 }
 0x5b7   : > { %5481 = vmatmul.msk.f32.vlgmr.msra.gmra.mxu3 %vm392_vm1, %v8901_v37  ;;  %5491 = vmatmul.msk.f32.vlgmr.msra.gmra.mxu0 %vm392_vm1, %v2891_v52 }
 0x5b8   : > { %3167 = vmatpush.msra.mxu3 %v5767_v53  ;;  %3297 = vmatpush.msra.mxu0 %v5783_v55 }
 0x5b9   : > { %v7622_v36 = vpop.f32.mrf.mxu3 }
 0x5ba   : > { %8913 = vst [vmem:[#allocation52_spill] sm:$0xff] %v7622_v36 }
 0x5bf   : > { %5489 = vmatmul.msk.f32.vlgmr.msrb.gmra.mxu3 %vm392_vm1, %v8902_v56 }
 0x5c0   : > { %3271 = vmatpush.msrb.mxu3 %v5772_v42 }
 0x5e7   : > { %v7604_v63 = vpop.f32.mrf.mxu2 }
 0x5e8   : > { %8907 = vst [vmem:[#allocation35_spill] sm:$0xff] %v7604_v63 }
 0x5e9   : > { %v7606_v28 = vpop.f32.mrf.mxu1 }
 0x5ea   : > { %8908 = vst [vmem:[#allocation49_spill] sm:$0xff] %v7606_v28 }
 0x5ef   : > { %v7610_v51 = vpop.f32.mrf.mxu2 }
 0x5f0   : > { %8909 = vst [vmem:[#allocation41_spill] sm:$0xff] %v7610_v51 }
 0x5f1   : > { %v7616_v40 = vpop.f32.mrf.mxu1 }
 0x5f2   : > { %8912 = vst [vmem:[#allocation55_spill] sm:$0xff] %v7616_v40 }
 0x5f7   : > { %v7620_v34 = vpop.f32.mrf.mxu2 }
 0x5f8   : > { %v2921_v41 = vsel %vm392_vm1, %v7620_v34, -inf }
 0x5f9   : > { %v7626_v9 = vpop.f32.mrf.mxu0  ;;  %v7628_v5 = vpop.f32.mrf.mxu1  ;;  %2922 = vmax.xlane.f32.xlu2 %v2921_v41 }
 0x5fa   : > { %8914 = vst [vmem:[#allocation59_spill] sm:$0xff] %v7626_v9  ;;  %v2918_v62 = vsel %vm392_vm1, %v7628_v5, -inf  ;;  %v7674_v41 = vpop.permute.xlu2 %3540 }
 0x5fb   : > { %2919 = vmax.xlane.f32.xlu0 %v2918_v62 }
 0x600   : > { %v7658_v3 = vpop.f32.mrf.mxu2 }
 0x601   : > { %v7636_v50 = vpop.f32.mrf.mxu1  ;;  %v2933_v37 = vsel %vm392_vm1, %v7658_v3, -inf }
 0x602   : > { %v2930_v35 = vsel %vm392_vm1, %v7636_v50, -inf  ;;  %v7692_v31 = vpop.permute.xlu2 %3538 }
 0x608   : > { %v7670_v42 = vpop.f32.mrf.mxu2 }
 0x609   : > { %v7642_v33 = vpop.f32.mrf.mxu1 }
 0x60a   : > { %v7700_v43 = vpop.permute.xlu2 %3680 }
 0x612   : > { %v7702_v52 = vpop.permute.xlu2 %3678 }
 0x613   : > { %v7652_v29 = vpop.f32.mrf.mxu1 }
 0x614   : > { %v7634_v11 = vpop.f32.mrf.mxu0  ;;  %v2954_v19 = vsel %vm392_vm1, %v7652_v29, -inf }
 0x615   : > { %8915 = vst [vmem:[#allocation58_spill] sm:$0xff] %v7634_v11 }
 0x61c   : > { %v7638_v27 = vpop.f32.mrf.mxu0 }
 0x61d   : > { %v2927_v12 = vsel %vm392_vm1, %v7638_v27, -inf }
 0x61e   : > { %2928 = vmax.xlane.f32.xlu2 %v2927_v12 }
 0x622   : > { %v7644_v8 = vpop.f32.mrf.mxu3 }
 0x623   : > { %8916 = vst [vmem:[#allocation60_spill] sm:$0xff] %v7644_v8 }
 0x624   : > { %v7672_v56 = vpop.f32.mrf.mxu0 }
 0x626   : > { %2931 = vmax.xlane.f32.xlu2 %v2930_v35  ;;  %v2939_v35 = vsel %vm392_vm1, %v7672_v56, -inf }
 0x62a   : > { %v7654_v44 = vpop.f32.mrf.mxu3 }
 0x62b   : > { %v2924_v7 = vsel %vm392_vm1, %v7654_v44, -inf }
 0x62c   : > { %2925 = vmax.xlane.f32.xlu1 %v2924_v7  ;;  %v2945_v7 = vsel %vm392_vm1, %v7670_v42, -inf }
 0x62e   : > { %2955 = vmax.xlane.f32.xlu2 %v2954_v19  ;;  %v7684_v19 = vpop.f32.mrf.mxu2 }
 0x62f   : > { %v2957_v59 = vsel %vm392_vm1, %v7684_v19, -inf }
 0x632   : > { %v7664_v53 = vpop.f32.mrf.mxu3 }
 0x633   : > { %v2936_v55 = vsel %vm392_vm1, %v7664_v53, -inf }
 0x634   : > { %2937 = vmax.xlane.f32.xlu0 %v2936_v55  ;;  %2934 = vmax.xlane.f32.xlu1 %v2933_v37  ;;  %v7686_v55 = vpop.f32.mrf.mxu0  ;;  %v2942_v37 = vsel %vm392_vm1, %v7642_v33, -inf }
 0x63a   : > { %v7676_v62 = vpop.f32.mrf.mxu3 }
 0x63b   : > { %v2948_v12 = vsel %vm392_vm1, %v7676_v62, -inf }
 0x63c   : > { %2949 = vmax.xlane.f32.xlu2 %v2948_v12  ;;  %2940 = vmax.xlane.f32.xlu1 %v2939_v35  ;;  %v2951_v12 = vsel %vm392_vm1, %v7686_v55, -inf }
 0x63d   : > { %2946 = vmax.xlane.f32.xlu0 %v2945_v7 }
 0x642   : > { %v7696_v35 = vpop.f32.mrf.mxu3 }
 0x643   : > { %v2960_v7 = vsel %vm392_vm1, %v7696_v35, -inf }
 0x644   : > { %2943 = vmax.xlane.f32.xlu1 %v2942_v37  ;;  %2958 = vmax.xlane.f32.xlu2 %v2957_v59  ;;  %v8917_v37 = vld [vmem:[#allocation24_spill] sm:$0xff]  ;;  %v7710_v59 = vpop.permute.xlu2 %3594 }
 0x645   : > { %2952 = vmax.xlane.f32.xlu0 %v2951_v12  ;;  %v7712_v12 = vpop.permute.xlu0 %3596 }
 0x64c   : > { %2961 = vmax.xlane.f32.xlu1 %v2960_v7  ;;  %v7714_v8 = vpop.permute.xlu2 %3512  ;;  %v7718_v7 = vpop.permute.xlu1 %5800 }
 0x64d   : > { %v7716_v11 = vpop.permute.xlu0 %3764 }
 0x654   : > { %v7720_v57 = vpop.permute.xlu2 %3708  ;;  %v7722_v58 = vpop.permute.xlu1 %3652 }
 0x659   : > { %3624 = vrot.lane.b32.xlu0 %v6558_v14, %s6389_s7 }
 0x65c   : > { %3762 = vrot.lane.b32.xlu2 %v8917_v37, %s6390_s8  ;;  %v7725_v37 = vpop.f32.mrf.mxu0  ;;  %v7730_v36 = vpop.permute.xlu1 %3650 }
 0x65d   : > { %v2963_v1 = vsel %vm392_vm1, %v7725_v37, -inf }
 0x66c   : > { %v2923_v47 = vpop.xlane.xlu2 %2922 }
 0x66d   : > { %v2967_v0 = vsub.f32 %v7620_v34, %v2923_v47 }
 0x66e   : > { %v2920_v24 = vpop.xlane.xlu0 %2919 }
 0x66f   : > { %v2966_v45 = vsub.f32 %v7628_v5, %v2920_v24  ;;  %v2984_v9 = vmul.f32 1.442695, %v2967_v0 }
 0x671   : > { %v2982_v48 = vmul.f32 1.442695, %v2966_v45  ;;  %v7736_v45 = vpop.permute.xlu1 %3510 }
 0x673   : > { %6087 = vpow2.f32 %v2982_v48 }
 0x674   : > { %6089 = vpow2.f32 %v2984_v9 }
 0x679   : > { %v7732_v40 = vpop.eup %6087  ;;  %v7743_v0 = vpop.permute.xlu1 %3706 }
 0x67a   : > { %v3014_v24 = vsel %vm392_vm1, %v7732_v40, 0.0  ;;  %v7738_v5 = vpop.eup %6089 }
 0x67b   : > { %v3017_v34 = vsel %vm392_vm1, %v7738_v5, 0.0 }
 0x683   : > { %2964 = vmax.xlane.f32.xlu0 %v2963_v1 }
 0x68b   : > { %3015 = vadd.xlane.f32.xlu0 %v3014_v24 }
 0x691   : > { %v2929_v47 = vpop.xlane.xlu2 %2928 }
 0x692   : > { %v2969_v48 = vsub.f32 %v7638_v27, %v2929_v47 }
 0x693   : > { %3018 = vadd.xlane.f32.xlu0 %v3017_v34 }
 0x694   : > { %v2988_v1 = vmul.f32 1.442695, %v2969_v48 }
 0x696   : > { %6091 = vpow2.f32 %v2988_v1 }
 0x699   : > { %v2932_v9 = vpop.xlane.xlu2 %2931 }
 0x69a   : > { %v2970_v51 = vsub.f32 %v7636_v50, %v2932_v9 }
 0x69c   : > { %v7746_v28 = vpop.eup %6091  ;;  %v2990_v24 = vmul.f32 1.442695, %v2970_v51 }
 0x69d   : > { %v3023_v63 = vsel %vm392_vm1, %v7746_v28, 0.0 }
 0x69e   : > { %6093 = vpow2.f32 %v2990_v24  ;;  %3024 = vadd.xlane.f32.xlu0 %v3023_v63 }
 0x69f   : > { %v2926_v27 = vpop.xlane.xlu1 %2925 }
 0x6a0   : > { %v2968_v47 = vsub.f32 %v7654_v44, %v2926_v27 }
 0x6a1   : > { %v2956_v24 = vpop.xlane.xlu2 %2955 }
 0x6a2   : > { %v2986_v16 = vmul.f32 1.442695, %v2968_v47 }
 0x6a4   : > { %v7751_v34 = vpop.eup %6093  ;;  %6095 = vpow2.f32 %v2986_v16 }
 0x6a5   : > { %v3026_v48 = vsel %vm392_vm1, %v7751_v34, 0.0 }
 0x6a6   : > { %3027 = vadd.xlane.f32.xlu0 %v3026_v48 }
 0x6a7   : > { %v2938_v50 = vpop.xlane.xlu0 %2937  ;;  %v2935_v1 = vpop.xlane.xlu1 %2934 }
 0x6a8   : > { %v2971_v51 = vsub.f32 %v7658_v3, %v2935_v1  ;;  %v2972_v48 = vsub.f32 %v7664_v53, %v2938_v50 }
 0x6aa   : > { %v7756_v9 = vpop.eup %6095  ;;  %v2992_v13 = vmul.f32 1.442695, %v2971_v51  ;;  %v2994_v1 = vmul.f32 1.442695, %v2972_v48 }
 0x6ab   : > { %v3020_v63 = vsel %vm392_vm1, %v7756_v9, 0.0 }
 0x6ac   : > { %3021 = vadd.xlane.f32.xlu1 %v3020_v63  ;;  %6097 = vpow2.f32 %v2992_v13 }
 0x6af   : > { %v2941_v44 = vpop.xlane.xlu1 %2940  ;;  %v2950_v17 = vpop.xlane.xlu2 %2949 }
 0x6b0   : > { %v2973_v16 = vsub.f32 %v7672_v56, %v2941_v44  ;;  %v2947_v27 = vpop.xlane.xlu0 %2946 }
 0x6b2   : > { %v2996_v47 = vmul.f32 1.442695, %v2973_v16  ;;  %v7761_v14 = vpop.eup %6097  ;;  %v2976_v16 = vsub.f32 %v7676_v62, %v2950_v17 }
 0x6b3   : > { %v3029_v3 = vsel %vm392_vm1, %v7761_v14, 0.0 }
 0x6b4   : > { %6099 = vpow2.f32 %v2996_v47  ;;  %3030 = vadd.xlane.f32.xlu2 %v3029_v3  ;;  %v3002_v47 = vmul.f32 1.442695, %v2976_v16 }
 0x6b5   : > { %6101 = vpow2.f32 %v2994_v1 }
 0x6b7   : > { %v2944_v51 = vpop.xlane.xlu1 %2943  ;;  %v2959_v1 = vpop.xlane.xlu2 %2958 }
 0x6b8   : > { %v2974_v13 = vsub.f32 %v7642_v33, %v2944_v51  ;;  %v2953_v63 = vpop.xlane.xlu0 %2952  ;;  %v2978_v51 = vsub.f32 %v7652_v29, %v2956_v24 }
 0x6b9   : > { %v2977_v56 = vsub.f32 %v7686_v55, %v2953_v63 }
 0x6ba   : > { %v2998_v15 = vmul.f32 1.442695, %v2974_v13  ;;  %v7768_v44 = vpop.eup %6099  ;;  %v3006_v62 = vmul.f32 1.442695, %v2978_v51  ;;  %v2975_v51 = vsub.f32 %v7670_v42, %v2947_v27 }
 0x6bb   : > { %v3035_v53 = vsel %vm392_vm1, %v7768_v44, 0.0  ;;  %v3004_v50 = vmul.f32 1.442695, %v2977_v56  ;;  %v7773_v3 = vpop.eup %6101 }
 0x6bc   : > { %6103 = vpow2.f32 %v2998_v15  ;;  %3036 = vadd.xlane.f32.xlu2 %v3035_v53  ;;  %v3032_v17 = vsel %vm392_vm1, %v7773_v3, 0.0 }
 0x6bd   : > { %6105 = vpow2.f32 %v3004_v50 }
 0x6be   : > { %6107 = vpow2.f32 %v3002_v47 }
 0x6bf   : > { %v2962_v48 = vpop.xlane.xlu1 %2961  ;;  %6109 = vpow2.f32 %v3006_v62 }
 0x6c0   : > { %v2980_v55 = vsub.f32 %v7696_v35, %v2962_v48  ;;  %v2979_v35 = vsub.f32 %v7684_v19, %v2959_v1  ;;  %v8918_v1 = vld [vmem:[#allocation27_spill] sm:$0xff] }
 0x6c2   : > { %v7775_v33 = vpop.eup %6103  ;;  %v3010_v13 = vmul.f32 1.442695, %v2980_v55  ;;  %v3000_v55 = vmul.f32 1.442695, %v2975_v51  ;;  %v5787_v51 = vunpack.i.l.bf16 %v7562_v54 }
 0x6c3   : > { %v3038_v15 = vsel %vm392_vm1, %v7775_v33, 0.0  ;;  %v7785_v63 = vpop.eup %6105 }
 0x6c4   : > { %3039 = vadd.xlane.f32.xlu0 %v3038_v15  ;;  %3033 = vadd.xlane.f32.xlu2 %v3032_v17  ;;  %v7787_v29 = vpop.eup %6107  ;;  %6111 = vpow2.f32 %v3010_v13  ;;  %v3047_v24 = vsel %vm392_vm1, %v7785_v63, 0.0 }
 0x6c5   : > { %3622 = vrot.lane.b32.xlu1 %v8879_v38, %s6390_s8  ;;  %v3044_v56 = vsel %vm392_vm1, %v7787_v29, 0.0  ;;  %v3008_v38 = vmul.f32 1.442695, %v2979_v35  ;;  %v7794_v16 = vpop.eup %6109 }
 0x6c6   : > { %v3050_v50 = vsel %vm392_vm1, %v7794_v16, 0.0 }
 0x6c7   : > { %6113 = vpow2.f32 %v3008_v38 }
 0x6c8   : > { %6115 = vpow2.f32 %v3000_v55 }
 0x6ca   : > { %v7796_v53 = vpop.eup %6111 }
 0x6cb   : > { %v3056_v19 = vsel %vm392_vm1, %v7796_v53, 0.0  ;;  %v7811_v17 = vpop.permute.xlu0 %3624 }
 0x6cc   : > { %3048 = vadd.xlane.f32.xlu0 %v3047_v24  ;;  %3045 = vadd.xlane.f32.xlu2 %v3044_v56  ;;  %v8919_v56 = vld [vmem:[#allocation26_spill] sm:$0xff] }
 0x6cd   : > { %v7802_v47 = vpop.eup %6113 }
 0x6ce   : > { %v3053_v48 = vsel %vm392_vm1, %v7802_v47, 0.0  ;;  %v7807_v15 = vpop.eup %6115 }
 0x6cf   : > { %v3041_v62 = vsel %vm392_vm1, %v7807_v15, 0.0 }
 0x6d4   : > { %3051 = vadd.xlane.f32.xlu0 %v3050_v50  ;;  %3057 = vadd.xlane.f32.xlu2 %v3056_v19  ;;  %v5798_v19 = vunpack.i.h.bf16 %v7706_v46 }
 0x6dc   : > { %3054 = vadd.xlane.f32.xlu0 %v3053_v48 }
 0x6ec   : > { %3876 = vrot.lane.b32.xlu2 %v6594_v23, %s6389_s7 }
 0x6ef   : > { %3042 = vadd.xlane.f32.xlu1 %v3041_v62 }
 0x6f0   : > { %3874 = vrot.lane.b32.xlu0 %v8918_v1, %s6390_s8 }
 0x6f4   : > { %3734 = vrot.lane.b32.xlu2 %v8878_v32, %s6390_s8 }
 0x6f6   : > { %v2965_v42 = vpop.xlane.xlu0 %2964 }
 0x6f7   : > { %v2981_v27 = vsub.f32 %v7725_v37, %v2965_v42  ;;  %v7851_v42 = vpop.permute.xlu2 %3762 }
 0x6f8   : > { %3792 = vrot.lane.b32.xlu0 %v6582_v20, %s6389_s7 }
 0x6f9   : > { %v3012_v13 = vmul.f32 1.442695, %v2981_v27 }
 0x6fb   : > { %6117 = vpow2.f32 %v3012_v13 }
 0x6fc   : > { %3848 = vrot.lane.b32.xlu2 %v6590_v22, %s6389_s7 }
 0x6fe   : > { %v3016_v35 = vpop.xlane.xlu0 %3015 }
 0x6ff   : > { %6119 = vrcp.f32 %v3016_v35 }
 0x700   : > { %3846 = vrot.lane.b32.xlu0 %v6755_v61, %s6390_s8 }
 0x701   : > { %v7826_v24 = vpop.eup %6117 }
 0x702   : > { %v3059_v32 = vsel %vm392_vm1, %v7826_v24, 0.0 }
 0x703   : > { %3060 = vadd.xlane.f32.xlu1 %v3059_v32 }
 0x704   : > { %3902 = vrot.lane.b32.xlu2 %v8919_v56, %s6390_s8 }
 0x705   : > { %v6120_v37 = vpop.eup %6119 }
 0x706   : > { %v3078_v38 = vmul.f32 %v6120_v37, %v7732_v40  ;;  %v3019_v50 = vpop.xlane.xlu0 %3018 }
 0x707   : > { %6121 = vrcp.f32 %v3019_v50 }
 0x708   : > { %5492 = vmatmul.msk.f32.vlgmr.msra.gmra.mxu1 %vm392_vm1, %v3078_v38  ;;  %3820 = vrot.lane.b32.xlu0 %v6586_v21, %s6389_s7  ;;  %v5797_v38 = vunpack.i.l.bf16 %v7706_v46 }
 0x709   : > { %3323 = vmatpush.msra.mxu1 %v5798_v19 }
 0x70c   : > { %3932 = vrot.lane.b32.xlu2 %v6617_v30, %s6389_s7 }
 0x70d   : > { %v6122_v61 = vpop.eup %6121 }
 0x70e   : > { %v3079_v48 = vmul.f32 %v6122_v61, %v7738_v5  ;;  %v5793_v5 = vunpack.i.h.bf16 %v7550_v60  ;;  %v5802_v61 = vunpack.i.l.bf16 %v7718_v7 }
 0x710   : > { %5493 = vmatmul.msk.f32.vlgmr.msra.gmra.mxu2 %vm392_vm1, %v3079_v48  ;;  %3930 = vrot.lane.b32.xlu0 %v6767_v4, %s6390_s8 }
 0x711   : > { %3349 = vmatpush.msra.mxu2 %v5787_v51  ;;  %v3025_v40 = vpop.xlane.xlu0 %3024 }
 0x712   : > { %6123 = vrcp.f32 %v3025_v40 }
 0x718   : > { %v6124_v55 = vpop.eup %6123  ;;  %5805 = vrot.lane.b32.xlu0 %v7051_v39, %s6391_s17  ;;  %v5803_v39 = vunpack.i.h.bf16 %v7718_v7 }
 0x719   : > { %v3081_v62 = vmul.f32 %v6124_v55, %v7746_v28  ;;  %v3028_v1 = vpop.xlane.xlu0 %3027  ;;  %v8920_v28 = vld [vmem:[#allocation25_spill] sm:$0xff]  ;;  %v5792_v55 = vunpack.i.l.bf16 %v7550_v60 }
 0x71a   : > { %6125 = vrcp.f32 %v3028_v1 }
 0x71b   : > { %5495 = vmatmul.msk.f32.vlgmr.msrb.gmra.mxu0 %vm392_vm1, %v3081_v62 }
 0x71c   : > { %3736 = vrot.lane.b32.xlu1 %v6574_v18, %s6389_s7  ;;  %3401 = vmatpush.msrb.mxu0 %v5793_v5  ;;  %v5782_v18 = vunpack.i.l.bf16 %v7556_v49 }
 0x71f   : > { %v3022_v4 = vpop.xlane.xlu1 %3021 }
 0x720   : > { %v6126_v54 = vpop.eup %6125  ;;  %6127 = vrcp.f32 %v3022_v4 }
 0x721   : > { %v3082_v27 = vmul.f32 %v6126_v54, %v7751_v34 }
 0x723   : > { %5496 = vmatmul.msk.f32.vlgmr.msrb.gmra.mxu1 %vm392_vm1, %v3082_v27 }
 0x724   : > { %3790 = vrot.lane.b32.xlu1 %v8920_v28, %s6390_s8  ;;  %3427 = vmatpush.msrb.mxu1 %v5803_v39 }
 0x726   : > { %v6128_v13 = vpop.eup %6127 }
 0x727   : > { %v3080_v35 = vmul.f32 %v6128_v13, %v7756_v9  ;;  %v3031_v32 = vpop.xlane.xlu2 %3030 }
 0x728   : > { %6129 = vrcp.f32 %v3031_v32 }
 0x729   : > { %5494 = vmatmul.msk.f32.vlgmr.msra.gmra.mxu3 %vm392_vm1, %v3080_v35 }
 0x72a   : > { %3375 = vmatpush.msra.mxu3 %v5782_v18 }
 0x72c   : > { %3904 = vrot.lane.b32.xlu1 %v6600_v25, %s6389_s7 }
 0x72e   : > { %v6130_v34 = vpop.eup %6129 }
 0x72f   : > { %v3083_v37 = vmul.f32 %v6130_v34, %v7761_v14  ;;  %v3037_v56 = vpop.xlane.xlu2 %3036 }
 0x730   : > { %6131 = vrcp.f32 %v3037_v56 }
 0x731   : > { %5497 = vmatmul.msk.f32.vlgmr.msrb.gmra.mxu2 %vm392_vm1, %v3083_v37 }
 0x732   : > { %3453 = vmatpush.msrb.mxu2 %v5797_v38 }
 0x734   : > { %3818 = vrot.lane.b32.xlu1 %v8880_v2, %s6390_s8 }
 0x736   : > { %v6132_v49 = vpop.eup %6131 }
 0x737   : > { %v3040_v9 = vpop.xlane.xlu0 %3039  ;;  %v3085_v50 = vmul.f32 %v6132_v49, %v7768_v44  ;;  %v3034_v19 = vpop.xlane.xlu2 %3033 }
 0x738   : > { %6133 = vrcp.f32 %v3040_v9 }
 0x739   : > { %6135 = vrcp.f32 %v3034_v19  ;;  %5499 = vmatmul.msk.f32.vlgmr.msra.gmra.mxu0 %vm392_vm1, %v3085_v50 }
 0x73a   : > { %3505 = vmatpush.msra.mxu0 %v5802_v61 }
 0x73e   : > { %v6134_v14 = vpop.eup %6133 }
 0x73f   : > { %v6136_v46 = vpop.eup %6135  ;;  %v3086_v48 = vmul.f32 %v6134_v14, %v7775_v33  ;;  %v3049_v51 = vpop.xlane.xlu0 %3048 }
 0x740   : > { %v3084_v40 = vmul.f32 %v6136_v46, %v7773_v3  ;;  %6137 = vrcp.f32 %v3049_v51  ;;  %v3046_v2 = vpop.xlane.xlu2 %3045 }
 0x741   : > { %6139 = vrcp.f32 %v3046_v2  ;;  %5500 = vmatmul.msk.f32.vlgmr.msra.gmra.mxu1 %vm392_vm1, %v3086_v48 }
 0x742   : > { %5498 = vmatmul.msk.f32.vlgmr.msrb.gmra.mxu3 %vm392_vm1, %v3084_v40  ;;  %5508 = vmatpush.xpose.msk.msra.mxu1 %vm392_vm1, %v7714_v8 }
 0x743   : > { %3479 = vmatpush.msrb.mxu3 %v5792_v55 }
 0x746   : > { %v6138_v7 = vpop.eup %6137 }
 0x747   : > { %v6140_v44 = vpop.eup %6139  ;;  %v3089_v33 = vmul.f32 %v6138_v7, %v7785_v63  ;;  %v3052_v62 = vpop.xlane.xlu0 %3051 }
 0x748   : > { %v3088_v3 = vmul.f32 %v6140_v44, %v7787_v29  ;;  %6141 = vrcp.f32 %v3052_v62  ;;  %v3058_v1 = vpop.xlane.xlu2 %3057 }
 0x749   : > { %6143 = vrcp.f32 %v3058_v1  ;;  %5503 = vmatmul.msk.f32.vlgmr.msrb.gmra.mxu0 %vm392_vm1, %v3089_v33 }
 0x74a   : > { %5502 = vmatmul.msk.f32.vlgmr.msra.gmra.mxu3 %vm392_vm1, %v3088_v3  ;;  %5514 = vmatpush.xpose.msk.msrb.mxu0 %vm392_vm1, %v7712_v12 }
 0x74b   : > { %5512 = vmatpush.xpose.msk.msra.mxu3 %vm392_vm1, %v7650_v6  ;;  %v3623_v6 = vpop.permute.xlu1 %3622 }
 0x74e   : > { %v6142_v60 = vpop.eup %6141 }
 0x74f   : > { %v6144_v8 = vpop.eup %6143  ;;  %v3090_v63 = vmul.f32 %v6142_v60, %v7794_v16  ;;  %v3055_v12 = vpop.xlane.xlu0 %3054 }
 0x750   : > { %v3092_v5 = vmul.f32 %v6144_v8, %v7796_v53  ;;  %v3877_v53 = vpop.permute.xlu2 %3876 }
 0x751   : > { %5504 = vmatmul.msk.f32.vlgmr.msrb.gmra.mxu1 %vm392_vm1, %v3090_v63 }
 0x752   : > { %5506 = vmatmul.msk.f32.vlgmr.msrb.gmra.mxu3 %vm392_vm1, %v3092_v5  ;;  %5516 = vmatpush.xpose.msk.msrb.mxu1 %vm392_vm1, %v7811_v17 }
 0x753   : > { %5520 = vmatpush.xpose.msk.msrb.mxu3 %vm392_vm1, %v7700_v43 }
 0x759   : > { %5509 = vmatmul.msk.f32.vlgmr.msra.gmra.mxu1 %vm392_vm1, %v7736_v45 }
 0x75a   : > { %5513 = vmatmul.msk.f32.vlgmr.msra.gmra.mxu3 %vm392_vm1, %v7662_v26 }
 0x761   : > { %5517 = vmatmul.msk.f32.vlgmr.msrb.gmra.mxu1 %vm392_vm1, %v3623_v6 }
 0x762   : > { %5521 = vmatmul.msk.f32.vlgmr.msrb.gmra.mxu3 %vm392_vm1, %v7702_v52  ;;  %v3043_v29 = vpop.xlane.xlu1 %3042  ;;  %v3875_v16 = vpop.permute.xlu0 %3874 }
 0x763   : > { %6145 = vrcp.f32 %v3043_v29  ;;  %v3735_v52 = vpop.permute.xlu2 %3734 }
 0x764   : > { %6147 = vrcp.f32 %v3055_v12 }
 0x769   : > { %v6146_v17 = vpop.eup %6145 }
 0x76a   : > { %v3087_v43 = vmul.f32 %v6146_v17, %v7807_v15  ;;  %v3793_v4 = vpop.permute.xlu0 %3792  ;;  %v6148_v26 = vpop.eup %6147 }
 0x76b   : > { %5528 = vmatpush.xpose.msk.msra.mxu3 %vm392_vm1, %v3793_v4  ;;  %v3091_v45 = vmul.f32 %v6148_v26, %v7802_v47  ;;  %v3849_v39 = vpop.permute.xlu2 %3848 }
 0x76c   : > { %5501 = vmatmul.msk.f32.vlgmr.msra.gmra.mxu2 %vm392_vm1, %v3087_v43 }
 0x76d   : > { %5510 = vmatpush.xpose.msk.msra.mxu2 %vm392_vm1, %v7674_v41 }
 0x772   : > { %v3847_v54 = vpop.permute.xlu0 %3846 }
 0x774   : > { %5505 = vmatmul.msk.f32.vlgmr.msrb.gmra.mxu2 %vm392_vm1, %v3091_v45 }
 0x775   : > { %5518 = vmatpush.xpose.msk.msrb.mxu2 %vm392_vm1, %v7722_v58  ;;  %v3903_v58 = vpop.permute.xlu2 %3902 }
 0x776   : > { %v3061_v27 = vpop.xlane.xlu1 %3060 }
 0x777   : > { %6149 = vrcp.f32 %v3061_v27 }
 0x77a   : > { %v3821_v15 = vpop.permute.xlu0 %3820 }
 0x77c   : > { %5511 = vmatmul.msk.f32.vlgmr.msra.gmra.mxu2 %vm392_vm1, %v7692_v31 }
 0x77d   : > { %v6150_v28 = vpop.eup %6149  ;;  %5526 = vmatpush.xpose.msk.msra.mxu2 %vm392_vm1, %v7716_v11 }
 0x77e   : > { %v3093_v41 = vmul.f32 %v6150_v28, %v7826_v24 }
 0x780   : > { %5507 = vmatmul.msk.f32.vlgmr.msra.gmra.mxu0 %vm392_vm1, %v3093_v41 }
 0x781   : > { %5522 = vmatpush.xpose.msk.msra.mxu0 %vm392_vm1, %v7720_v57  ;;  %v3933_v57 = vpop.permute.xlu2 %3932 }
 0x782   : > { %v3931_v47 = vpop.permute.xlu0 %3930 }
 0x784   : > { %5519 = vmatmul.msk.f32.vlgmr.msrb.gmra.mxu2 %vm392_vm1, %v7730_v36 }
 0x785   : > { %5534 = vmatpush.xpose.msk.msrb.mxu2 %vm392_vm1, %v3877_v53  ;;  %v7932_v36 = vpop.f32.mrf.mxu1 }
 0x788   : > { %5515 = vmatmul.msk.f32.vlgmr.msrb.gmra.mxu0 %vm392_vm1, %v7710_v59 }
 0x789   : > { %5530 = vmatpush.xpose.msk.msrb.mxu0 %vm392_vm1, %v3821_v15 }
 0x78a   : > { %v5806_v31 = vpop.permute.xlu0 %5805 }
 0x78b   : > { %v5808_v11 = vunpack.i.h.bf16 %v5806_v31 }
 0x78c   : > { %5527 = vmatmul.msk.f32.vlgmr.msra.gmra.mxu2 %vm392_vm1, %v7851_v42 }
 0x78d   : > { %4181 = vmatpush.msra.mxu2 %v5808_v11 }
 0x78e   : > { %v3737_v24 = vpop.permute.xlu1 %3736 }
 0x78f   : > { %5524 = vmatpush.xpose.msk.msra.mxu1 %vm392_vm1, %v3737_v24 }
 0x790   : > { %5523 = vmatmul.msk.f32.vlgmr.msra.gmra.mxu0 %vm392_vm1, %v7743_v0  ;;  %v5807_v0 = vunpack.i.l.bf16 %v5806_v31 }
 0x791   : > { %5538 = vmatpush.xpose.msk.msra.mxu0 %vm392_vm1, %v3933_v57 }
 0x792   : > { %5525 = vmatmul.msk.f32.vlgmr.msra.gmra.mxu1 %vm392_vm1, %v3735_v52 }
 0x793   : > { %5532 = vmatpush.xpose.msk.msrb.mxu1 %vm392_vm1, %v3849_v39  ;;  %v7934_v59 = vpop.f32.mrf.mxu2 }
 0x794   : > { %v5879_v42 = vpack.i.bf16 %v7934_v59, %v7932_v36  ;;  %5535 = vmatmul.msk.f32.vlgmr.msrb.gmra.mxu2 %vm392_vm1, %v3875_v16 }
 0x796   : > { %v3791_v13 = vpop.permute.xlu1 %3790 }
 0x797   : > { %5529 = vmatmul.msk.f32.vlgmr.msra.gmra.mxu3 %vm392_vm1, %v3791_v13 }
 0x798   : > { %v7944_v32 = vpop.f32.mrf.mxu0 }
 0x79a   : > { %5533 = vmatmul.msk.f32.vlgmr.msrb.gmra.mxu1 %vm392_vm1, %v3847_v54 }
 0x79e   : > { %v3905_v35 = vpop.permute.xlu1 %3904 }
 0x79f   : > { %5536 = vmatpush.xpose.msk.msrb.mxu3 %vm392_vm1, %v3905_v35 }
 0x7a0   : > { %v7951_v56 = vpop.f32.mrf.mxu1 }
 0x7a2   : > { %5537 = vmatmul.msk.f32.vlgmr.msrb.gmra.mxu3 %vm392_vm1, %v3903_v58 }
 0x7a3   : > { %4207 = vmatpush.msra.mxu3 %v5807_v0 }
 0x7a6   : > { %v3819_v18 = vpop.permute.xlu1 %3818 }
 0x7a7   : > { %5531 = vmatmul.msk.f32.vlgmr.msrb.gmra.mxu0 %vm392_vm1, %v3819_v18 }
 0x7ac   : > { %v7946_v34 = vpop.f32.mrf.mxu3 }
 0x7ad   : > { %v5924_v37 = vpack.i.bf16 %v7944_v32, %v7946_v34  ;;  %v8940_v34 = vld [vmem:[#allocation22_spill] sm:$0xff] }
 0x7af   : > { %5539 = vmatmul.msk.f32.vlgmr.msra.gmra.mxu0 %vm392_vm1, %v3931_v47 }
 0x7b4   : > { %v7953_v38 = vpop.f32.mrf.mxu2 }
 0x7b5   : > { %v5949_v49 = vpack.i.bf16 %v7953_v38, %v7951_v56 }
 0x7b6   : > { %v7957_v9 = vpop.f32.mrf.mxu0 }
 0x7be   : > { %v7961_v19 = vpop.f32.mrf.mxu1 }
 0x7c5   : > { %v7959_v50 = vpop.f32.mrf.mxu3 }
 0x7c6   : > { %v5844_v61 = vpack.i.bf16 %v7957_v9, %v7959_v50  ;;  %v7965_v14 = vpop.f32.mrf.mxu0 }
 0x7cd   : > { %v7967_v46 = vpop.f32.mrf.mxu3 }
 0x7ce   : > { %v5894_v48 = vpack.i.bf16 %v7965_v14, %v7967_v46  ;;  %v7971_v51 = vpop.f32.mrf.mxu1 }
 0x7d5   : > { %v7986_v1 = vpop.f32.mrf.mxu3 }
 0x7d6   : > { %v3535_v40 = vpop.f32.mrf.mxu1 }
 0x7d7   : > { %v3958_v2 = vsel %vm392_vm1, %v3535_v40, -inf }
 0x7d8   : > { %3959 = vmax.xlane.f32.xlu2 %v3958_v2 }
 0x7dd   : > { %v7994_v29 = vpop.f32.mrf.mxu3 }
 0x7de   : > { %v7974_v55 = vpop.f32.mrf.mxu1  ;;  %v3964_v39 = vsel %vm392_vm1, %v7994_v29, -inf }
 0x7df   : > { %v3970_v7 = vsel %vm392_vm1, %v7974_v55, -inf }
 0x7e0   : > { %3971 = vmax.xlane.f32.xlu2 %v3970_v7 }
 0x7e5   : > { %v8003_v26 = vpop.f32.mrf.mxu3 }
 0x7e6   : > { %v3976_v31 = vsel %vm392_vm1, %v8003_v26, -inf }
 0x7ef   : > { %v7978_v44 = vpop.f32.mrf.mxu2 }
 0x7f0   : > { %v5854_v33 = vpack.i.bf16 %v7978_v44, %v7961_v19  ;;  %v8928_v44 = vld [vmem:[#allocation49_spill] sm:$0xff] }
 0x7f7   : > { %v7982_v62 = vpop.f32.mrf.mxu2 }
 0x7f8   : > { %v5864_v3 = vpack.i.bf16 %v7982_v62, %v7971_v51  ;;  %v8931_v51 = vld [vmem:[#allocation55_spill] sm:$0xff] }
 0x7fd   : > { %v7988_v60 = vpop.f32.mrf.mxu0 }
 0x7fe   : > { %v5914_v8 = vpack.i.bf16 %v7988_v60, %v7986_v1 }
 0x7ff   : > { %v3563_v63 = vpop.f32.mrf.mxu2 }
 0x800   : > { %v3961_v5 = vsel %vm392_vm1, %v3563_v63, -inf }
 0x801   : > { %3962 = vmax.xlane.f32.xlu2 %v3961_v5 }
 0x805   : > { %v3619_v6 = vpop.f32.mrf.mxu0 }
 0x806   : > { %v3967_v12 = vsel %vm392_vm1, %v3619_v6, -inf }
 0x807   : > { %3968 = vmax.xlane.f32.xlu0 %v3967_v12  ;;  %v7996_v16 = vpop.f32.mrf.mxu2 }
 0x808   : > { %v3973_v17 = vsel %vm392_vm1, %v7996_v16, -inf }
 0x80d   : > { %v3731_v53 = vpop.f32.mrf.mxu0 }
 0x80e   : > { %v3979_v43 = vsel %vm392_vm1, %v3731_v53, -inf }
 0x80f   : > { %3974 = vmax.xlane.f32.xlu0 %v3973_v17  ;;  %3980 = vmax.xlane.f32.xlu1 %v3979_v43  ;;  %v8001_v4 = vpop.f32.mrf.mxu1  ;;  %v8011_v27 = vpop.f32.mrf.mxu2 }
 0x810   : > { %v3982_v45 = vsel %vm392_vm1, %v8001_v4, -inf  ;;  %v3985_v28 = vsel %vm392_vm1, %v8011_v27, -inf }
 0x817   : > { %3983 = vmax.xlane.f32.xlu1 %v3982_v45  ;;  %v8007_v52 = vpop.f32.mrf.mxu1  ;;  %v8029_v24 = vpop.f32.mrf.mxu2 }
 0x818   : > { %v3994_v54 = vsel %vm392_vm1, %v8007_v52, -inf  ;;  %v3997_v13 = vsel %vm392_vm1, %v8029_v24, -inf }
 0x819   : > { %3995 = vmax.xlane.f32.xlu0 %v3994_v54 }
 0x81a   : > { %v8013_v15 = vpop.f32.mrf.mxu3 }
 0x81b   : > { %v3988_v35 = vsel %vm392_vm1, %v8013_v15, -inf }
 0x81f   : > { %3965 = vmax.xlane.f32.xlu1 %v3964_v39 }
 0x821   : > { %3986 = vmax.xlane.f32.xlu0 %v3985_v28 }
 0x824   : > { %v8019_v41 = vpop.f32.mrf.mxu0 }
 0x825   : > { %v8021_v47 = vpop.f32.mrf.mxu3  ;;  %v3991_v58 = vsel %vm392_vm1, %v8019_v41, -inf }
 0x826   : > { %3992 = vmax.xlane.f32.xlu2 %v3991_v58  ;;  %v4000_v11 = vsel %vm392_vm1, %v8021_v47, -inf }
 0x827   : > { %3977 = vmax.xlane.f32.xlu1 %v3976_v31 }
 0x829   : > { %4001 = vmax.xlane.f32.xlu0 %v4000_v11 }
 0x82c   : > { %v8031_v57 = vpop.f32.mrf.mxu0 }
 0x82d   : > { %v4003_v0 = vsel %vm392_vm1, %v8031_v57, -inf }
 0x82e   : > { %3998 = vmax.xlane.f32.xlu2 %v3997_v13 }
 0x82f   : > { %4004 = vmax.xlane.f32.xlu1 %v4003_v0 }
 0x837   : > { %3989 = vmax.xlane.f32.xlu1 %v3988_v35 }
 0x84b   : > { %v3960_v18 = vpop.xlane.xlu2 %3959 }
 0x84c   : > { %v4006_v2 = vsub.f32 %v3535_v40, %v3960_v18 }
 0x84e   : > { %v4022_v7 = vmul.f32 1.442695, %v4006_v2 }
 0x850   : > { %6151 = vpow2.f32 %v4022_v7 }
 0x853   : > { %v3972_v17 = vpop.xlane.xlu2 %3971 }
 0x854   : > { %v4010_v54 = vsub.f32 %v7974_v55, %v3972_v17 }
 0x856   : > { %v8039_v5 = vpop.eup %6151  ;;  %v4030_v28 = vmul.f32 1.442695, %v4010_v54 }
 0x857   : > { %v4054_v12 = vsel %vm392_vm1, %v8039_v5, 0.0 }
 0x858   : > { %4055 = vadd.xlane.f32.xlu1 %v4054_v12 }
 0x874   : > { %v3963_v43 = vpop.xlane.xlu2 %3962 }
 0x875   : > { %v4007_v45 = vsub.f32 %v3563_v63, %v3963_v43 }
 0x877   : > { %v4024_v39 = vmul.f32 1.442695, %v4007_v45 }
 0x879   : > { %6153 = vpow2.f32 %v4024_v39 }
 0x87a   : > { %v3969_v58 = vpop.xlane.xlu0 %3968  ;;  %6155 = vpow2.f32 %v4030_v28 }
 0x87b   : > { %v4009_v31 = vsub.f32 %v3619_v6, %v3969_v58 }
 0x87d   : > { %v4028_v11 = vmul.f32 1.442695, %v4009_v31 }
 0x87f   : > { %v8044_v40 = vpop.eup %6153  ;;  %6157 = vpow2.f32 %v4028_v11 }
 0x880   : > { %v4057_v13 = vsel %vm392_vm1, %v8044_v40, 0.0  ;;  %v8048_v18 = vpop.eup %6155 }
 0x881   : > { %4058 = vadd.xlane.f32.xlu0 %v4057_v13  ;;  %v4066_v6 = vsel %vm392_vm1, %v8048_v18, 0.0  ;;  %v8921_v13 = vld [vmem:[#allocation17_spill] sm:$0xff] }
 0x882   : > { %v3981_v0 = vpop.xlane.xlu1 %3980  ;;  %v3975_v17 = vpop.xlane.xlu0 %3974 }
 0x883   : > { %v4013_v35 = vsub.f32 %v3731_v53, %v3981_v0  ;;  %v4011_v54 = vsub.f32 %v7996_v16, %v3975_v17  ;;  %v5829_v16 = vpack.i.bf16 %v6590_v22, %v6594_v23  ;;  %v8923_v17 = vld [vmem:[#allocation16_spill] sm:$0xff]  ;;  %v8924_v22 = vld [vmem:[#allocation13_spill] sm:$0xff] }
 0x884   : > { %v5819_v23 = vpack.i.bf16 %v8924_v22, %v8923_v17 }
 0x885   : > { %v8050_v63 = vpop.eup %6157  ;;  %v4036_v55 = vmul.f32 1.442695, %v4013_v35  ;;  %v4032_v28 = vmul.f32 1.442695, %v4011_v54 }
 0x886   : > { %v4063_v2 = vsel %vm392_vm1, %v8050_v63, 0.0 }
 0x887   : > { %4064 = vadd.xlane.f32.xlu1 %v4063_v2  ;;  %6159 = vpow2.f32 %v4036_v55 }
 0x889   : > { %4067 = vadd.xlane.f32.xlu0 %v4066_v6 }
 0x88a   : > { %v3984_v7 = vpop.xlane.xlu1 %3983 }
 0x88d   : > { %v8056_v12 = vpop.eup %6159 }
 0x88e   : > { %v4075_v53 = vsel %vm392_vm1, %v8056_v12, 0.0 }
 0x88f   : > { %4076 = vadd.xlane.f32.xlu1 %v4075_v53 }
 0x892   : > { %v3966_v43 = vpop.xlane.xlu1 %3965 }
 0x893   : > { %v4008_v45 = vsub.f32 %v7994_v29, %v3966_v43 }
 0x895   : > { %v4026_v39 = vmul.f32 1.442695, %v4008_v45  ;;  %v3996_v45 = vpop.xlane.xlu0 %3995 }
 0x897   : > { %6161 = vpow2.f32 %v4026_v39 }
 0x898   : > { %6163 = vpow2.f32 %v4032_v28 }
 0x899   : > { %v3993_v43 = vpop.xlane.xlu2 %3992 }
 0x89a   : > { %v3978_v58 = vpop.xlane.xlu1 %3977 }
 0x89b   : > { %v4012_v11 = vsub.f32 %v8003_v26, %v3978_v58  ;;  %v8922_v26 = vld [vmem:[#allocation14_spill] sm:$0xff]  ;;  %v8925_v58 = vld [vmem:[#allocation12_spill] sm:$0xff] }
 0x89c   : > { %v5814_v2 = vpack.i.bf16 %v8922_v26, %v6542_v10 }
 0x89d   : > { %v8062_v31 = vpop.eup %6161  ;;  %5825 = vrot.lane.b32.xlu0 %v8921_v13, %s6391_s17  ;;  %v4034_v35 = vmul.f32 1.442695, %v4012_v11  ;;  %v3987_v10 = vpop.xlane.xlu0 %3986  ;;  %v8926_v11 = vld [vmem:[#allocation15_spill] sm:$0xff] }
 0x89e   : > { %v4060_v0 = vsel %vm392_vm1, %v8062_v31, 0.0  ;;  %v8069_v29 = vpop.eup %6163  ;;  %v5809_v13 = vpack.i.bf16 %v8926_v11, %v8925_v58 }
 0x89f   : > { %4061 = vadd.xlane.f32.xlu2 %v4060_v0  ;;  %6165 = vpow2.f32 %v4034_v35  ;;  %v4069_v55 = vsel %vm392_vm1, %v8069_v29, 0.0  ;;  %v4014_v0 = vsub.f32 %v8001_v4, %v3984_v7  ;;  %v4015_v4 = vsub.f32 %v8011_v27, %v3987_v10 }
 0x8a1   : > { %v3999_v54 = vpop.xlane.xlu2 %3998 }
 0x8a2   : > { %v4019_v39 = vsub.f32 %v8029_v24, %v3999_v54  ;;  %v4005_v22 = vpop.xlane.xlu1 %4004  ;;  %v4040_v54 = vmul.f32 1.442695, %v4015_v4  ;;  %v8934_v4 = vld [vmem:[#allocation52_spill] sm:$0xff] }
 0x8a4   : > { %v4048_v28 = vmul.f32 1.442695, %v4019_v39  ;;  %v4018_v39 = vsub.f32 %v8007_v52, %v3996_v45 }
 0x8a5   : > { %5830 = vrot.lane.b32.xlu0 %v5829_v16, %s6391_s17  ;;  %v8079_v6 = vpop.eup %6165  ;;  %v4038_v16 = vmul.f32 1.442695, %v4014_v0 }
 0x8a6   : > { %v4072_v53 = vsel %vm392_vm1, %v8079_v6, 0.0  ;;  %6167 = vpow2.f32 %v4048_v28  ;;  %v4046_v28 = vmul.f32 1.442695, %v4018_v39 }
 0x8a7   : > { %4070 = vadd.xlane.f32.xlu2 %v4069_v55  ;;  %v4002_v55 = vpop.xlane.xlu0 %4001  ;;  %6169 = vpow2.f32 %v4038_v16 }
 0x8a8   : > { %5815 = vrot.lane.b32.xlu1 %v5814_v2, %s6391_s17  ;;  %v4020_v24 = vsub.f32 %v8021_v47, %v4002_v55  ;;  %v8930_v55 = vld [vmem:[#allocation41_spill] sm:$0xff] }
 0x8a9   : > { %v8932_v62 = vpack.i.bf16 %v8930_v55, %v8931_v51 }
 0x8aa   : > { %v4050_v2 = vmul.f32 1.442695, %v4020_v24  ;;  %v3990_v58 = vpop.xlane.xlu1 %3989 }
 0x8ac   : > { %v8091_v35 = vpop.eup %6167  ;;  %6171 = vpow2.f32 %v4050_v2 }
 0x8ad   : > { %v4093_v26 = vsel %vm392_vm1, %v8091_v35, 0.0  ;;  %6173 = vpow2.f32 %v4040_v54 }
 0x8ae   : > { %6175 = vpow2.f32 %v4046_v28 }
 0x8af   : > { %4073 = vadd.xlane.f32.xlu2 %v4072_v53  ;;  %v8096_v53 = vpop.eup %6169 }
 0x8b0   : > { %5820 = vrot.lane.b32.xlu1 %v5819_v23, %s6391_s17  ;;  %v4078_v17 = vsel %vm392_vm1, %v8096_v53, 0.0  ;;  %v5834_v23 = vpack.i.bf16 %v6586_v21, %v6582_v20  ;;  %v4016_v20 = vsub.f32 %v8013_v15, %v3990_v58 }
 0x8b2   : > { %v8101_v7 = vpop.eup %6171  ;;  %v4042_v10 = vmul.f32 1.442695, %v4016_v20 }
 0x8b3   : > { %v4096_v47 = vsel %vm392_vm1, %v8101_v7, 0.0  ;;  %v8111_v27 = vpop.eup %6173 }
 0x8b4   : > { %v4081_v21 = vsel %vm392_vm1, %v8111_v27, 0.0  ;;  %v8120_v52 = vpop.eup %6175 }
 0x8b5   : > { %v4090_v15 = vsel %vm392_vm1, %v8120_v52, 0.0 }
 0x8c7   : > { %5810 = vrot.lane.b32.xlu2 %v5809_v13, %s6391_s17 }
 0x8cf   : > { %4094 = vadd.xlane.f32.xlu0 %v4093_v26 }
 0x8da   : > { %4079 = vadd.xlane.f32.xlu1 %v4078_v17  ;;  %v8933_v17 = vld [vmem:[#allocation59_spill] sm:$0xff] }
 0x8e2   : > { %4097 = vadd.xlane.f32.xlu1 %v4096_v47 }
 0x8e3   : > { %5835 = vrot.lane.b32.xlu0 %v5834_v23, %s6391_s17 }
 0x8eb   : > { %4524 = vrot.lane.b32.xlu0 %v6617_v30, %s6391_s17  ;;  %v4017_v30 = vsub.f32 %v8019_v41, %v3993_v43  ;;  %v4056_v43 = vpop.xlane.xlu1 %4055 }
 0x8ed   : > { %v4044_v11 = vmul.f32 1.442695, %v4017_v30 }
 0x8f0   : > { %4082 = vadd.xlane.f32.xlu2 %v4081_v21 }
 0x8f3   : > { %5845 = vrot.lane.b32.xlu0 %v5844_v61, %s6392_s20  ;;  %v4021_v61 = vsub.f32 %v8031_v57, %v4005_v22  ;;  %v8935_v22 = vpack.i.bf16 %v8933_v17, %v8934_v4 }
 0x8f4   : > { %v4059_v45 = vpop.xlane.xlu0 %4058 }
 0x8f5   : > { %6177 = vrcp.f32 %v4059_v45  ;;  %v4052_v0 = vmul.f32 1.442695, %v4021_v61 }
 0x8f6   : > { %6179 = vpow2.f32 %v4042_v10 }
 0x8f7   : > { %6181 = vpow2.f32 %v4044_v11 }
 0x8f8   : > { %4091 = vadd.xlane.f32.xlu2 %v4090_v15  ;;  %6183 = vpow2.f32 %v4052_v0  ;;  %v8937_v0 = vld [vmem:[#allocation57_spill] sm:$0xff] }
 0x8fb   : > { %v6178_v13 = vpop.eup %6177  ;;  %5855 = vrot.lane.b32.xlu0 %v5854_v33, %s6392_s20  ;;  %4498 = vrot.lane.b32.xlu1 %v6600_v25, %s6391_s17  ;;  %v8927_v25 = vld [vmem:[#allocation35_spill] sm:$0xff]  ;;  %s6325_s17 = scalar_lea.hbm %s8750_s3, 64 }
 0x8fc   : > { %v8129_v9 = vpop.eup %6179  ;;  %v4119_v50 = vmul.f32 %v6178_v13, %v8044_v40  ;;  %v8929_v33 = vpack.i.bf16 %v8927_v25, %v8928_v44  ;;  %v4065_v40 = vpop.xlane.xlu1 %4064 }
 0x8fd   : > { %v4084_v41 = vsel %vm392_vm1, %v8129_v9, 0.0  ;;  %v8142_v19 = vpop.eup %6181 }
 0x8fe   : > { %5541 = vmatmul.msk.f32.vlgmr.msra.gmra.mxu2 %vm392_vm1, %v4119_v50  ;;  %v4087_v57 = vsel %vm392_vm1, %v8142_v19, 0.0  ;;  %v8150_v16 = vpop.eup %6183 }
 0x8ff   : > { %v4099_v26 = vsel %vm392_vm1, %v8150_v16, 0.0 }
 0x900   : > { %4085 = vadd.xlane.f32.xlu2 %v4084_v41 }
 0x903   : > { %5865 = vrot.lane.b32.xlu0 %v5864_v3, %s6392_s20  ;;  %5850 = vrot.lane.b32.xlu1 %v8929_v33, %s6393_s21  ;;  %v4068_v3 = vpop.xlane.xlu0 %4067 }
 0x904   : > { %v4077_v2 = vpop.xlane.xlu1 %4076 }
 0x908   : > { %4088 = vadd.xlane.f32.xlu2 %v4087_v57 }
 0x90b   : > { %5860 = vrot.lane.b32.xlu1 %v8932_v62, %s6393_s21 }
 0x90f   : > { %v5826_v23 = vpop.permute.xlu0 %5825 }
 0x910   : > { %4100 = vadd.xlane.f32.xlu2 %v4099_v26  ;;  %v5827_v45 = vunpack.i.l.bf16 %v5826_v23  ;;  %v5828_v44 = vunpack.i.h.bf16 %v5826_v23  ;;  %v8938_v26 = vld [vmem:[#allocation23_spill] sm:$0xff] }
 0x912   : > { %v4062_v24 = vpop.xlane.xlu2 %4061 }
 0x913   : > { %6185 = vrcp.f32 %v4062_v24  ;;  %5890 = vrot.lane.b32.xlu1 %v8935_v22, %s6393_s21  ;;  %v8939_v24 = vld [vmem:[#allocation20_spill] sm:$0xff] }
 0x914   : > { %6187 = vrcp.f32 %v4056_v43  ;;  %v8936_v43 = vld [vmem:[#allocation32_spill] sm:$0xff]  ;;  %v5869_v17 = vpack.i.bf16 %v8939_v24, %v8938_v26 }
 0x915   : > { %v5839_v25 = vpack.i.bf16 %v8937_v0, %v8936_v43 }
 0x917   : > { %v5831_v30 = vpop.permute.xlu0 %5830 }
 0x918   : > { %v5832_v50 = vunpack.i.l.bf16 %v5831_v30  ;;  %v5833_v33 = vunpack.i.h.bf16 %v5831_v30 }
 0x919   : > { %v6186_v54 = vpop.eup %6185 }
 0x91a   : > { %v6188_v47 = vpop.eup %6187  ;;  %v4120_v39 = vmul.f32 %v6186_v54, %v8062_v31  ;;  %v4071_v28 = vpop.xlane.xlu2 %4070 }
 0x91b   : > { %v5816_v58 = vpop.permute.xlu1 %5815  ;;  %6189 = vrcp.f32 %v4071_v28  ;;  %v4118_v10 = vmul.f32 %v6188_v47, %v8039_v5 }
 0x91c   : > { %6191 = vrcp.f32 %v4068_v3  ;;  %v5818_v20 = vunpack.i.h.bf16 %v5816_v58  ;;  %v5817_v21 = vunpack.i.l.bf16 %v5816_v58  ;;  %5542 = vmatmul.msk.f32.vlgmr.msra.gmra.mxu3 %vm392_vm1, %v4120_v39 }
 0x91d   : > { %6193 = vrcp.f32 %v4065_v40 }
 0x91e   : > { %4155 = vmatpush.msra.mxu1 %v5817_v21  ;;  %4285 = vmatpush.msrb.mxu2 %v5818_v20 }
 0x91f   : > { %5540 = vmatmul.msk.f32.vlgmr.msra.gmra.mxu1 %vm392_vm1, %v4118_v10 }
 0x920   : > { %4389 = vmatpush.msra.mxu2 %v5827_v45 }
 0x921   : > { %v6190_v15 = vpop.eup %6189 }
 0x922   : > { %v6192_v11 = vpop.eup %6191  ;;  %v4123_v31 = vmul.f32 %v6190_v15, %v8069_v29  ;;  %v4074_v13 = vpop.xlane.xlu2 %4073 }
 0x923   : > { %v5821_v61 = vpop.permute.xlu1 %5820  ;;  %6195 = vrcp.f32 %v4074_v13  ;;  %v4122_v5 = vmul.f32 %v6192_v11, %v8048_v18  ;;  %v6194_v57 = vpop.eup %6193 }
 0x924   : > { %v5823_v41 = vunpack.i.h.bf16 %v5821_v61  ;;  %5545 = vmatmul.msk.f32.vlgmr.msrb.gmra.mxu2 %vm392_vm1, %v4123_v31  ;;  %6197 = vrcp.f32 %v4077_v2  ;;  %v4121_v18 = vmul.f32 %v6194_v57, %v8050_v63  ;;  %v5822_v3 = vunpack.i.l.bf16 %v5821_v61 }
 0x925   : > { %4493 = vmatpush.msrb.mxu2 %v5832_v50 }
 0x926   : > { %4259 = vmatpush.msrb.mxu1 %v5823_v41 }
 0x927   : > { %5544 = vmatmul.msk.f32.vlgmr.msrb.gmra.mxu1 %vm392_vm1, %v4122_v5 }
 0x928   : > { %4363 = vmatpush.msra.mxu1 %v5828_v44  ;;  %5840 = vrot.lane.b32.xlu2 %v5839_v25, %s6393_s21 }
 0x929   : > { %v6196_v29 = vpop.eup %6195 }
 0x92a   : > { %4467 = vmatpush.msrb.mxu1 %v5833_v33  ;;  %v5811_v40 = vpop.permute.xlu2 %5810  ;;  %v4124_v62 = vmul.f32 %v6196_v29, %v8079_v6  ;;  %v6198_v2 = vpop.eup %6197 }
 0x92b   : > { %v5813_v55 = vunpack.i.h.bf16 %v5811_v40  ;;  %v5812_v51 = vunpack.i.l.bf16 %v5811_v40  ;;  %v4125_v4 = vmul.f32 %v6198_v2, %v8056_v12  ;;  %v5589_v2 = vld [vmem:[#allocation7] sm:$0xff] }
 0x92d   : > { %4233 = vmatpush.msrb.mxu0 %v5812_v51  ;;  %4311 = vmatpush.msrb.mxu3 %v5813_v55  ;;  %v8945_v51 = vld [vmem:[#allocation58_spill] sm:$0xff] }
 0x92e   : > { %5543 = vmatmul.msk.f32.vlgmr.msrb.gmra.mxu0 %vm392_vm1, %v4121_v18  ;;  %5546 = vmatmul.msk.f32.vlgmr.msrb.gmra.mxu3 %vm392_vm1, %v4124_v62  ;;  %v8946_v18 = vld [vmem:[#allocation60_spill] sm:$0xff] }
 0x92f   : > { %4337 = vmatpush.msra.mxu0 %v5822_v3  ;;  %v8947_v62 = vpack.i.bf16 %v8945_v51, %v8946_v18 }
 0x930   : > { %5870 = vrot.lane.b32.xlu2 %v5869_v17, %s6393_s21 }
 0x936   : > { %5547 = vmatmul.msk.f32.vlgmr.msra.gmra.mxu0 %vm392_vm1, %v4125_v4 }
 0x942   : > { %v4095_v63 = vpop.xlane.xlu0 %4094 }
 0x94d   : > { %v4080_v6 = vpop.xlane.xlu1 %4079 }
 0x94e   : > { %6199 = vrcp.f32 %v4080_v6 }
 0x954   : > { %v6200_v22 = vpop.eup %6199 }
 0x955   : > { %v5836_v23 = vpop.permute.xlu0 %5835  ;;  %v4126_v54 = vmul.f32 %v6200_v22, %v8096_v53  ;;  %v4098_v12 = vpop.xlane.xlu1 %4097 }
 0x956   : > { %v5838_v47 = vunpack.i.h.bf16 %v5836_v23  ;;  %v5837_v39 = vunpack.i.l.bf16 %v5836_v23 }
 0x957   : > { %5548 = vmatmul.msk.f32.vlgmr.msra.gmra.mxu1 %vm392_vm1, %v4126_v54 }
 0x958   : > { %4415 = vmatpush.msra.mxu3 %v5837_v39  ;;  %4441 = vmatpush.msrb.mxu0 %v5838_v47  ;;  %v8948_v39 = vld [vmem:[#allocation30_spill] sm:$0xff] }
 0x95d   : > { %v4525_v28 = vpop.permute.xlu0 %4524 }
 0x95e   : > { %4545 = vmatpush.msra.mxu0 %v4525_v28 }
 0x963   : > { %v4083_v58 = vpop.xlane.xlu2 %4082 }
 0x964   : > { %6201 = vrcp.f32 %v4083_v58  ;;  %v8949_v58 = vld [vmem:[#allocation47_spill] sm:$0xff] }
 0x965   : > { %6203 = vrcp.f32 %v4095_v63  ;;  %v5846_v4 = vpop.permute.xlu0 %5845 }
 0x96a   : > { %v6202_v20 = vpop.eup %6201 }
 0x96b   : > { %v4127_v21 = vmul.f32 %v6202_v20, %v8111_v27  ;;  %v4092_v10 = vpop.xlane.xlu2 %4091  ;;  %v6204_v45 = vpop.eup %6203 }
 0x96c   : > { %6205 = vrcp.f32 %v4092_v10  ;;  %v4131_v15 = vmul.f32 %v6204_v45, %v8091_v35  ;;  %v5847_v10 = vunpack.i.l.bf16 %v5846_v4 }
 0x96d   : > { %5549 = vmatmul.msk.f32.vlgmr.msra.gmra.mxu2 %vm392_vm1, %v4127_v21  ;;  %v4499_v53 = vpop.permute.xlu1 %4498  ;;  %v5856_v6 = vpop.permute.xlu0 %5855  ;;  %v5848_v21 = vunpack.i.h.bf16 %v5846_v4 }
 0x96e   : > { %4519 = vmatpush.msrb.mxu3 %v4499_v53 }
 0x972   : > { %v6206_v30 = vpop.eup %6205 }
 0x973   : > { %v4130_v11 = vmul.f32 %v6206_v30, %v8120_v52  ;;  %v4086_v31 = vpop.xlane.xlu2 %4085 }
 0x974   : > { %6207 = vrcp.f32 %v4086_v31 }
 0x975   : > { %5552 = vmatmul.msk.f32.vlgmr.msrb.gmra.mxu1 %vm392_vm1, %v4130_v11  ;;  %5553 = vmatmul.msk.f32.vlgmr.msrb.gmra.mxu2 %vm392_vm1, %v4131_v15  ;;  %6209 = vrcp.f32 %v4098_v12  ;;  %v8237_v23 = vpop.permute.xlu0 %5865 }
 0x97a   : > { %v6208_v13 = vpop.eup %6207 }
 0x97b   : > { %v4128_v27 = vmul.f32 %v6208_v13, %v8129_v9  ;;  %v4089_v50 = vpop.xlane.xlu2 %4088  ;;  %v6210_v61 = vpop.eup %6209 }
 0x97c   : > { %6211 = vrcp.f32 %v4089_v50  ;;  %v4132_v35 = vmul.f32 %v6210_v61, %v8101_v7 }
 0x97d   : > { %5550 = vmatmul.msk.f32.vlgmr.msra.gmra.mxu3 %vm392_vm1, %v4128_v27 }
 0x981   : > { %v4183_v9 = vpop.f32.mrf.mxu2 }
 0x982   : > { %v6212_v41 = vpop.eup %6211 }
 0x983   : > { %v4129_v52 = vmul.f32 %v6212_v41, %v8142_v19  ;;  %v4101_v5 = vpop.xlane.xlu2 %4100 }
 0x984   : > { %6213 = vrcp.f32 %v4101_v5 }
 0x985   : > { %5551 = vmatmul.msk.f32.vlgmr.msrb.gmra.mxu0 %vm392_vm1, %v4129_v52  ;;  %5554 = vmatmul.msk.f32.vlgmr.msrb.gmra.mxu3 %vm392_vm1, %v4132_v35 }
 0x98a   : > { %v6214_v43 = vpop.eup %6213 }
 0x98b   : > { %v4133_v0 = vmul.f32 %v6214_v43, %v8150_v16  ;;  %v5841_v22 = vpop.permute.xlu2 %5840  ;;  %v8950_v43 = vld [vmem:[#allocation43_spill] sm:$0xff] }
 0x98c   : > { %v5843_v54 = vunpack.i.h.bf16 %v5841_v22  ;;  %v5842_v47 = vunpack.i.l.bf16 %v5841_v22 }
 0x98d   : > { %5555 = vmatmul.msk.f32.vlgmr.msra.gmra.mxu0 %vm392_vm1, %v4133_v0 }
 0x98e   : > { %v4749_v28 = vsel %vm392_vm1, %v8948_v39, %v5843_v54  ;;  %v4748_v12 = vsel %vm392_vm1, %v8949_v58, %v5842_v47  ;;  %v8954_v54 = vld [vmem:[#allocation28_spill] sm:$0xff]  ;;  %v8955_v39 = vld [vmem:[#allocation34_spill] sm:$0xff] }
 0x98f   : > { %v4765_v15 = vsel %vm4758_vm3, %v4748_v12, %v5847_v10  ;;  %v4766_v11 = vsel %vm4758_vm3, %v4749_v28, %v5848_v21 }
 0x993   : > { %v5871_v20 = vpop.permute.xlu2 %5870 }
 0x994   : > { %v5873_v50 = vunpack.i.h.bf16 %v5871_v20  ;;  %v5872_v61 = vunpack.i.l.bf16 %v5871_v20 }
 0x996   : > { %v4743_v0 = vsel %vm392_vm1, %v8950_v43, %v5873_v50 }
 0x99c   : > { %v4157_v25 = vpop.f32.mrf.mxu1 }
 0x99d   : > { %v5884_v44 = vpack.i.bf16 %v4183_v9, %v4157_v25  ;;  %v8951_v9 = vld [vmem:[#allocation44_spill] sm:$0xff] }
 0x99e   : > { %v4742_v25 = vsel %vm392_vm1, %v8951_v9, %v5872_v61  ;;  %v8957_v61 = vld [vmem:[#allocation51_spill] sm:$0xff]  ;;  %v5867_v9 = vunpack.i.l.bf16 %v8237_v23 }
 0x99f   : > { %5885 = vrot.lane.b32.xlu2 %v5884_v44, %s6394_s22  ;;  %v4209_v7 = vpop.f32.mrf.mxu3 }
 0x9a4   : > { %v4261_v36 = vpop.f32.mrf.mxu1 }
 0x9a7   : > { %v4287_v59 = vpop.f32.mrf.mxu2 }
 0x9a8   : > { %v5954_v63 = vpack.i.bf16 %v4287_v59, %v4261_v36  ;;  %v5851_v36 = vpop.permute.xlu1 %5850 }
 0x9a9   : > { %v5853_v59 = vunpack.i.h.bf16 %v5851_v36 }
 0x9ab   : > { %v4235_v33 = vpop.f32.mrf.mxu0 }
 0x9ac   : > { %v5944_v19 = vpack.i.bf16 %v4235_v33, %v4209_v7 }
 0x9b0   : > { %v5861_v18 = vpop.permute.xlu1 %5860 }
 0x9b1   : > { %v4313_v57 = vpop.f32.mrf.mxu3  ;;  %v5863_v20 = vunpack.i.h.bf16 %v5861_v18  ;;  %v5862_v21 = vunpack.i.l.bf16 %v5861_v18 }
 0x9b3   : > { %v4339_v29 = vpop.f32.mrf.mxu0 }
 0x9b4   : > { %v5874_v40 = vpack.i.bf16 %v4339_v29, %v4313_v57 }
 0x9b6   : > { %5875 = vrot.lane.b32.xlu0 %v5874_v40, %s6394_s22 }
 0x9be   : > { %5880 = vrot.lane.b32.xlu0 %v5879_v42, %s6392_s20 }
 0x9c6   : > { %5895 = vrot.lane.b32.xlu0 %v5894_v48, %s6392_s20  ;;  %v5590_v48 = vld [vmem:[#allocation7 + $0x8] sm:$0xff] }
 0x9c7   : > { %5594 = vmatpush.bf16.msra.mxu2 %v5590_v48  ;;  %4846 = vmatpush.bf16.msrb.mxu0 %v5590_v48 }
 0x9c8   : > { %5593 = vmatpush.bf16.msra.mxu1 %v5590_v48  ;;  %5595 = vmatpush.bf16.msra.mxu3 %v5590_v48  ;;  %v8953_v48 = vld [vmem:[#allocation45_spill] sm:$0xff] }
 0x9cb   : > { %5597 = vmatpush.bf16.msra.mxu2 %v5589_v2  ;;  %4847 = vmatpush.bf16.msrb.mxu0 %v5589_v2 }
 0x9cc   : > { %5596 = vmatpush.bf16.msra.mxu1 %v5589_v2  ;;  %5598 = vmatpush.bf16.msra.mxu3 %v5589_v2 }
 0x9ce   : > { %5915 = vrot.lane.b32.xlu0 %v5914_v8, %s6392_s20  ;;  %v8944_v8 = vld [vmem:[#allocation40_spill] sm:$0xff] }
 0x9d4   : > { %v4365_v42 = vpop.f32.mrf.mxu1 }
 0x9d6   : > { %5925 = vrot.lane.b32.xlu0 %v5924_v37, %s6392_s20  ;;  %v8941_v37 = vld [vmem:[#allocation21_spill] sm:$0xff] }
 0x9d7   : > { %v8942_v56 = vpack.i.bf16 %v8940_v34, %v8941_v37  ;;  %v5857_v34 = vunpack.i.l.bf16 %v5856_v6 }
 0x9de   : > { %5950 = vrot.lane.b32.xlu0 %v5949_v49, %s6392_s20  ;;  %v8943_v49 = vld [vmem:[#allocation18_spill] sm:$0xff] }
 0x9df   : > { %v5929_v16 = vpack.i.bf16 %v8944_v8, %v8943_v49 }
 0x9f0   : > { %v4391_v14 = vpop.f32.mrf.mxu2 }
 0x9f1   : > { %v5899_v46 = vpack.i.bf16 %v4391_v14, %v4365_v42  ;;  %v5852_v42 = vunpack.i.l.bf16 %v5851_v36  ;;  %v8952_v14 = vld [vmem:[#allocation48_spill] sm:$0xff] }
 0x9f2   : > { %v4469_v1 = vpop.f32.mrf.mxu1 }
 0x9f3   : > { %5900 = vrot.lane.b32.xlu2 %v5899_v46, %s6394_s22  ;;  %v4751_v46 = vsel %vm392_vm1, %v8952_v14, %v5853_v59 }
 0x9f8   : > { %v4495_v60 = vpop.f32.mrf.mxu2 }
 0x9f9   : > { %v5904_v32 = vpack.i.bf16 %v4495_v60, %v4469_v1  ;;  %v5886_v41 = vpop.permute.xlu2 %5885  ;;  %v4750_v1 = vsel %vm392_vm1, %v8953_v48, %v5852_v42 }
 0x9fa   : > { %v5888_v44 = vunpack.i.h.bf16 %v5886_v41  ;;  %v5887_v7 = vunpack.i.l.bf16 %v5886_v41  ;;  %v4767_v49 = vsel %vm4758_vm3, %v4750_v1, %v5857_v34  ;;  %v4754_v41 = vsel %vm392_vm1, %v8957_v61, %v5862_v21 }
 0x9fb   : > { %5920 = vrot.lane.b32.xlu2 %v8942_v56, %s6393_s21  ;;  %5905 = vrot.lane.b32.xlu1 %v5904_v32, %s6394_s22  ;;  %v5858_v32 = vunpack.i.h.bf16 %v5856_v6  ;;  %v4771_v36 = vsel %vm4758_vm3, %v4754_v41, %v5867_v9 }
 0x9fd   : > { %v4768_v8 = vsel %vm4758_vm3, %v4751_v46, %v5858_v32 }
 0xa00   : > { %v4417_v38 = vpop.f32.mrf.mxu3 }
 0xa02   : > { %v4443_v55 = vpop.f32.mrf.mxu0 }
 0xa03   : > { %5930 = vrot.lane.b32.xlu2 %v5929_v16, %s6393_s21  ;;  %5910 = vrot.lane.b32.xlu1 %v8947_v62, %s6393_s21  ;;  %v5934_v3 = vpack.i.bf16 %v4443_v55, %v4417_v38 }
 0xa08   : > { %v4521_v26 = vpop.f32.mrf.mxu3 }
 0xa0a   : > { %v4547_v24 = vpop.f32.mrf.mxu0 }
 0xa0b   : > { %v5939_v17 = vpack.i.bf16 %v4547_v24, %v4521_v26  ;;  %5935 = vrot.lane.b32.xlu2 %v5934_v3, %s6394_s22  ;;  %v5891_v24 = vpop.permute.xlu1 %5890 }
 0xa0c   : > { %v5893_v2 = vunpack.i.h.bf16 %v5891_v24  ;;  %v5892_v4 = vunpack.i.l.bf16 %v5891_v24 }
 0xa0d   : > { %5940 = vrot.lane.b32.xlu1 %v5939_v17, %s6394_s22 }
 0xa0e   : > { %v4753_v47 = vsel %vm392_vm1, %v8954_v54, %v5893_v2  ;;  %v4752_v28 = vsel %vm392_vm1, %v8955_v39, %v5892_v4  ;;  %v8962_v39 = vld [vmem:[#allocation46_spill] sm:$0xff] }
 0xa13   : > { %5955 = vrot.lane.b32.xlu2 %v5954_v63, %s6394_s22 }
 0xa15   : > { %5945 = vrot.lane.b32.xlu1 %v5944_v19, %s6394_s22 }
 0xa28   : > { %v5876_v53 = vpop.permute.xlu0 %5875 }
 0xa29   : > { %v5878_v45 = vunpack.i.h.bf16 %v5876_v53  ;;  %v5877_v30 = vunpack.i.l.bf16 %v5876_v53 }
 0xa2b   : > { %v4783_v31 = vsel %vm4775_vm2, %v4766_v11, %v5878_v45  ;;  %v4782_v13 = vsel %vm4775_vm2, %v4765_v15, %v5877_v30 }
 0xa2c   : > { %v4795_v27 = vpack.c.bf16 %v4783_v31, %v4782_v13 }
 0xa2e   : > { %5567 = vmatmul.msk.bf16.vlgmr.msra.gmra.mxu2 %vm299_vm0, %v4795_v27  ;;  %v8956_v27 = vld [vmem:[#allocation37_spill] sm:$0xff] }
 0xa2f   : > { %v4755_v50 = vsel %vm392_vm1, %v8956_v27, %v5863_v20 }
 0xa30   : > { %v5881_v35 = vpop.permute.xlu0 %5880 }
 0xa31   : > { %v5883_v52 = vunpack.i.h.bf16 %v5881_v35  ;;  %v5882_v5 = vunpack.i.l.bf16 %v5881_v35  ;;  %v8958_v35 = vld [vmem:[#allocation36_spill] sm:$0xff] }
 0xa33   : > { %v4760_v33 = vsel %vm4758_vm3, %v4743_v0, %v5883_v52  ;;  %v4759_v19 = vsel %vm4758_vm3, %v4742_v25, %v5882_v5  ;;  %v8959_v5 = vld [vmem:[#allocation31_spill] sm:$0xff]  ;;  %v5868_v0 = vunpack.i.h.bf16 %v8237_v23 }
 0xa34   : > { %v4777_v57 = vsel %vm4775_vm2, %v4760_v33, %v5888_v44  ;;  %v4776_v29 = vsel %vm4775_vm2, %v4759_v19, %v5887_v7 }
 0xa35   : > { %v4792_v40 = vpack.c.bf16 %v4777_v57, %v4776_v29  ;;  %v4772_v59 = vsel %vm4758_vm3, %v4755_v50, %v5868_v0 }
 0xa37   : > { %5564 = vmatmul.msk.bf16.vlgmr.msrb.gmra.mxu0 %vm299_vm0, %v4792_v40 }
 0xa38   : > { %v5896_v60 = vpop.permute.xlu0 %5895 }
 0xa39   : > { %v5898_v63 = vunpack.i.h.bf16 %v5896_v60  ;;  %v5897_v6 = vunpack.i.l.bf16 %v5896_v60 }
 0xa3b   : > { %v4770_v10 = vsel %vm4758_vm3, %v4753_v47, %v5898_v63  ;;  %v4769_v53 = vsel %vm4758_vm3, %v4752_v28, %v5897_v6  ;;  %v8963_v28 = vld [vmem:[#allocation38_spill] sm:$0xff] }
 0xa40   : > { %v8268_v3 = vpop.permute.xlu0 %5915 }
 0xa48   : > { %v8270_v17 = vpop.permute.xlu0 %5925 }
 0xa49   : > { %v5927_v20 = vunpack.i.l.bf16 %v8270_v17 }
 0xa4d   : > { %v5901_v37 = vpop.permute.xlu2 %5900 }
 0xa4e   : > { %v5903_v56 = vunpack.i.h.bf16 %v5901_v37  ;;  %v5902_v38 = vunpack.i.l.bf16 %v5901_v37 }
 0xa50   : > { %v4785_v16 = vsel %vm4775_vm2, %v4768_v8, %v5903_v56  ;;  %v4784_v55 = vsel %vm4775_vm2, %v4767_v49, %v5902_v38  ;;  %v5951_v13 = vpop.permute.xlu0 %5950  ;;  %v8960_v38 = vld [vmem:[#allocation53_spill] sm:$0xff]  ;;  %v8961_v8 = vld [vmem:[#allocation42_spill] sm:$0xff] }
 0xa51   : > { %v4796_v51 = vpack.c.bf16 %v4785_v16, %v4784_v55  ;;  %v5953_v25 = vunpack.i.h.bf16 %v5951_v13  ;;  %v5952_v44 = vunpack.i.l.bf16 %v5951_v13  ;;  %v5918_v55 = vunpack.i.h.bf16 %v8268_v3 }
 0xa53   : > { %5568 = vmatmul.msk.bf16.gmra.mxu2 %vm299_vm0, %v4796_v51  ;;  %v5917_v51 = vunpack.i.l.bf16 %v8268_v3 }
 0xa55   : > { %v8266_v62 = vpop.permute.xlu2 %5920 }
 0xa56   : > { %v5923_v63 = vunpack.i.h.bf16 %v8266_v62  ;;  %v5922_v6 = vunpack.i.l.bf16 %v8266_v62 }
 0xa58   : > { %v4745_v3 = vsel %vm392_vm1, %v8962_v39, %v5923_v63 }
 0xa5d   : > { %v5931_v26 = vpop.permute.xlu2 %5930 }
 0xa5e   : > { %v5933_v45 = vunpack.i.h.bf16 %v5931_v26  ;;  %v5932_v30 = vunpack.i.l.bf16 %v5931_v26 }
 0xa60   : > { %v4747_v52 = vsel %vm392_vm1, %v8958_v35, %v5933_v45  ;;  %v4746_v43 = vsel %vm392_vm1, %v8959_v5, %v5932_v30 }
 0xa61   : > { %v4763_v42 = vsel %vm4758_vm3, %v4746_v43, %v5952_v44  ;;  %v4764_v14 = vsel %vm4758_vm3, %v4747_v52, %v5953_v25 }
 0xa65   : > { %v5936_v22 = vpop.permute.xlu2 %5935 }
 0xa66   : > { %v5938_v58 = vunpack.i.h.bf16 %v5936_v22  ;;  %v5937_v12 = vunpack.i.l.bf16 %v5936_v22 }
 0xa68   : > { %v4787_v15 = vsel %vm4775_vm2, %v4770_v10, %v5938_v58  ;;  %v4786_v11 = vsel %vm4775_vm2, %v4769_v53, %v5937_v12  ;;  %v4744_v58 = vsel %vm392_vm1, %v8963_v28, %v5922_v6  ;;  %v5928_v12 = vunpack.i.h.bf16 %v8270_v17 }
 0xa69   : > { %v4797_v31 = vpack.c.bf16 %v4787_v15, %v4786_v11  ;;  %v4761_v53 = vsel %vm4758_vm3, %v4744_v58, %v5927_v20 }
 0xa6a   : > { %v4762_v45 = vsel %vm4758_vm3, %v4745_v3, %v5928_v12 }
 0xa6b   : > { %5569 = vmatmul.msk.bf16.gmra.mxu2 %vm299_vm0, %v4797_v31 }
 0xa6d   : > { %v5906_v7 = vpop.permute.xlu1 %5905  ;;  %v5956_v33 = vpop.permute.xlu2 %5955 }
 0xa6e   : > { %v5908_v19 = vunpack.i.h.bf16 %v5906_v7  ;;  %v5907_v57 = vunpack.i.l.bf16 %v5906_v7  ;;  %v5958_v29 = vunpack.i.h.bf16 %v5956_v33  ;;  %v5957_v40 = vunpack.i.l.bf16 %v5956_v33 }
 0xa70   : > { %v4789_v46 = vsel %vm4775_vm2, %v4772_v59, %v5908_v19  ;;  %v4788_v23 = vsel %vm4775_vm2, %v4771_v36, %v5907_v57  ;;  %v4781_v48 = vsel %vm4775_vm2, %v4764_v14, %v5958_v29  ;;  %v4780_v1 = vsel %vm4775_vm2, %v4763_v42, %v5957_v40 }
 0xa71   : > { %v4798_v60 = vpack.c.bf16 %v4789_v46, %v4788_v23  ;;  %v4794_v32 = vpack.c.bf16 %v4781_v48, %v4780_v1 }
 0xa73   : > { %5566 = vmatmul.msk.bf16.vlgmr.msra.gmra.mxu1 %vm299_vm0, %v4794_v32  ;;  %5570 = vmatmul.msk.bf16.vlgmr.msra.gmra.mxu3 %vm299_vm0, %v4798_v60 }
 0xa75   : > { %v5911_v34 = vpop.permute.xlu1 %5910 }
 0xa76   : > { %v5913_v37 = vunpack.i.h.bf16 %v5911_v34  ;;  %v5912_v56 = vunpack.i.l.bf16 %v5911_v34 }
 0xa78   : > { %v4757_v49 = vsel %vm392_vm1, %v8960_v38, %v5913_v37  ;;  %v4756_v16 = vsel %vm392_vm1, %v8961_v8, %v5912_v56 }
 0xa79   : > { %v4773_v2 = vsel %vm4758_vm3, %v4756_v16, %v5917_v51  ;;  %v4774_v4 = vsel %vm4758_vm3, %v4757_v49, %v5918_v55 }
 0xa7f   : > { %v5941_v18 = vpop.permute.xlu1 %5940 }
 0xa80   : > { %v5943_v26 = vunpack.i.h.bf16 %v5941_v18  ;;  %v5942_v24 = vunpack.i.l.bf16 %v5941_v18 }
 0xa82   : > { %v4791_v22 = vsel %vm4775_vm2, %v4774_v4, %v5943_v26  ;;  %v4790_v54 = vsel %vm4775_vm2, %v4773_v2, %v5942_v24 }
 0xa83   : > { %v4799_v47 = vpack.c.bf16 %v4791_v22, %v4790_v54 }
 0xa85   : > { %5571 = vmatmul.msk.bf16.gmra.mxu3 %vm299_vm0, %v4799_v47 }
 0xa87   : > { %v5946_v21 = vpop.permute.xlu1 %5945 }
 0xa88   : > { %v5948_v10 = vunpack.i.h.bf16 %v5946_v21  ;;  %v5947_v62 = vunpack.i.l.bf16 %v5946_v21 }
 0xa8a   : > { %v4779_v30 = vsel %vm4775_vm2, %v4762_v45, %v5948_v10  ;;  %v4778_v15 = vsel %vm4775_vm2, %v4761_v53, %v5947_v62 }
 0xa8b   : > { %v4793_v11 = vpack.c.bf16 %v4779_v30, %v4778_v15 }
 0xa8d   : > { %5565 = vmatmul.msk.bf16.gmra.mxu0 %vm299_vm0, %v4793_v11 }
 0xab1   : > { %v8339_v35 = vpop.f32.mrf.mxu2 }
 0xab2   : > { %v5084_v14 = vrot.slane %v8339_v35, 7  ;;  %v4986_v46 = vrot.slane %v8339_v35, 4  ;;  %v4952_v23 = vrot.slane %v8339_v35, 3  ;;  %v5020_v48 = vrot.slane %v8339_v35, 5 }
 0xab3   : > { %v5054_v1 = vrot.slane %v8339_v35, 6  ;;  %v4920_v37 = vrot.slane %v8339_v35, 2 }
 0xab4   : > { %v8325_v31 = vpop.f32.mrf.mxu0 }
 0xab5   : > { %v5044_v17 = vrot.slane %v8325_v31, 4  ;;  %v4942_v60 = vrot.slane %v8325_v31, 1  ;;  %v4976_v32 = vrot.slane %v8325_v31, 2  ;;  %v5010_v34 = vrot.slane %v8325_v31, 3 }
 0xab6   : > { %v5074_v56 = vrot.slane %v8325_v31, 5  ;;  %v5108_v38 = vrot.slane %v8325_v31, 6  ;;  %v5142_v49 = vrot.slane %v8325_v31, 7 }
 0xab9   : > { %v8341_v52 = vpop.f32.mrf.mxu2 }
 0xaba   : > { %v5086_v55 = vrot.slane %v8341_v52, 6  ;;  %v4988_v51 = vrot.slane %v8341_v52, 3  ;;  %v4954_v26 = vrot.slane %v8341_v52, 2  ;;  %v5120_v2 = vrot.slane %v8341_v52, 7 }
 0xabb   : > { %v5056_v6 = vrot.slane %v8341_v52, 5 }
 0xabc   : > { %v8327_v13 = vpop.f32.mrf.mxu0 }
 0xabd   : > { %v4905_v27 = vrot.slane %v8327_v13, 7  ;;  %v5045_v50 = vrot.slane %v8327_v13, 3  ;;  %v4977_v4 = vrot.slane %v8327_v13, 1  ;;  %v5011_v63 = vrot.slane %v8327_v13, 2 }
 0xabe   : > { %v5075_v54 = vrot.slane %v8327_v13, 4  ;;  %v5109_v47 = vrot.slane %v8327_v13, 5  ;;  %v5143_v28 = vrot.slane %v8327_v13, 6  ;;  %v8398_v20 = vsel %vm4906_vm4, %v8327_v13, %v4942_v60 }
 0xabf   : > { %v8333_v61 = vsel %vm4906_vm4, %v5045_v50, %v5044_v17  ;;  %v8337_v41 = vsel %vm4906_vm4, %v4905_v27, %v8325_v31  ;;  %v8409_v15 = vsel %vm4906_vm4, %v4977_v4, %v4976_v32  ;;  %v8412_v11 = vsel %vm4906_vm4, %v5011_v63, %v5010_v34 }
 0xac0   : > { %v5076_v17 = vsel %vm4906_vm4, %v5075_v54, %v5074_v56 }
 0xad6   : > { %v8343_v5 = vpop.f32.mrf.mxu2 }
 0xad7   : > { %v5058_v25 = vrot.slane %v8343_v5, 4  ;;  %v4956_v50 = vrot.slane %v8343_v5, 1 }
 0xade   : > { %v8345_v43 = vpop.f32.mrf.mxu2 }
 0xadf   : > { %v4926_v0 = vrot.slane %v8345_v43, 7  ;;  %v5059_v9 = vrot.slane %v8345_v43, 3  ;;  %v4991_v53 = vrot.slane %v8345_v43, 1  ;;  %v5025_v45 = vrot.slane %v8345_v43, 2 }
 0xae0   : > { %v5089_v31 = vrot.slane %v8345_v43, 4  ;;  %v5123_v13 = vrot.slane %v8345_v43, 5 }
 0xae1   : > { %v4927_v44 = vsel %vm4906_vm4, %v4926_v0, %v8343_v5  ;;  %v5060_v7 = vsel %vm4906_vm4, %v5059_v9, %v5058_v25  ;;  %v4990_v0 = vrot.slane %v8343_v5, 2  ;;  %v5024_v9 = vrot.slane %v8343_v5, 3 }
 0xae2   : > { %v5157_v25 = vrot.slane %v8345_v43, 6 }
 0xae3   : > { %v4992_v60 = vsel %vm4906_vm4, %v4991_v53, %v4990_v0  ;;  %v8435_v32 = vsel %vm4906_vm4, %v5025_v45, %v5024_v9 }
 0xaee   : > { %v8353_v33 = vpop.f32.mrf.mxu2 }
 0xaef   : > { %v4928_v19 = vrot.slane %v8353_v33, 6  ;;  %v5061_v57 = vrot.slane %v8353_v33, 2  ;;  %v4958_v34 = vrot.slane %v8353_v33, 7 }
 0xaf0   : > { %v8406_v30 = vpop.f32.mrf.mxu1 }
 0xaf1   : > { %v4929_v29 = vsel %vm4909_vm5, %v4928_v19, %v4927_v44  ;;  %v5062_v40 = vsel %vm4909_vm5, %v5061_v57, %v5060_v7  ;;  %v5088_v44 = vrot.slane %v8343_v5, 5  ;;  %v5122_v7 = vrot.slane %v8343_v5, 6 }
 0xaf2   : > { %v5110_v19 = vsel %vm4906_vm4, %v5109_v47, %v5108_v38  ;;  %v8426_v57 = vsel %vm4906_vm4, %v5143_v28, %v5142_v49  ;;  %v5125_v38 = vrot.slane %v8353_v33, 4  ;;  %v5081_v47 = vrot.slane %v8406_v30, 1 }
 0xaf3   : > { %v5124_v56 = vsel %vm4906_vm4, %v5123_v13, %v5122_v7  ;;  %v8441_v49 = vsel %vm4906_vm4, %v5089_v31, %v5088_v44  ;;  %v4948_v28 = vrot.slane %v8406_v30, 5  ;;  %v4914_v53 = vrot.slane %v8406_v30, 4 }
 0xaf6   : > { %v8359_v36 = vpop.f32.mrf.mxu3  ;;  %v8361_v59 = vpop.f32.mrf.mxu2 }
 0xaf7   : > { %v4930_v42 = vrot.slane %v8361_v59, 5  ;;  %v5063_v8 = vrot.slane %v8361_v59, 1  ;;  %v4932_v22 = vrot.slane %v8359_v36, 4  ;;  %v4960_v45 = vrot.slane %v8361_v59, 6 }
 0xaf9   : > { %v4931_v18 = vsel %vm4912_vm6, %v4930_v42, %v4929_v29  ;;  %v5064_v12 = vsel %vm4912_vm6, %v5063_v8, %v5062_v40  ;;  %v5156_v29 = vrot.slane %v8343_v5, 7  ;;  %v4957_v42 = vsel %vm4906_vm4, %v8345_v43, %v4956_v50  ;;  %v8470_v50 = vpop.f32.mrf.mxu1 }
 0xafa   : > { %v4933_v58 = vsel %vm4915_vm7, %v4932_v22, %v4931_v18  ;;  %v5065_v10 = vsel %vm4915_vm7, %v8359_v36, %v5064_v12  ;;  %v8447_v43 = vsel %vm4909_vm5, %v8353_v33, %v4992_v60  ;;  %v4959_v12 = vsel %vm4909_vm5, %v4958_v34, %v4957_v42 }
 0xafb   : > { %v8451_v18 = vsel %vm4906_vm4, %v5157_v25, %v5156_v29  ;;  %v5117_v4 = vrot.slane %v8470_v50, 1 }
 0xafe   : > { %v8377_v16 = vpop.f32.mrf.mxu3 }
 0xaff   : > { %v4934_v3 = vrot.slane %v8377_v16, 3  ;;  %v5066_v62 = vrot.slane %v8377_v16, 7  ;;  %v4964_v63 = vrot.slane %v8377_v16, 4 }
 0xb01   : > { %v4935_v21 = vsel %vm4918_vm8, %v4934_v3, %v4933_v58  ;;  %v5067_v27 = vsel %vm4918_vm8, %v5066_v62, %v5065_v10  ;;  %v4982_v3 = vrot.slane %v8406_v30, 6  ;;  %v5016_v58 = vrot.slane %v8406_v30, 7 }
 0xb02   : > { %v5115_v10 = vrot.slane %v8406_v30, 2  ;;  %v8464_v62 = vsel %vm4909_vm5, %v5125_v38, %v5124_v56  ;;  %v4984_v38 = vrot.slane %v8470_v50, 5 }
 0xb08   : > { %v8429_v40 = vpop.f32.mrf.mxu3 }
 0xb09   : > { %v4936_v22 = vrot.slane %v8429_v40, 2  ;;  %v5068_v54 = vrot.slane %v8429_v40, 6 }
 0xb0a   : > { %v8443_v5 = vpop.f32.mrf.mxu0 }
 0xb0b   : > { %v5047_v0 = vrot.slane %v8443_v5, 2  ;;  %v5077_v9 = vrot.slane %v8443_v5, 3  ;;  %v4908_v25 = vrot.slane %v8443_v5, 6  ;;  %v8476_v44 = vsel %vm4921_vm9, %v4936_v22, %v4935_v21 }
 0xb0c   : > { %v8479_v7 = vsel %vm4921_vm9, %v5068_v54, %v5067_v27  ;;  %v4944_v29 = vrot.slane %v8443_v5, 7  ;;  %v5013_v42 = vrot.slane %v8443_v5, 1  ;;  %v5111_v60 = vrot.slane %v8443_v5, 4 }
 0xb0d   : > { %v5048_v34 = vsel %vm4909_vm5, %v5047_v0, %v8333_v61  ;;  %v4950_v21 = vrot.slane %v8470_v50, 4  ;;  %v4962_v22 = vrot.slane %v8359_v36, 5  ;;  %v4961_v54 = vsel %vm4912_vm6, %v4960_v45, %v4959_v12 }
 0xb0e   : > { %v4910_v31 = vsel %vm4909_vm5, %v4908_v25, %v8337_v41  ;;  %v5078_v13 = vsel %vm4909_vm5, %v5077_v9, %v5076_v17  ;;  %v4979_v56 = vsel %vm4909_vm5, %v8443_v5, %v8409_v15  ;;  %v4945_v12 = vsel %vm4909_vm5, %v4944_v29, %v8398_v20 }
 0xb0f   : > { %v5014_v45 = vsel %vm4909_vm5, %v5013_v42, %v8412_v11  ;;  %v5112_v41 = vsel %vm4909_vm5, %v5111_v60, %v5110_v19 }
 0xb10   : > { %v8518_v11 = vpop.f32.mrf.mxu3 }
 0xb12   : > { %v8490_v27 = vpop.f32.mrf.mxu0 }
 0xb13   : > { %v4946_v61 = vrot.slane %v8490_v27, 6  ;;  %v4980_v0 = vrot.slane %v8490_v27, 7  ;;  %v5079_v8 = vrot.slane %v8490_v27, 2  ;;  %v5113_v25 = vrot.slane %v8490_v27, 3 }
 0xb14   : > { %v5015_v9 = vsel %vm4912_vm6, %v8490_v27, %v5014_v45  ;;  %v4911_v15 = vrot.slane %v8490_v27, 5  ;;  %v5049_v19 = vrot.slane %v8490_v27, 1 }
 0xb15   : > { %v4981_v24 = vsel %vm4912_vm6, %v4980_v0, %v4979_v56  ;;  %v4947_v17 = vsel %vm4912_vm6, %v4946_v61, %v4945_v12  ;;  %v5080_v39 = vsel %vm4912_vm6, %v5079_v8, %v5078_v13  ;;  %v4966_v0 = vrot.slane %v8429_v40, 3 }
 0xb16   : > { %v4983_v20 = vsel %vm4915_vm7, %v4982_v3, %v4981_v24  ;;  %v4949_v29 = vsel %vm4915_vm7, %v4948_v28, %v4947_v17  ;;  %v5082_v42 = vsel %vm4915_vm7, %v5081_v47, %v5080_v39  ;;  %v5017_v3 = vsel %vm4915_vm7, %v5016_v58, %v5015_v9 }
 0xb17   : > { %v4985_v60 = vsel %vm4918_vm8, %v4984_v38, %v4983_v20  ;;  %v4951_v56 = vsel %vm4918_vm8, %v4950_v21, %v4949_v29  ;;  %v5083_v61 = vsel %vm4918_vm8, %v8470_v50, %v5082_v42  ;;  %v5052_v38 = vrot.slane %v8470_v50, 7 }
 0xb18   : > { %v4987_v8 = vsel %vm4921_vm9, %v4986_v46, %v4985_v60  ;;  %v4953_v24 = vsel %vm4921_vm9, %v4952_v23, %v4951_v56  ;;  %v5085_v39 = vsel %vm4921_vm9, %v5084_v14, %v5083_v61  ;;  %v5114_v46 = vsel %vm4912_vm6, %v5113_v25, %v5112_v41 }
 0xb19   : > { %v4989_v47 = vsel %vm4924_vm10, %v4988_v51, %v4987_v8  ;;  %v4955_v28 = vsel %vm4924_vm10, %v4954_v26, %v4953_v24  ;;  %v5087_v23 = vsel %vm4924_vm10, %v5086_v55, %v5085_v39  ;;  %v5018_v14 = vrot.slane %v8470_v50, 6 }
 0xb1a   : > { %5004 = vrot.lane.b32.xlu0 %v4989_v47, %s6382_s23  ;;  %4970 = vrot.lane.b32.xlu1 %v4955_v28, %s6395_s24  ;;  %v5116_v58 = vsel %vm4915_vm7, %v5115_v10, %v5114_v46  ;;  %v4938_v51 = vrot.slane %v8518_v11, 1  ;;  %v4963_v26 = vsel %vm4915_vm7, %v4962_v22, %v4961_v54  ;;  %v5070_v55 = vrot.slane %v8518_v11, 5 }
 0xb1b   : > { %5102 = vrot.lane.b32.xlu2 %v5087_v23, %s6395_s24  ;;  %v5118_v13 = vsel %vm4918_vm8, %v5117_v4, %v5116_v58  ;;  %v5019_v21 = vsel %vm4918_vm8, %v5018_v14, %v5017_v3  ;;  %v5050_v12 = vsel %vm4912_vm6, %v5049_v19, %v5048_v34  ;;  %v4917_v10 = vrot.slane %v8470_v50, 3 }
 0xb1c   : > { %v4965_v45 = vsel %vm4918_vm8, %v4964_v63, %v4963_v26  ;;  %v4968_v41 = vrot.slane %v8518_v11, 2  ;;  %v5051_v22 = vsel %vm4915_vm7, %v8406_v30, %v5050_v12  ;;  %v4913_v4 = vsel %vm4912_vm6, %v4911_v15, %v4910_v31 }
 0xb1d   : > { %v5119_v54 = vsel %vm4921_vm9, %v8339_v35, %v5118_v13  ;;  %v5053_v25 = vsel %vm4918_vm8, %v5052_v38, %v5051_v22  ;;  %v4916_v34 = vsel %vm4915_vm7, %v4914_v53, %v4913_v4  ;;  %v8573_v17 = vsel %vm4924_vm10, %v4938_v51, %v8476_v44 }
 0xb1e   : > { %v5021_v63 = vsel %vm4921_vm9, %v5020_v48, %v5019_v21  ;;  %v5055_v31 = vsel %vm4921_vm9, %v5054_v1, %v5053_v25  ;;  %v4919_v9 = vsel %vm4918_vm8, %v4917_v10, %v4916_v34  ;;  %v8584_v15 = vsel %vm4924_vm10, %v5070_v55, %v8479_v7 }
 0xb1f   : > { %v4967_v53 = vsel %vm4921_vm9, %v4966_v0, %v4965_v45  ;;  %v5145_v20 = vrot.slane %v8443_v5, 5  ;;  %v8591_v44 = vsel %vm4924_vm10, %v5056_v6, %v5055_v31  ;;  %v4922_v48 = vsel %vm4921_vm9, %v4920_v37, %v4919_v9 }
 0xb20   : > { %v5147_v1 = vrot.slane %v8490_v27, 4  ;;  %v4969_v29 = vsel %vm4924_vm10, %v4968_v41, %v4967_v53  ;;  %v5121_v7 = vsel %vm4924_vm10, %v5120_v2, %v5119_v54  ;;  %v8964_v19 = vrot.slane %v8341_v52, 1 }
 0xb21   : > { %v8965_v6 = vrot.slane %v8341_v52, 4  ;;  %v5129_v37 = vrot.slane %v8359_v36, 2  ;;  %v8966_v27 = vrot.slane %v8353_v33, 3  ;;  %v5095_v60 = vrot.slane %v8359_v36, 1 }
 0xb22   : > { %v8604_v5 = vsel %vm4924_vm10, %v8964_v19, %v4922_v48  ;;  %4972 = vrot.lane.b32.xlu0 %v4969_v29, %s6395_s24  ;;  %5136 = vrot.lane.b32.xlu1 %v5121_v7, %s6382_s23  ;;  %v4996_v56 = vrot.slane %v8359_v36, 6  ;;  %v8967_v61 = vrot.slane %v8361_v59, 3  ;;  %v5131_v24 = vrot.slane %v8377_v16, 1 }
 0xb23   : > { %v5023_v42 = vsel %vm4924_vm10, %v8965_v6, %v5021_v63  ;;  %v5092_v2 = vsel %vm4909_vm5, %v8966_v27, %v8441_v49  ;;  %v8968_v3 = vrot.slane %v8361_v59, 2  ;;  %v8969_v49 = vrot.slane %v8361_v59, 7 }
 0xb24   : > { %5038 = vrot.lane.b32.xlu2 %v5023_v42, %s6381_s18  ;;  %v5128_v8 = vsel %vm4912_vm6, %v8967_v61, %v8464_v62  ;;  %v4998_v28 = vrot.slane %v8377_v16, 5  ;;  %v5098_v46 = vrot.slane %v8429_v40, 7  ;;  %v5146_v23 = vsel %vm4909_vm5, %v5145_v20, %v8426_v57 }
 0xb25   : > { %v5094_v39 = vsel %vm4912_vm6, %v8968_v3, %v5092_v2  ;;  %v4995_v47 = vsel %vm4912_vm6, %v8969_v49, %v8447_v43  ;;  %v5000_v62 = vrot.slane %v8429_v40, 4  ;;  %v5134_v14 = vrot.slane %v8518_v11, 7 }
 0xb26   : > { %v5100_v58 = vrot.slane %v8518_v11, 6  ;;  %v5148_v51 = vsel %vm4912_vm6, %v5147_v1, %v5146_v23  ;;  %v5002_v26 = vrot.slane %v8518_v11, 3  ;;  %v5130_v13 = vsel %vm4915_vm7, %v5129_v37, %v5128_v8 }
 0xb27   : > { %v5096_v43 = vsel %vm4915_vm7, %v5095_v60, %v5094_v39  ;;  %v5149_v38 = vrot.slane %v8406_v30, 3  ;;  %v5161_v55 = vrot.slane %v8361_v59, 4  ;;  %v4997_v57 = vsel %vm4915_vm7, %v4996_v56, %v4995_v47 }
 0xb28   : > { %v5132_v21 = vsel %vm4918_vm8, %v5131_v24, %v5130_v13  ;;  %v5097_v0 = vsel %vm4918_vm8, %v8377_v16, %v5096_v43  ;;  %v4999_v12 = vsel %vm4918_vm8, %v4998_v28, %v4997_v57  ;;  %v5151_v54 = vrot.slane %v8470_v50, 2 }
 0xb29   : > { %v5133_v10 = vsel %vm4921_vm9, %v8429_v40, %v5132_v21  ;;  %v5099_v45 = vsel %vm4921_vm9, %v5098_v46, %v5097_v0  ;;  %v5150_v41 = vsel %vm4915_vm7, %v5149_v38, %v5148_v51  ;;  %v5001_v30 = vsel %vm4921_vm9, %v5000_v62, %v4999_v12 }
 0xb2a   : > { %v5135_v22 = vsel %vm4924_vm10, %v5134_v14, %v5133_v10  ;;  %v5101_v4 = vsel %vm4924_vm10, %v5100_v58, %v5099_v45  ;;  %v5003_v25 = vsel %vm4924_vm10, %v5002_v26, %v5001_v30  ;;  %v8970_v34 = vrot.slane %v8353_v33, 5 }
 0xb2b   : > { %5138 = vrot.lane.b32.xlu0 %v5135_v22, %s6382_s23  ;;  %5104 = vrot.lane.b32.xlu1 %v5101_v4, %s6395_s24  ;;  %v8971_v31 = vrot.slane %v8353_v33, 1  ;;  %v5030_v53 = vrot.slane %v8359_v36, 7  ;;  %v5163_v50 = vrot.slane %v8359_v36, 3  ;;  %v5152_v20 = vsel %vm4918_vm8, %v5151_v54, %v5150_v41 }
 0xb2c   : > { %v5160_v63 = vsel %vm4909_vm5, %v8970_v34, %v8451_v18  ;;  %5006 = vrot.lane.b32.xlu2 %v5003_v25, %s6382_s23  ;;  %v5032_v1 = vrot.slane %v8377_v16, 6  ;;  %v5165_v29 = vrot.slane %v8377_v16, 2  ;;  %v5153_v33 = vrot.slane %v8339_v35, 1 }
 0xb2d   : > { %v5028_v9 = vsel %vm4909_vm5, %v8971_v31, %v8435_v32  ;;  %v5162_v18 = vsel %vm4912_vm6, %v5161_v55, %v5160_v63  ;;  %v5034_v32 = vrot.slane %v8429_v40, 5  ;;  %v5167_v7 = vrot.slane %v8429_v40, 1 }
 0xb2e   : > { %v5029_v48 = vsel %vm4912_vm6, %v8361_v59, %v5028_v9  ;;  %v5036_v19 = vrot.slane %v8518_v11, 4  ;;  %v5154_v36 = vsel %vm4921_vm9, %v5153_v33, %v5152_v20  ;;  %v5164_v59 = vsel %vm4915_vm7, %v5163_v50, %v5162_v18 }
 0xb2f   : > { %v5031_v6 = vsel %vm4915_vm7, %v5030_v53, %v5029_v48  ;;  %v5166_v37 = vsel %vm4918_vm8, %v5165_v29, %v5164_v59  ;;  %v5155_v40 = vsel %vm4924_vm10, %v8341_v52, %v5154_v36 }
 0xb30   : > { %v5033_v42 = vsel %vm4918_vm8, %v5032_v1, %v5031_v6  ;;  %v5168_v35 = vsel %vm4921_vm9, %v5167_v7, %v5166_v37 }
 0xb31   : > { %v5035_v16 = vsel %vm4921_vm9, %v5034_v32, %v5033_v42  ;;  %v5169_v2 = vsel %vm4924_vm10, %v8518_v11, %v5168_v35 }
 0xb32   : > { %v5037_v27 = vsel %vm4924_vm10, %v5036_v19, %v5035_v16 }
 0xb33   : > { %5170 = vrot.lane.b32.xlu0 %v5155_v40, %s6381_s18  ;;  %5040 = vrot.lane.b32.xlu1 %v5037_v27, %s6381_s18 }
 0xb34   : > { %5172 = vrot.lane.b32.xlu2 %v5169_v2, %s6381_s18  ;;  %s5592_s18 = sshll.u32 %s6438_s16, 5  ;;  %s5195_s16 = scalar_lea.sflag [#allocation4], %s6522_s11 }
 0xb35   : > { %s5207_s30 = scalar_lea.hbm %s8750_s3, %s5592_s18 }
 0xb36   : > { %s5210_s27 = sshll.u32 %s5207_s30, 4  ;;  %s5211_s27 = int_to_ptr.hbm [resolvable:$true] %s5210_s27 }
 0xb37   : > { %s6319_s28 = sshra.s32 %s5211_s27, 4  ;;  %s6320_s28 = int_to_ptr.hbm [resolvable:$true] %s6319_s28 }
 0xb38   : > { %s6321_s4 = scalar_lea.hbm %s6320_s28, 32  ;;  %p6326_p11 = scmp.lt.s32.totalorder %s6320_s28, %s8750_s3 }
 0xb39   : > { %p6322_p1 = scmp.ne.s32.totalorder %s6320_s28, %s6321_s4  ;;  %p6327_p2 = scmp.lt.s32.totalorder %s6325_s17, %s6321_s4 }
 0xb3b   : > { %p6323_p4 = pnand %p6322_p1, %p6489_p3  ;;  %p6328_p9 = por %p6327_p2, %p6326_p11 }
 0xb3d   : > { %p6324_p8 = pneg %p6323_p4 }
 0xb3f   : > { %p6329_p10 = pnand %p6328_p9, %p6324_p8 }
 0xb75   : > { %v5103_v60 = vpop.permute.xlu2 %5102 }
 0xb76   : > { %v5184_v58 = vsel %vm299_vm0, %v8591_v44, %v5103_v60 }
 0xb7e   : > { %v5039_v56 = vpop.permute.xlu2 %5038 }
 0xb86   : > { %v5007_v3 = vpop.permute.xlu2 %5006 }
 0xb8c   : > { %v5005_v61 = vpop.permute.xlu0 %5004  ;;  %v4971_v8 = vpop.permute.xlu1 %4970 }
 0xb8d   : > { %v5176_v52 = vsel %vm299_vm0, %v8604_v5, %v4971_v8 }
 0xb8e   : > { %v5179_v24 = vsel %vm5178_vm11, %v5176_v52, %v5005_v61  ;;  %v5173_v23 = vpop.permute.xlu2 %5172 }
 0xb8f   : > { %v5182_v11 = vsel %vm5181_vm12, %v5179_v24, %v5039_v56 }
 0xb90   : > { %5190 = vst [vmem:[%s223_s5] sm:$0xff] %v5182_v11 }
 0xb94   : > { %v4973_v39 = vpop.permute.xlu0 %4972  ;;  %v5137_v49 = vpop.permute.xlu1 %5136 }
 0xb95   : > { %v5177_v14 = vsel %vm299_vm0, %v8573_v17, %v4973_v39 }
 0xb96   : > { %v5180_v26 = vsel %vm5178_vm11, %v5177_v14, %v5007_v3 }
 0xb9d   : > { %v5139_v47 = vpop.permute.xlu0 %5138  ;;  %v5105_v28 = vpop.permute.xlu1 %5104 }
 0xb9e   : > { %v5185_v46 = vsel %vm299_vm0, %v8584_v15, %v5105_v28  ;;  %v5186_v15 = vsel %vm5178_vm11, %v5184_v58, %v5137_v49 }
 0xb9f   : > { %v5187_v62 = vsel %vm5178_vm11, %v5185_v46, %v5139_v47 }
 0xba0   : > { %v5189_v5 = vsel %vm5181_vm12, %v5187_v62, %v5173_v23 }
 0xba1   : > { %5193 = vst [vmem:[%s223_s5 + $0x18] sm:$0xff] %v5189_v5 }
 0xba5   : > { %v5171_v51 = vpop.permute.xlu0 %5170  ;;  %v5041_v13 = vpop.permute.xlu1 %5040 }
 0xba6   : > { %v5188_v43 = vsel %vm5181_vm12, %v5186_v15, %v5171_v51  ;;  %v5183_v38 = vsel %vm5181_vm12, %v5180_v26, %v5041_v13 }
 0xba7   : > { %5191 = vst [vmem:[%s223_s5 + $0x8] sm:$0xff] %v5188_v43 }
 0xba8   : > { %5192 = vst [vmem:[%s223_s5 + $0x10] sm:$0xff] %v5183_v38 }
 0xba9   : > { %6332 = shalt.err (!%p6329_p10)
}
 0xbaa   : > { %s6396_s11 = smov 256  }
 0xbab   : > { %5609 = dma.vmem_to_hbm [thread:$0]  (%p6489_p3), %s5209_s26, 512, %s5211_s27, %s5195_s16, %s6396_s11, %s6396_s11, %s6392_s20  }
 0xbac PF: > { %s5225_s24 = sand.u32 1, %s6363_s12   ;;  %p8972_p12 = scmp.ge.s32.totalorder %s6375_s15, 2 }
 0xbad   : > { %s5226_s25 = scalar_lea.sflag [#allocation4], %s5225_s24 }
 0xbae   : > { %p5623_p13 = pnand %p8972_p12, %p6452_p6 }
 0xbb0   : > { %p5624_p0 = pneg %p5623_p13 }
 0xbb2   : > { %6358 = dma.done.wait (%p5624_p0), %s5226_s25, 512  }
 0xbb3   : > { %6360 = vsyncadd (%p5624_p0), %s5226_s25, 4294966784  ;;  %p17_p5 = scmp.ge.s32.totalorder %s6479_s6, 4   ;;  %s8973_s12 = smov %s6367_s13 }
 0xbb4   : > { %s8974_s13 = smov %s6371_s14  ;;  %s8975_s14 = smov %s6495_s10 }
 0xbb5   : > { %s8976_s15 = smov %s6479_s6  ;;  %19 = sbr.rel (!%p17_p5) target bundleno = 6 (0x6), region = 85 }
 0xbba   :  { %5232 = vsyncpa [#allocation3], 1 }
 0xbbb   :  { %5234 = vsyncpa [#allocation3 + $0x1], 1 }
 0xbbc   :  { %5235 = vsyncpa [#allocation6], 1 }
 0xbbd   :  { %5236 = vsyncpa [#allocation4], 1 }
 0xbbe   :  { %5238 = vsyncpa [#allocation4 + $0x1], 1 }

</bundles_post_ra>
